<compile_context>
chip_gen: v6e
topology: v6e:2x2x1
jax: 0.10.0
libtpu: 0.0.40
codegen_flags: <defaults>
</compile_context>

<pallas_src>
import functools

import jax
import jax.numpy as jnp
from jax.experimental import pallas as pl
from jax.experimental.pallas import tpu as pltpu

HIGHEST = jax.lax.Precision.HIGHEST


# ----------------------------------------------------------------------------
# Pallas kernel: full branch_main for Bt images per grid step.
# Working layout: (channels, Bt*H*W) -> channels on sublanes, image-major
# flattened spatial on lanes.
# ----------------------------------------------------------------------------
def _block_kernel(H, W, Bt, Cin, Cmid, Cout, D, precision,
                  x_ref, pw_ref, taps_ref, fc_ref, mask_ref, o_ref):
    f32 = jnp.float32
    HW = H * W
    N = Bt * HW
    cdt = x_ref.dtype                      # compute dtype (f32 exact / bf16 fast)

    # ---- 1x1 conv (Cin -> Cmid), bias=False, ReLU (MXU) ---------------------
    w1 = pw_ref[0:Cmid, 0:Cin]                                       # (Cmid, Cin)
    h1 = jnp.dot(w1, x_ref[0], preferred_element_type=f32, precision=precision)
    h1 = jnp.maximum(h1, 0.0).astype(cdt)                            # (Cmid, N)

    # ---- fused depthwise 3x3 + 5x5 (SK branches): roll + boundary mask ------
    # taps slab columns: dw1[0:25] | dw0[25:34] | b0[34] | b1[35]
    acc1 = h1 * taps_ref[:, 12:13]                # 5x5 centre tap (dy=dx=0)
    acc0 = h1 * taps_ref[:, 25 + 4:25 + 5]        # 3x3 centre tap
    for dy in range(-2, 3):
        for dx in range(-2, 3):
            if dy == 0 and dx == 0:
                continue
            s = dy * W + dx
            t5 = (dy + 2) * 5 + (dx + 2)
            # tap[q] = h1[q + s], zeroed where (y+dy, x+dx) leaves the image
            # (this also kills any roll that crosses an image boundary).
            tap = pltpu.roll(h1, (-s) % N, axis=1) * mask_ref[t5:t5 + 1, :]
            acc1 = acc1 + tap * taps_ref[:, t5:t5 + 1]
            if abs(dy) <= 1 and abs(dx) <= 1:              # 3x3 branch shares taps
                t3 = (dy + 1) * 3 + (dx + 1)
                acc0 = acc0 + tap * taps_ref[:, 25 + t3:25 + t3 + 1]
    c0 = jnp.maximum(acc0 + taps_ref[:, 34:35], 0.0)                 # (Cmid, N)
    c1 = jnp.maximum(acc1 + taps_ref[:, 35:36], 0.0)

    # ---- SK attention (per image, f32) folded into the final 1x1 conv -------
    # fc slab: wfcT[:, 0:D] | wa0[:, D:2D] | wa1[:, 2D:3D] | ba0 | ba1 ; bfc in row Cmid.
    wfcT = fc_ref[0:Cmid, 0:D]
    wa0 = fc_ref[0:Cmid, D:2 * D]
    wa1 = fc_ref[0:Cmid, 2 * D:3 * D]
    ba0 = fc_ref[0:Cmid, 3 * D:3 * D + 1]
    ba1 = fc_ref[0:Cmid, 3 * D + 1:3 * D + 2]
    bfc = fc_ref[Cmid:Cmid + 1, 0:D]
    w2 = pw_ref[Cmid:Cmid + Cout, 0:Cmid].astype(f32)                # (Cout, Cmid)

    # identity mask for the tiny (Cmid,1) column -> (1,Cmid) row flip
    rid = jax.lax.broadcasted_iota(jnp.int32, (Cmid, Cmid), 0)
    cid = jax.lax.broadcasted_iota(jnp.int32, (Cmid, Cmid), 1)
    ident = (rid == cid).astype(f32)

    inv_hw = 1.0 / HW
    for img in range(Bt):
        lo = img * HW
        c0s = c0[:, lo:lo + HW]
        c1s = c1[:, lo:lo + HW]
        # global average pool over this image (f32 accumulation)
        fea_s = (jnp.sum(c0s, axis=1, keepdims=True, dtype=f32)
                 + jnp.sum(c1s, axis=1, keepdims=True, dtype=f32)) * inv_hw  # (Cmid,1)
        fea_z = jnp.sum(wfcT * fea_s, axis=0, keepdims=True) + bfc           # (1, D)
        v0 = jnp.sum(wa0 * fea_z, axis=1, keepdims=True) + ba0               # (Cmid,1)
        v1 = jnp.sum(wa1 * fea_z, axis=1, keepdims=True) + ba1
        m = jnp.maximum(v0, v1)                     # softmax over the M=2 branches
        e0 = jnp.exp(v0 - m)
        e1 = jnp.exp(v1 - m)
        a0_col = e0 / (e0 + e1)                                               # (Cmid,1)
        # column -> row via identity-mask sublane reduce (tiny, XLU)
        a0_row = jnp.sum(ident * a0_col, axis=0, keepdims=True)              # (1,Cmid)
        a1_row = 1.0 - a0_row
        # fold attention into the final 1x1 conv: scale w2 columns, 2 small dots
        w2s0 = (w2 * a0_row).astype(cdt)
        w2s1 = (w2 * a1_row).astype(cdt)
        out = (jnp.dot(w2s0, c0s, preferred_element_type=f32, precision=precision)
               + jnp.dot(w2s1, c1s, preferred_element_type=f32, precision=precision))
        o_ref[0, :, lo:lo + HW] = jnp.maximum(out, 0.0)          # lane-dense store


# ----------------------------------------------------------------------------
# Wrapper: pallas_call plumbing around the kernel.
# ----------------------------------------------------------------------------
def _pick_bt(B, HW, max_lanes=1024):
    """Largest divisor of B keeping Bt*HW within ~1024 f32 lanes."""
    bt = 1
    for cand in range(1, B + 1):
        if B % cand == 0 and cand * HW <= max_lanes:
            bt = cand
    return bt


def block_branch_pallas(x_br, pk, *, compute_dtype=jnp.float32,
                        precision=HIGHEST, bt=None):
    """x_br: (B, Cin, H, W) f32 -> (B, Cout, H, W) f32 (the branch_main path)."""
    B, Cin, H, W = x_br.shape
    HW = H * W
    Cmid, Cout, D = pk["cmid"], pk["cout"], pk["d"]
    if bt is None:
        bt = _pick_bt(B, HW)
    G = B // bt
    N = bt * HW

    # Host-side relayout: (B, Cin, H, W) -> (G, Cin, Bt*HW), lanes image-major.
    xk = (x_br.reshape(G, bt, Cin, HW).transpose(0, 2, 1, 3)
          .reshape(G, Cin, N).astype(compute_dtype))

    # Boundary-validity mask for the 25 fused depthwise taps (zero padding),
    # tiled Bt times along lanes (identical per image).
    q = jnp.arange(HW, dtype=jnp.int32)
    yy, xx = q // W, q % W
    t = jnp.arange(25, dtype=jnp.int32)
    dys, dxs = t // 5 - 2, t % 5 - 2
    ry = yy[None, :] + dys[:, None]
    rx = xx[None, :] + dxs[:, None]
    tap_mask = ((ry >= 0) & (ry < H) & (rx >= 0) & (rx < W)).astype(compute_dtype)
    tap_mask = jnp.tile(tap_mask, (1, bt))                            # (25, N)

    pw = pk["pw"].astype(compute_dtype)      # 1x1 weights (w1 | w2) slab
    taps = pk["taps"].astype(compute_dtype)  # depthwise taps + biases slab
    fc = pk["fc"]                            # SK attention slab (kept f32)

    kernel = functools.partial(_block_kernel, H, W, bt, Cin, Cmid, Cout, D,
                               precision)
    const2 = lambda g: (0, 0)                # resident weights: no re-DMA per step

    grid_spec = pltpu.PrefetchScalarGridSpec(
        num_scalar_prefetch=0,
        grid=(G,),
        in_specs=[
            pl.BlockSpec((1, Cin, N), lambda g: (g, 0, 0)),   # x (Bt images)
            pl.BlockSpec(pw.shape, const2),                   # w1 | w2 slab
            pl.BlockSpec(taps.shape, const2),                 # dw taps + biases
            pl.BlockSpec(fc.shape, const2),                   # SK fc weights/biases
            pl.BlockSpec(tap_mask.shape, const2),             # tap boundary mask
        ],
        out_specs=pl.BlockSpec((1, Cout, N), lambda g: (g, 0, 0)),
    )
    yk = pl.pallas_call(
        kernel,
        out_shape=jax.ShapeDtypeStruct((G, Cout, N), jnp.float32),
        grid_spec=grid_spec,
        compiler_params=pltpu.CompilerParams(
            dimension_semantics=("parallel",)),
    )(xk, pw, taps, fc, tap_mask)

    # Back to NCHW: (G, Cout, Bt*HW) -> (B, Cout, H, W).
    return yk.reshape(G, Cout, bt, HW).transpose(0, 2, 1, 3).reshape(B, Cout, H, W)


def block_forward(old_x, pk, **kw):
    # channel_shuffle(old_x) == (old_x[:, 0::2], old_x[:, 1::2])
    x_proj = old_x[:, 0::2]
    x_br = old_x[:, 1::2]
    y = block_branch_pallas(x_br, pk, **kw)
    return jnp.concatenate([x_proj, y], axis=1)


# ----------------------------------------------------------------------------
# Deterministic parameter synthesis (PyTorch shapes) + kernel-layout repack.
# ----------------------------------------------------------------------------
def init_params(key, in_size, mid_size, out_size, r=2, L=32):
    in_half = in_size // 2
    out_b = out_size - in_half
    d = max(mid_size // r, L)
    ks = jax.random.split(key, 12)
    n = jax.random.normal
    return dict(
        w1=0.3 * n(ks[0], (mid_size, in_half), jnp.float32),     # 1x1, bias=False
        dw0=0.3 * n(ks[1], (mid_size, 1, 3, 3), jnp.float32),    # depthwise 3x3
        b0=0.1 * n(ks[2], (mid_size,), jnp.float32),
        dw1=0.2 * n(ks[3], (mid_size, 1, 5, 5), jnp.float32),    # depthwise 5x5
        b1=0.1 * n(ks[4], (mid_size,), jnp.float32),
        wfc=0.3 * n(ks[5], (d, mid_size), jnp.float32),
        bfc=0.1 * n(ks[6], (d,), jnp.float32),
        wfcs0=0.3 * n(ks[7], (mid_size, d), jnp.float32),
        bfcs0=0.1 * n(ks[8], (mid_size,), jnp.float32),
        wfcs1=0.3 * n(ks[9], (mid_size, d), jnp.float32),
        bfcs1=0.1 * n(ks[10], (mid_size,), jnp.float32),
        w2=0.3 * n(ks[11], (out_b, mid_size), jnp.float32),      # 1x1, bias=False
    )


def to_kernel_layout(p):
    """Pack the 12 tiny weights into 3 slabs (fewer DMA streams / VMEM tiles)."""
    mid, cin = p["w1"].shape
    cout = p["w2"].shape[0]
    d = p["wfc"].shape[0]
    # pointwise slab: rows [0:mid] = w1 (Cmid, Cin); rows [mid:mid+cout] = w2 (Cout, Cmid)
    pw = jnp.zeros((mid + cout, max(cin, mid)), jnp.float32)
    pw = pw.at[:mid, :cin].set(p["w1"])
    pw = pw.at[mid:mid + cout, :mid].set(p["w2"])
    # depthwise-tap slab: dw1(25) | dw0(9) | b0 | b1  -> (mid, 36); tap t = ky*K+kx
    taps = jnp.concatenate([p["dw1"].reshape(mid, 25),
                            p["dw0"].reshape(mid, 9),
                            p["b0"].reshape(mid, 1),
                            p["b1"].reshape(mid, 1)], axis=1)
    # SK fc slab (f32): wfcT | wa0 | wa1 | ba0 | ba1 in rows 0:mid; bfc in row mid.
    fc = jnp.zeros((mid + 1, 3 * d + 2), jnp.float32)
    fc = fc.at[:mid, 0:d].set(p["wfc"].T)
    fc = fc.at[:mid, d:2 * d].set(p["wfcs0"])
    fc = fc.at[:mid, 2 * d:3 * d].set(p["wfcs1"])
    fc = fc.at[:mid, 3 * d:3 * d + 1].set(p["bfcs0"].reshape(mid, 1))
    fc = fc.at[:mid, 3 * d + 1:3 * d + 2].set(p["bfcs1"].reshape(mid, 1))
    fc = fc.at[mid, 0:d].set(p["bfc"])
    return dict(pw=pw, taps=taps, fc=fc, cin=cin, cmid=mid, cout=cout, d=d)


# ----------------------------------------------------------------------------
# Pure-JAX reference (NCHW, matches the PyTorch forward semantics).
# ----------------------------------------------------------------------------
def block_reference(old_x, p):
    x_proj = old_x[:, 0::2]
    xb = old_x[:, 1::2]
    h = jnp.maximum(jnp.einsum("oi,bihw->bohw", p["w1"], xb, precision=HIGHEST), 0.0)

    def dwconv(x, w, b, pad):
        y = jax.lax.conv_general_dilated(
            x, w, window_strides=(1, 1), padding=[(pad, pad), (pad, pad)],
            dimension_numbers=("NCHW", "OIHW", "NCHW"),
            feature_group_count=x.shape[1], precision=HIGHEST)
        return y + b[None, :, None, None]

    c0 = jnp.maximum(dwconv(h, p["dw0"], p["b0"], 1), 0.0)
    c1 = jnp.maximum(dwconv(h, p["dw1"], p["b1"], 2), 0.0)
    fea_U = c0 + c1
    fea_s = fea_U.mean(axis=(2, 3))
    fea_z = jnp.dot(fea_s, p["wfc"].T, precision=HIGHEST) + p["bfc"]
    v0 = jnp.dot(fea_z, p["wfcs0"].T, precision=HIGHEST) + p["bfcs0"]
    v1 = jnp.dot(fea_z, p["wfcs1"].T, precision=HIGHEST) + p["bfcs1"]
    att = jax.nn.softmax(jnp.stack([v0, v1], axis=1), axis=1)
    fea_v = att[:, 0, :, None, None] * c0 + att[:, 1, :, None, None] * c1
    out = jnp.maximum(jnp.einsum("oi,bihw->bohw", p["w2"], fea_v, precision=HIGHEST), 0.0)
    return jnp.concatenate([x_proj, out], axis=1)


if __name__ == "__main__":
    key = jax.random.PRNGKey(0)
    k_x, k_p = jax.random.split(key)

    B, C, H, W = 2, 8, 16, 16            # old_x is NCHW, C % 4 == 0
    in_size, mid_size, out_size = C, 16, 12

    old_x = jax.random.normal(k_x, (B, C, H, W), jnp.float32)
    params = init_params(k_p, in_size, mid_size, out_size)
    pk = to_kernel_layout(params)

    ref = jax.block_until_ready(block_reference(old_x, params))

    # Exact-parity path: f32 compute + HIGHEST MXU precision (correctness proof).
    out_exact = jax.block_until_ready(
        block_forward(old_x, pk, compute_dtype=jnp.float32, precision=HIGHEST))
    assert out_exact.shape == (B, out_size, H, W), out_exact.shape
    assert jnp.allclose(out_exact, ref, atol=2e-4, rtol=2e-4), float(
        jnp.max(jnp.abs(out_exact - ref)))

    # Fast path (v6e/v7x): bf16 inner loop, DEFAULT MXU precision, f32 accum.
    # (On v5e pass compute_dtype=jnp.float32 instead; no bf16 VPU there.)
    out_fast = jax.block_until_ready(
        block_forward(old_x, pk, compute_dtype=jnp.bfloat16, precision=None))
    assert out_fast.shape == (B, out_size, H, W), out_fast.shape
    assert jnp.allclose(out_fast, ref, atol=1e-1, rtol=1e-1), float(
        jnp.max(jnp.abs(out_fast - ref)))

    print("KERNEL_OK")
</pallas_src>

<mosaic_0001>
module attributes {stable_mosaic.version = 11 : i64} {
  func.func @_block_kernel(%arg0: i32, %arg1: memref<1x4x512xf32, #tpu.memory_space<vmem>>, %arg2: memref<24x16xf32, #tpu.memory_space<vmem>>, %arg3: memref<16x36xf32, #tpu.memory_space<vmem>>, %arg4: memref<17x98xf32, #tpu.memory_space<vmem>>, %arg5: memref<25x512xf32, #tpu.memory_space<vmem>>, %arg6: memref<1x8x512xf32, #tpu.memory_space<vmem>>) attributes {dimension_semantics = [#tpu.dimension_semantics<parallel>], iteration_bounds = array<i64: 1>, scalar_prefetch = 0 : i64, scratch_operands = 0 : i64, tpu.core_type = #tpu.core_type<tc>, window_params = [{transform_indices = @transform_0, window_bounds = array<i64: 1, 4, 512>}, {pipeline_mode = #tpu.pipeline_mode<synchronous>, transform_indices = @transform_1, window_bounds = array<i64: 24, 16>}, {pipeline_mode = #tpu.pipeline_mode<synchronous>, transform_indices = @transform_2, window_bounds = array<i64: 16, 36>}, {pipeline_mode = #tpu.pipeline_mode<synchronous>, transform_indices = @transform_3, window_bounds = array<i64: 17, 98>}, {pipeline_mode = #tpu.pipeline_mode<synchronous>, transform_indices = @transform_4, window_bounds = array<i64: 25, 512>}, {transform_indices = @transform_5, window_bounds = array<i64: 1, 8, 512>}]} {
    %c0 = arith.constant 0 : index
    %c0_0 = arith.constant 0 : index
    %0 = vector.load %arg2[%c0, %c0_0] : memref<24x16xf32, #tpu.memory_space<vmem>>, vector<16x4xf32>
    %c0_1 = arith.constant 0 : index
    %c0_2 = arith.constant 0 : index
    %c0_3 = arith.constant 0 : index
    %1 = vector.load %arg1[%c0_1, %c0_2, %c0_3] : memref<1x4x512xf32, #tpu.memory_space<vmem>>, vector<1x4x512xf32>
    %2 = vector.shape_cast %1 : vector<1x4x512xf32> to vector<4x512xf32>
    %cst = arith.constant dense<0.000000e+00> : vector<16x512xf32>
    %3 = tpu.matmul %0, %2, %cst {dimension_numbers = #tpu.dot_dimension_numbers<[1], [0], [0], [1], [0, 0, 1, 1], [], []>, precision = #tpu.contract_precision<fp32>} : vector<16x4xf32>, vector<4x512xf32>, vector<16x512xf32> -> vector<16x512xf32>
    %cst_4 = arith.constant 0.000000e+00 : f32
    %4 = vector.broadcast %cst_4 : f32 to vector<16x512xf32>
    %5 = arith.maximumf %3, %4 : vector<16x512xf32>
    %c0_5 = arith.constant 0 : index
    %c12 = arith.constant 12 : index
    %6 = vector.load %arg3[%c0_5, %c12] : memref<16x36xf32, #tpu.memory_space<vmem>>, vector<16x1xf32>
    %7 = vector.broadcast %6 : vector<16x1xf32> to vector<16x512xf32>
    %8 = arith.mulf %5, %7 : vector<16x512xf32>
    %c0_6 = arith.constant 0 : index
    %c29 = arith.constant 29 : index
    %9 = vector.load %arg3[%c0_6, %c29] : memref<16x36xf32, #tpu.memory_space<vmem>>, vector<16x1xf32>
    %10 = vector.broadcast %9 : vector<16x1xf32> to vector<16x512xf32>
    %11 = arith.mulf %5, %10 : vector<16x512xf32>
    %c34_i32 = arith.constant 34 : i32
    %12 = tpu.dynamic_rotate %5 by %c34_i32 dim 1 : vector<16x512xf32>, i32 -> vector<16x512xf32>
    %c0_7 = arith.constant 0 : index
    %c0_8 = arith.constant 0 : index
    %13 = vector.load %arg5[%c0_7, %c0_8] : memref<25x512xf32, #tpu.memory_space<vmem>>, vector<1x512xf32>
    %14 = vector.broadcast %13 : vector<1x512xf32> to vector<16x512xf32>
    %15 = arith.mulf %12, %14 : vector<16x512xf32>
    %c0_9 = arith.constant 0 : index
    %c0_10 = arith.constant 0 : index
    %16 = vector.load %arg3[%c0_9, %c0_10] : memref<16x36xf32, #tpu.memory_space<vmem>>, vector<16x1xf32>
    %17 = vector.broadcast %16 : vector<16x1xf32> to vector<16x512xf32>
    %18 = arith.mulf %15, %17 : vector<16x512xf32>
    %19 = arith.addf %8, %18 : vector<16x512xf32>
    %c33_i32 = arith.constant 33 : i32
    %20 = tpu.dynamic_rotate %5 by %c33_i32 dim 1 : vector<16x512xf32>, i32 -> vector<16x512xf32>
    %c1 = arith.constant 1 : index
    %c0_11 = arith.constant 0 : index
    %21 = vector.load %arg5[%c1, %c0_11] : memref<25x512xf32, #tpu.memory_space<vmem>>, vector<1x512xf32>
    %22 = vector.broadcast %21 : vector<1x512xf32> to vector<16x512xf32>
    %23 = arith.mulf %20, %22 : vector<16x512xf32>
    %c0_12 = arith.constant 0 : index
    %c1_13 = arith.constant 1 : index
    %24 = vector.load %arg3[%c0_12, %c1_13] : memref<16x36xf32, #tpu.memory_space<vmem>>, vector<16x1xf32>
    %25 = vector.broadcast %24 : vector<16x1xf32> to vector<16x512xf32>
    %26 = arith.mulf %23, %25 : vector<16x512xf32>
    %27 = arith.addf %19, %26 : vector<16x512xf32>
    %c32_i32 = arith.constant 32 : i32
    %28 = tpu.dynamic_rotate %5 by %c32_i32 dim 1 : vector<16x512xf32>, i32 -> vector<16x512xf32>
    %c2 = arith.constant 2 : index
    %c0_14 = arith.constant 0 : index
    %29 = vector.load %arg5[%c2, %c0_14] : memref<25x512xf32, #tpu.memory_space<vmem>>, vector<1x512xf32>
    %30 = vector.broadcast %29 : vector<1x512xf32> to vector<16x512xf32>
    %31 = arith.mulf %28, %30 : vector<16x512xf32>
    %c0_15 = arith.constant 0 : index
    %c2_16 = arith.constant 2 : index
    %32 = vector.load %arg3[%c0_15, %c2_16] : memref<16x36xf32, #tpu.memory_space<vmem>>, vector<16x1xf32>
    %33 = vector.broadcast %32 : vector<16x1xf32> to vector<16x512xf32>
    %34 = arith.mulf %31, %33 : vector<16x512xf32>
    %35 = arith.addf %27, %34 : vector<16x512xf32>
    %c31_i32 = arith.constant 31 : i32
    %36 = tpu.dynamic_rotate %5 by %c31_i32 dim 1 : vector<16x512xf32>, i32 -> vector<16x512xf32>
    %c3 = arith.constant 3 : index
    %c0_17 = arith.constant 0 : index
    %37 = vector.load %arg5[%c3, %c0_17] : memref<25x512xf32, #tpu.memory_space<vmem>>, vector<1x512xf32>
    %38 = vector.broadcast %37 : vector<1x512xf32> to vector<16x512xf32>
    %39 = arith.mulf %36, %38 : vector<16x512xf32>
    %c0_18 = arith.constant 0 : index
    %c3_19 = arith.constant 3 : index
    %40 = vector.load %arg3[%c0_18, %c3_19] : memref<16x36xf32, #tpu.memory_space<vmem>>, vector<16x1xf32>
    %41 = vector.broadcast %40 : vector<16x1xf32> to vector<16x512xf32>
    %42 = arith.mulf %39, %41 : vector<16x512xf32>
    %43 = arith.addf %35, %42 : vector<16x512xf32>
    %c30_i32 = arith.constant 30 : i32
    %44 = tpu.dynamic_rotate %5 by %c30_i32 dim 1 : vector<16x512xf32>, i32 -> vector<16x512xf32>
    %c4 = arith.constant 4 : index
    %c0_20 = arith.constant 0 : index
    %45 = vector.load %arg5[%c4, %c0_20] : memref<25x512xf32, #tpu.memory_space<vmem>>, vector<1x512xf32>
    %46 = vector.broadcast %45 : vector<1x512xf32> to vector<16x512xf32>
    %47 = arith.mulf %44, %46 : vector<16x512xf32>
    %c0_21 = arith.constant 0 : index
    %c4_22 = arith.constant 4 : index
    %48 = vector.load %arg3[%c0_21, %c4_22] : memref<16x36xf32, #tpu.memory_space<vmem>>, vector<16x1xf32>
    %49 = vector.broadcast %48 : vector<16x1xf32> to vector<16x512xf32>
    %50 = arith.mulf %47, %49 : vector<16x512xf32>
    %51 = arith.addf %43, %50 : vector<16x512xf32>
    %c18_i32 = arith.constant 18 : i32
    %52 = tpu.dynamic_rotate %5 by %c18_i32 dim 1 : vector<16x512xf32>, i32 -> vector<16x512xf32>
    %c5 = arith.constant 5 : index
    %c0_23 = arith.constant 0 : index
    %53 = vector.load %arg5[%c5, %c0_23] : memref<25x512xf32, #tpu.memory_space<vmem>>, vector<1x512xf32>
    %54 = vector.broadcast %53 : vector<1x512xf32> to vector<16x512xf32>
    %55 = arith.mulf %52, %54 : vector<16x512xf32>
    %c0_24 = arith.constant 0 : index
    %c5_25 = arith.constant 5 : index
    %56 = vector.load %arg3[%c0_24, %c5_25] : memref<16x36xf32, #tpu.memory_space<vmem>>, vector<16x1xf32>
    %57 = vector.broadcast %56 : vector<16x1xf32> to vector<16x512xf32>
    %58 = arith.mulf %55, %57 : vector<16x512xf32>
    %59 = arith.addf %51, %58 : vector<16x512xf32>
    %c17_i32 = arith.constant 17 : i32
    %60 = tpu.dynamic_rotate %5 by %c17_i32 dim 1 : vector<16x512xf32>, i32 -> vector<16x512xf32>
    %c6 = arith.constant 6 : index
    %c0_26 = arith.constant 0 : index
    %61 = vector.load %arg5[%c6, %c0_26] : memref<25x512xf32, #tpu.memory_space<vmem>>, vector<1x512xf32>
    %62 = vector.broadcast %61 : vector<1x512xf32> to vector<16x512xf32>
    %63 = arith.mulf %60, %62 : vector<16x512xf32>
    %c0_27 = arith.constant 0 : index
    %c6_28 = arith.constant 6 : index
    %64 = vector.load %arg3[%c0_27, %c6_28] : memref<16x36xf32, #tpu.memory_space<vmem>>, vector<16x1xf32>
    %65 = vector.broadcast %64 : vector<16x1xf32> to vector<16x512xf32>
    %66 = arith.mulf %63, %65 : vector<16x512xf32>
    %67 = arith.addf %59, %66 : vector<16x512xf32>
    %c0_29 = arith.constant 0 : index
    %c25 = arith.constant 25 : index
    %68 = vector.load %arg3[%c0_29, %c25] : memref<16x36xf32, #tpu.memory_space<vmem>>, vector<16x1xf32>
    %69 = vector.broadcast %68 : vector<16x1xf32> to vector<16x512xf32>
    %70 = arith.mulf %63, %69 : vector<16x512xf32>
    %71 = arith.addf %11, %70 : vector<16x512xf32>
    %c16_i32 = arith.constant 16 : i32
    %72 = tpu.dynamic_rotate %5 by %c16_i32 dim 1 : vector<16x512xf32>, i32 -> vector<16x512xf32>
    %c7 = arith.constant 7 : index
    %c0_30 = arith.constant 0 : index
    %73 = vector.load %arg5[%c7, %c0_30] : memref<25x512xf32, #tpu.memory_space<vmem>>, vector<1x512xf32>
    %74 = vector.broadcast %73 : vector<1x512xf32> to vector<16x512xf32>
    %75 = arith.mulf %72, %74 : vector<16x512xf32>
    %c0_31 = arith.constant 0 : index
    %c7_32 = arith.constant 7 : index
    %76 = vector.load %arg3[%c0_31, %c7_32] : memref<16x36xf32, #tpu.memory_space<vmem>>, vector<16x1xf32>
    %77 = vector.broadcast %76 : vector<16x1xf32> to vector<16x512xf32>
    %78 = arith.mulf %75, %77 : vector<16x512xf32>
    %79 = arith.addf %67, %78 : vector<16x512xf32>
    %c0_33 = arith.constant 0 : index
    %c26 = arith.constant 26 : index
    %80 = vector.load %arg3[%c0_33, %c26] : memref<16x36xf32, #tpu.memory_space<vmem>>, vector<16x1xf32>
    %81 = vector.broadcast %80 : vector<16x1xf32> to vector<16x512xf32>
    %82 = arith.mulf %75, %81 : vector<16x512xf32>
    %83 = arith.addf %71, %82 : vector<16x512xf32>
    %c15_i32 = arith.constant 15 : i32
    %84 = tpu.dynamic_rotate %5 by %c15_i32 dim 1 : vector<16x512xf32>, i32 -> vector<16x512xf32>
    %c8 = arith.constant 8 : index
    %c0_34 = arith.constant 0 : index
    %85 = vector.load %arg5[%c8, %c0_34] : memref<25x512xf32, #tpu.memory_space<vmem>>, vector<1x512xf32>
    %86 = vector.broadcast %85 : vector<1x512xf32> to vector<16x512xf32>
    %87 = arith.mulf %84, %86 : vector<16x512xf32>
    %c0_35 = arith.constant 0 : index
    %c8_36 = arith.constant 8 : index
    %88 = vector.load %arg3[%c0_35, %c8_36] : memref<16x36xf32, #tpu.memory_space<vmem>>, vector<16x1xf32>
    %89 = vector.broadcast %88 : vector<16x1xf32> to vector<16x512xf32>
    %90 = arith.mulf %87, %89 : vector<16x512xf32>
    %91 = arith.addf %79, %90 : vector<16x512xf32>
    %c0_37 = arith.constant 0 : index
    %c27 = arith.constant 27 : index
    %92 = vector.load %arg3[%c0_37, %c27] : memref<16x36xf32, #tpu.memory_space<vmem>>, vector<16x1xf32>
    %93 = vector.broadcast %92 : vector<16x1xf32> to vector<16x512xf32>
    %94 = arith.mulf %87, %93 : vector<16x512xf32>
    %95 = arith.addf %83, %94 : vector<16x512xf32>
    %c14_i32 = arith.constant 14 : i32
    %96 = tpu.dynamic_rotate %5 by %c14_i32 dim 1 : vector<16x512xf32>, i32 -> vector<16x512xf32>
    %c9 = arith.constant 9 : index
    %c0_38 = arith.constant 0 : index
    %97 = vector.load %arg5[%c9, %c0_38] : memref<25x512xf32, #tpu.memory_space<vmem>>, vector<1x512xf32>
    %98 = vector.broadcast %97 : vector<1x512xf32> to vector<16x512xf32>
    %99 = arith.mulf %96, %98 : vector<16x512xf32>
    %c0_39 = arith.constant 0 : index
    %c9_40 = arith.constant 9 : index
    %100 = vector.load %arg3[%c0_39, %c9_40] : memref<16x36xf32, #tpu.memory_space<vmem>>, vector<16x1xf32>
    %101 = vector.broadcast %100 : vector<16x1xf32> to vector<16x512xf32>
    %102 = arith.mulf %99, %101 : vector<16x512xf32>
    %103 = arith.addf %91, %102 : vector<16x512xf32>
    %c2_i32 = arith.constant 2 : i32
    %104 = tpu.dynamic_rotate %5 by %c2_i32 dim 1 : vector<16x512xf32>, i32 -> vector<16x512xf32>
    %c10 = arith.constant 10 : index
    %c0_41 = arith.constant 0 : index
    %105 = vector.load %arg5[%c10, %c0_41] : memref<25x512xf32, #tpu.memory_space<vmem>>, vector<1x512xf32>
    %106 = vector.broadcast %105 : vector<1x512xf32> to vector<16x512xf32>
    %107 = arith.mulf %104, %106 : vector<16x512xf32>
    %c0_42 = arith.constant 0 : index
    %c10_43 = arith.constant 10 : index
    %108 = vector.load %arg3[%c0_42, %c10_43] : memref<16x36xf32, #tpu.memory_space<vmem>>, vector<16x1xf32>
    %109 = vector.broadcast %108 : vector<16x1xf32> to vector<16x512xf32>
    %110 = arith.mulf %107, %109 : vector<16x512xf32>
    %111 = arith.addf %103, %110 : vector<16x512xf32>
    %c1_i32 = arith.constant 1 : i32
    %112 = tpu.dynamic_rotate %5 by %c1_i32 dim 1 : vector<16x512xf32>, i32 -> vector<16x512xf32>
    %c11 = arith.constant 11 : index
    %c0_44 = arith.constant 0 : index
    %113 = vector.load %arg5[%c11, %c0_44] : memref<25x512xf32, #tpu.memory_space<vmem>>, vector<1x512xf32>
    %114 = vector.broadcast %113 : vector<1x512xf32> to vector<16x512xf32>
    %115 = arith.mulf %112, %114 : vector<16x512xf32>
    %c0_45 = arith.constant 0 : index
    %c11_46 = arith.constant 11 : index
    %116 = vector.load %arg3[%c0_45, %c11_46] : memref<16x36xf32, #tpu.memory_space<vmem>>, vector<16x1xf32>
    %117 = vector.broadcast %116 : vector<16x1xf32> to vector<16x512xf32>
    %118 = arith.mulf %115, %117 : vector<16x512xf32>
    %119 = arith.addf %111, %118 : vector<16x512xf32>
    %c0_47 = arith.constant 0 : index
    %c28 = arith.constant 28 : index
    %120 = vector.load %arg3[%c0_47, %c28] : memref<16x36xf32, #tpu.memory_space<vmem>>, vector<16x1xf32>
    %121 = vector.broadcast %120 : vector<16x1xf32> to vector<16x512xf32>
    %122 = arith.mulf %115, %121 : vector<16x512xf32>
    %123 = arith.addf %95, %122 : vector<16x512xf32>
    %c511_i32 = arith.constant 511 : i32
    %124 = tpu.dynamic_rotate %5 by %c511_i32 dim 1 : vector<16x512xf32>, i32 -> vector<16x512xf32>
    %c13 = arith.constant 13 : index
    %c0_48 = arith.constant 0 : index
    %125 = vector.load %arg5[%c13, %c0_48] : memref<25x512xf32, #tpu.memory_space<vmem>>, vector<1x512xf32>
    %126 = vector.broadcast %125 : vector<1x512xf32> to vector<16x512xf32>
    %127 = arith.mulf %124, %126 : vector<16x512xf32>
    %c0_49 = arith.constant 0 : index
    %c13_50 = arith.constant 13 : index
    %128 = vector.load %arg3[%c0_49, %c13_50] : memref<16x36xf32, #tpu.memory_space<vmem>>, vector<16x1xf32>
    %129 = vector.broadcast %128 : vector<16x1xf32> to vector<16x512xf32>
    %130 = arith.mulf %127, %129 : vector<16x512xf32>
    %131 = arith.addf %119, %130 : vector<16x512xf32>
    %c0_51 = arith.constant 0 : index
    %c30 = arith.constant 30 : index
    %132 = vector.load %arg3[%c0_51, %c30] : memref<16x36xf32, #tpu.memory_space<vmem>>, vector<16x1xf32>
    %133 = vector.broadcast %132 : vector<16x1xf32> to vector<16x512xf32>
    %134 = arith.mulf %127, %133 : vector<16x512xf32>
    %135 = arith.addf %123, %134 : vector<16x512xf32>
    %c510_i32 = arith.constant 510 : i32
    %136 = tpu.dynamic_rotate %5 by %c510_i32 dim 1 : vector<16x512xf32>, i32 -> vector<16x512xf32>
    %c14 = arith.constant 14 : index
    %c0_52 = arith.constant 0 : index
    %137 = vector.load %arg5[%c14, %c0_52] : memref<25x512xf32, #tpu.memory_space<vmem>>, vector<1x512xf32>
    %138 = vector.broadcast %137 : vector<1x512xf32> to vector<16x512xf32>
    %139 = arith.mulf %136, %138 : vector<16x512xf32>
    %c0_53 = arith.constant 0 : index
    %c14_54 = arith.constant 14 : index
    %140 = vector.load %arg3[%c0_53, %c14_54] : memref<16x36xf32, #tpu.memory_space<vmem>>, vector<16x1xf32>
    %141 = vector.broadcast %140 : vector<16x1xf32> to vector<16x512xf32>
    %142 = arith.mulf %139, %141 : vector<16x512xf32>
    %143 = arith.addf %131, %142 : vector<16x512xf32>
    %c498_i32 = arith.constant 498 : i32
    %144 = tpu.dynamic_rotate %5 by %c498_i32 dim 1 : vector<16x512xf32>, i32 -> vector<16x512xf32>
    %c15 = arith.constant 15 : index
    %c0_55 = arith.constant 0 : index
    %145 = vector.load %arg5[%c15, %c0_55] : memref<25x512xf32, #tpu.memory_space<vmem>>, vector<1x512xf32>
    %146 = vector.broadcast %145 : vector<1x512xf32> to vector<16x512xf32>
    %147 = arith.mulf %144, %146 : vector<16x512xf32>
    %c0_56 = arith.constant 0 : index
    %c15_57 = arith.constant 15 : index
    %148 = vector.load %arg3[%c0_56, %c15_57] : memref<16x36xf32, #tpu.memory_space<vmem>>, vector<16x1xf32>
    %149 = vector.broadcast %148 : vector<16x1xf32> to vector<16x512xf32>
    %150 = arith.mulf %147, %149 : vector<16x512xf32>
    %151 = arith.addf %143, %150 : vector<16x512xf32>
    %c497_i32 = arith.constant 497 : i32
    %152 = tpu.dynamic_rotate %5 by %c497_i32 dim 1 : vector<16x512xf32>, i32 -> vector<16x512xf32>
    %c16 = arith.constant 16 : index
    %c0_58 = arith.constant 0 : index
    %153 = vector.load %arg5[%c16, %c0_58] : memref<25x512xf32, #tpu.memory_space<vmem>>, vector<1x512xf32>
    %154 = vector.broadcast %153 : vector<1x512xf32> to vector<16x512xf32>
    %155 = arith.mulf %152, %154 : vector<16x512xf32>
    %c0_59 = arith.constant 0 : index
    %c16_60 = arith.constant 16 : index
    %156 = vector.load %arg3[%c0_59, %c16_60] : memref<16x36xf32, #tpu.memory_space<vmem>>, vector<16x1xf32>
    %157 = vector.broadcast %156 : vector<16x1xf32> to vector<16x512xf32>
    %158 = arith.mulf %155, %157 : vector<16x512xf32>
    %159 = arith.addf %151, %158 : vector<16x512xf32>
    %c0_61 = arith.constant 0 : index
    %c31 = arith.constant 31 : index
    %160 = vector.load %arg3[%c0_61, %c31] : memref<16x36xf32, #tpu.memory_space<vmem>>, vector<16x1xf32>
    %161 = vector.broadcast %160 : vector<16x1xf32> to vector<16x512xf32>
    %162 = arith.mulf %155, %161 : vector<16x512xf32>
    %163 = arith.addf %135, %162 : vector<16x512xf32>
    %c496_i32 = arith.constant 496 : i32
    %164 = tpu.dynamic_rotate %5 by %c496_i32 dim 1 : vector<16x512xf32>, i32 -> vector<16x512xf32>
    %c17 = arith.constant 17 : index
    %c0_62 = arith.constant 0 : index
    %165 = vector.load %arg5[%c17, %c0_62] : memref<25x512xf32, #tpu.memory_space<vmem>>, vector<1x512xf32>
    %166 = vector.broadcast %165 : vector<1x512xf32> to vector<16x512xf32>
    %167 = arith.mulf %164, %166 : vector<16x512xf32>
    %c0_63 = arith.constant 0 : index
    %c17_64 = arith.constant 17 : index
    %168 = vector.load %arg3[%c0_63, %c17_64] : memref<16x36xf32, #tpu.memory_space<vmem>>, vector<16x1xf32>
    %169 = vector.broadcast %168 : vector<16x1xf32> to vector<16x512xf32>
    %170 = arith.mulf %167, %169 : vector<16x512xf32>
    %171 = arith.addf %159, %170 : vector<16x512xf32>
    %c0_65 = arith.constant 0 : index
    %c32 = arith.constant 32 : index
    %172 = vector.load %arg3[%c0_65, %c32] : memref<16x36xf32, #tpu.memory_space<vmem>>, vector<16x1xf32>
    %173 = vector.broadcast %172 : vector<16x1xf32> to vector<16x512xf32>
    %174 = arith.mulf %167, %173 : vector<16x512xf32>
    %175 = arith.addf %163, %174 : vector<16x512xf32>
    %c495_i32 = arith.constant 495 : i32
    %176 = tpu.dynamic_rotate %5 by %c495_i32 dim 1 : vector<16x512xf32>, i32 -> vector<16x512xf32>
    %c18 = arith.constant 18 : index
    %c0_66 = arith.constant 0 : index
    %177 = vector.load %arg5[%c18, %c0_66] : memref<25x512xf32, #tpu.memory_space<vmem>>, vector<1x512xf32>
    %178 = vector.broadcast %177 : vector<1x512xf32> to vector<16x512xf32>
    %179 = arith.mulf %176, %178 : vector<16x512xf32>
    %c0_67 = arith.constant 0 : index
    %c18_68 = arith.constant 18 : index
    %180 = vector.load %arg3[%c0_67, %c18_68] : memref<16x36xf32, #tpu.memory_space<vmem>>, vector<16x1xf32>
    %181 = vector.broadcast %180 : vector<16x1xf32> to vector<16x512xf32>
    %182 = arith.mulf %179, %181 : vector<16x512xf32>
    %183 = arith.addf %171, %182 : vector<16x512xf32>
    %c0_69 = arith.constant 0 : index
    %c33 = arith.constant 33 : index
    %184 = vector.load %arg3[%c0_69, %c33] : memref<16x36xf32, #tpu.memory_space<vmem>>, vector<16x1xf32>
    %185 = vector.broadcast %184 : vector<16x1xf32> to vector<16x512xf32>
    %186 = arith.mulf %179, %185 : vector<16x512xf32>
    %187 = arith.addf %175, %186 : vector<16x512xf32>
    %c494_i32 = arith.constant 494 : i32
    %188 = tpu.dynamic_rotate %5 by %c494_i32 dim 1 : vector<16x512xf32>, i32 -> vector<16x512xf32>
    %c19 = arith.constant 19 : index
    %c0_70 = arith.constant 0 : index
    %189 = vector.load %arg5[%c19, %c0_70] : memref<25x512xf32, #tpu.memory_space<vmem>>, vector<1x512xf32>
    %190 = vector.broadcast %189 : vector<1x512xf32> to vector<16x512xf32>
    %191 = arith.mulf %188, %190 : vector<16x512xf32>
    %c0_71 = arith.constant 0 : index
    %c19_72 = arith.constant 19 : index
    %192 = vector.load %arg3[%c0_71, %c19_72] : memref<16x36xf32, #tpu.memory_space<vmem>>, vector<16x1xf32>
    %193 = vector.broadcast %192 : vector<16x1xf32> to vector<16x512xf32>
    %194 = arith.mulf %191, %193 : vector<16x512xf32>
    %195 = arith.addf %183, %194 : vector<16x512xf32>
    %c482_i32 = arith.constant 482 : i32
    %196 = tpu.dynamic_rotate %5 by %c482_i32 dim 1 : vector<16x512xf32>, i32 -> vector<16x512xf32>
    %c20 = arith.constant 20 : index
    %c0_73 = arith.constant 0 : index
    %197 = vector.load %arg5[%c20, %c0_73] : memref<25x512xf32, #tpu.memory_space<vmem>>, vector<1x512xf32>
    %198 = vector.broadcast %197 : vector<1x512xf32> to vector<16x512xf32>
    %199 = arith.mulf %196, %198 : vector<16x512xf32>
    %c0_74 = arith.constant 0 : index
    %c20_75 = arith.constant 20 : index
    %200 = vector.load %arg3[%c0_74, %c20_75] : memref<16x36xf32, #tpu.memory_space<vmem>>, vector<16x1xf32>
    %201 = vector.broadcast %200 : vector<16x1xf32> to vector<16x512xf32>
    %202 = arith.mulf %199, %201 : vector<16x512xf32>
    %203 = arith.addf %195, %202 : vector<16x512xf32>
    %c481_i32 = arith.constant 481 : i32
    %204 = tpu.dynamic_rotate %5 by %c481_i32 dim 1 : vector<16x512xf32>, i32 -> vector<16x512xf32>
    %c21 = arith.constant 21 : index
    %c0_76 = arith.constant 0 : index
    %205 = vector.load %arg5[%c21, %c0_76] : memref<25x512xf32, #tpu.memory_space<vmem>>, vector<1x512xf32>
    %206 = vector.broadcast %205 : vector<1x512xf32> to vector<16x512xf32>
    %207 = arith.mulf %204, %206 : vector<16x512xf32>
    %c0_77 = arith.constant 0 : index
    %c21_78 = arith.constant 21 : index
    %208 = vector.load %arg3[%c0_77, %c21_78] : memref<16x36xf32, #tpu.memory_space<vmem>>, vector<16x1xf32>
    %209 = vector.broadcast %208 : vector<16x1xf32> to vector<16x512xf32>
    %210 = arith.mulf %207, %209 : vector<16x512xf32>
    %211 = arith.addf %203, %210 : vector<16x512xf32>
    %c480_i32 = arith.constant 480 : i32
    %212 = tpu.dynamic_rotate %5 by %c480_i32 dim 1 : vector<16x512xf32>, i32 -> vector<16x512xf32>
    %c22 = arith.constant 22 : index
    %c0_79 = arith.constant 0 : index
    %213 = vector.load %arg5[%c22, %c0_79] : memref<25x512xf32, #tpu.memory_space<vmem>>, vector<1x512xf32>
    %214 = vector.broadcast %213 : vector<1x512xf32> to vector<16x512xf32>
    %215 = arith.mulf %212, %214 : vector<16x512xf32>
    %c0_80 = arith.constant 0 : index
    %c22_81 = arith.constant 22 : index
    %216 = vector.load %arg3[%c0_80, %c22_81] : memref<16x36xf32, #tpu.memory_space<vmem>>, vector<16x1xf32>
    %217 = vector.broadcast %216 : vector<16x1xf32> to vector<16x512xf32>
    %218 = arith.mulf %215, %217 : vector<16x512xf32>
    %219 = arith.addf %211, %218 : vector<16x512xf32>
    %c479_i32 = arith.constant 479 : i32
    %220 = tpu.dynamic_rotate %5 by %c479_i32 dim 1 : vector<16x512xf32>, i32 -> vector<16x512xf32>
    %c23 = arith.constant 23 : index
    %c0_82 = arith.constant 0 : index
    %221 = vector.load %arg5[%c23, %c0_82] : memref<25x512xf32, #tpu.memory_space<vmem>>, vector<1x512xf32>
    %222 = vector.broadcast %221 : vector<1x512xf32> to vector<16x512xf32>
    %223 = arith.mulf %220, %222 : vector<16x512xf32>
    %c0_83 = arith.constant 0 : index
    %c23_84 = arith.constant 23 : index
    %224 = vector.load %arg3[%c0_83, %c23_84] : memref<16x36xf32, #tpu.memory_space<vmem>>, vector<16x1xf32>
    %225 = vector.broadcast %224 : vector<16x1xf32> to vector<16x512xf32>
    %226 = arith.mulf %223, %225 : vector<16x512xf32>
    %227 = arith.addf %219, %226 : vector<16x512xf32>
    %c478_i32 = arith.constant 478 : i32
    %228 = tpu.dynamic_rotate %5 by %c478_i32 dim 1 : vector<16x512xf32>, i32 -> vector<16x512xf32>
    %c24 = arith.constant 24 : index
    %c0_85 = arith.constant 0 : index
    %229 = vector.load %arg5[%c24, %c0_85] : memref<25x512xf32, #tpu.memory_space<vmem>>, vector<1x512xf32>
    %230 = vector.broadcast %229 : vector<1x512xf32> to vector<16x512xf32>
    %231 = arith.mulf %228, %230 : vector<16x512xf32>
    %c0_86 = arith.constant 0 : index
    %c24_87 = arith.constant 24 : index
    %232 = vector.load %arg3[%c0_86, %c24_87] : memref<16x36xf32, #tpu.memory_space<vmem>>, vector<16x1xf32>
    %233 = vector.broadcast %232 : vector<16x1xf32> to vector<16x512xf32>
    %234 = arith.mulf %231, %233 : vector<16x512xf32>
    %235 = arith.addf %227, %234 : vector<16x512xf32>
    %c0_88 = arith.constant 0 : index
    %c34 = arith.constant 34 : index
    %236 = vector.load %arg3[%c0_88, %c34] : memref<16x36xf32, #tpu.memory_space<vmem>>, vector<16x1xf32>
    %237 = vector.broadcast %236 : vector<16x1xf32> to vector<16x512xf32>
    %238 = arith.addf %187, %237 : vector<16x512xf32>
    %cst_89 = arith.constant 0.000000e+00 : f32
    %239 = vector.broadcast %cst_89 : f32 to vector<16x512xf32>
    %240 = arith.maximumf %238, %239 : vector<16x512xf32>
    %c0_90 = arith.constant 0 : index
    %c35 = arith.constant 35 : index
    %241 = vector.load %arg3[%c0_90, %c35] : memref<16x36xf32, #tpu.memory_space<vmem>>, vector<16x1xf32>
    %242 = vector.broadcast %241 : vector<16x1xf32> to vector<16x512xf32>
    %243 = arith.addf %235, %242 : vector<16x512xf32>
    %cst_91 = arith.constant 0.000000e+00 : f32
    %244 = vector.broadcast %cst_91 : f32 to vector<16x512xf32>
    %245 = arith.maximumf %243, %244 : vector<16x512xf32>
    %c0_92 = arith.constant 0 : index
    %c0_93 = arith.constant 0 : index
    %246 = vector.load %arg4[%c0_92, %c0_93] : memref<17x98xf32, #tpu.memory_space<vmem>>, vector<16x32xf32>
    %c0_94 = arith.constant 0 : index
    %c32_95 = arith.constant 32 : index
    %247 = vector.load %arg4[%c0_94, %c32_95] : memref<17x98xf32, #tpu.memory_space<vmem>>, vector<16x32xf32>
    %c0_96 = arith.constant 0 : index
    %c64 = arith.constant 64 : index
    %248 = vector.load %arg4[%c0_96, %c64] : memref<17x98xf32, #tpu.memory_space<vmem>>, vector<16x32xf32>
    %c0_97 = arith.constant 0 : index
    %c96 = arith.constant 96 : index
    %249 = vector.load %arg4[%c0_97, %c96] : memref<17x98xf32, #tpu.memory_space<vmem>>, vector<16x1xf32>
    %c0_98 = arith.constant 0 : index
    %c97 = arith.constant 97 : index
    %250 = vector.load %arg4[%c0_98, %c97] : memref<17x98xf32, #tpu.memory_space<vmem>>, vector<16x1xf32>
    %c16_99 = arith.constant 16 : index
    %c0_100 = arith.constant 0 : index
    %251 = vector.load %arg4[%c16_99, %c0_100] : memref<17x98xf32, #tpu.memory_space<vmem>>, vector<1x32xf32>
    %c16_101 = arith.constant 16 : index
    %c0_102 = arith.constant 0 : index
    %252 = vector.load %arg2[%c16_101, %c0_102] : memref<24x16xf32, #tpu.memory_space<vmem>>, vector<8x16xf32>
    %253 = tpu.iota {dimensions = array<i32: 0>} : vector<16x16xi32>
    %254 = tpu.iota {dimensions = array<i32: 1>} : vector<16x16xi32>
    %255 = arith.cmpi eq, %253, %254 : vector<16x16xi32>
    %256 = arith.extui %255 : vector<16x16xi1> to vector<16x16xi32>
    %257 = arith.sitofp %256 : vector<16x16xi32> to vector<16x16xf32>
    %258 = vector.extract_strided_slice %240 {offsets = [0, 0], sizes = [16, 256], strides = [1, 1]} : vector<16x512xf32> to vector<16x256xf32>
    %259 = vector.extract_strided_slice %245 {offsets = [0, 0], sizes = [16, 256], strides = [1, 1]} : vector<16x512xf32> to vector<16x256xf32>
    %cst_103 = arith.constant dense<0.000000e+00> : vector<16xf32>
    %260 = vector.multi_reduction <add>, %258, %cst_103 [1] : vector<16x256xf32> to vector<16xf32>
    %261 = vector.shape_cast %260 : vector<16xf32> to vector<16x1xf32>
    %cst_104 = arith.constant dense<0.000000e+00> : vector<16xf32>
    %262 = vector.multi_reduction <add>, %259, %cst_104 [1] : vector<16x256xf32> to vector<16xf32>
    %263 = vector.shape_cast %262 : vector<16xf32> to vector<16x1xf32>
    %264 = arith.addf %261, %263 : vector<16x1xf32>
    %cst_105 = arith.constant 3.906250e-03 : f32
    %265 = vector.broadcast %cst_105 : f32 to vector<16x1xf32>
    %266 = arith.mulf %264, %265 : vector<16x1xf32>
    %267 = vector.broadcast %266 : vector<16x1xf32> to vector<16x32xf32>
    %268 = arith.mulf %246, %267 : vector<16x32xf32>
    %cst_106 = arith.constant dense<0.000000e+00> : vector<32xf32>
    %269 = vector.multi_reduction <add>, %268, %cst_106 [0] : vector<16x32xf32> to vector<32xf32>
    %270 = vector.shape_cast %269 : vector<32xf32> to vector<1x32xf32>
    %271 = arith.addf %270, %251 : vector<1x32xf32>
    %272 = vector.broadcast %271 : vector<1x32xf32> to vector<16x32xf32>
    %273 = arith.mulf %247, %272 : vector<16x32xf32>
    %cst_107 = arith.constant dense<0.000000e+00> : vector<16xf32>
    %274 = vector.multi_reduction <add>, %273, %cst_107 [1] : vector<16x32xf32> to vector<16xf32>
    %275 = vector.shape_cast %274 : vector<16xf32> to vector<16x1xf32>
    %276 = arith.addf %275, %249 : vector<16x1xf32>
    %277 = vector.broadcast %271 : vector<1x32xf32> to vector<16x32xf32>
    %278 = arith.mulf %248, %277 : vector<16x32xf32>
    %cst_108 = arith.constant dense<0.000000e+00> : vector<16xf32>
    %279 = vector.multi_reduction <add>, %278, %cst_108 [1] : vector<16x32xf32> to vector<16xf32>
    %280 = vector.shape_cast %279 : vector<16xf32> to vector<16x1xf32>
    %281 = arith.addf %280, %250 : vector<16x1xf32>
    %282 = arith.maximumf %276, %281 : vector<16x1xf32>
    %283 = arith.subf %276, %282 : vector<16x1xf32>
    %284 = math.exp %283 : vector<16x1xf32>
    %285 = arith.subf %281, %282 : vector<16x1xf32>
    %286 = math.exp %285 : vector<16x1xf32>
    %287 = arith.addf %284, %286 : vector<16x1xf32>
    %288 = arith.divf %284, %287 : vector<16x1xf32>
    %289 = vector.broadcast %288 : vector<16x1xf32> to vector<16x16xf32>
    %290 = arith.mulf %257, %289 : vector<16x16xf32>
    %cst_109 = arith.constant dense<0.000000e+00> : vector<16xf32>
    %291 = vector.multi_reduction <add>, %290, %cst_109 [0] : vector<16x16xf32> to vector<16xf32>
    %292 = vector.shape_cast %291 : vector<16xf32> to vector<1x16xf32>
    %cst_110 = arith.constant 1.000000e+00 : f32
    %293 = vector.broadcast %cst_110 : f32 to vector<1x16xf32>
    %294 = arith.subf %293, %292 : vector<1x16xf32>
    %295 = vector.broadcast %292 : vector<1x16xf32> to vector<8x16xf32>
    %296 = arith.mulf %252, %295 : vector<8x16xf32>
    %297 = vector.broadcast %294 : vector<1x16xf32> to vector<8x16xf32>
    %298 = arith.mulf %252, %297 : vector<8x16xf32>
    %cst_111 = arith.constant dense<0.000000e+00> : vector<8x256xf32>
    %299 = tpu.matmul %296, %258, %cst_111 {dimension_numbers = #tpu.dot_dimension_numbers<[1], [0], [0], [1], [0, 0, 1, 1], [], []>, precision = #tpu.contract_precision<fp32>} : vector<8x16xf32>, vector<16x256xf32>, vector<8x256xf32> -> vector<8x256xf32>
    %cst_112 = arith.constant dense<0.000000e+00> : vector<8x256xf32>
    %300 = tpu.matmul %298, %259, %cst_112 {dimension_numbers = #tpu.dot_dimension_numbers<[1], [0], [0], [1], [0, 0, 1, 1], [], []>, precision = #tpu.contract_precision<fp32>} : vector<8x16xf32>, vector<16x256xf32>, vector<8x256xf32> -> vector<8x256xf32>
    %301 = arith.addf %299, %300 : vector<8x256xf32>
    %cst_113 = arith.constant 0.000000e+00 : f32
    %302 = vector.broadcast %cst_113 : f32 to vector<8x256xf32>
    %303 = arith.maximumf %301, %302 : vector<8x256xf32>
    %c0_114 = arith.constant 0 : index
    %c0_115 = arith.constant 0 : index
    %c0_116 = arith.constant 0 : index
    %304 = vector.load %arg6[%c0_114, %c0_115, %c0_116] : memref<1x8x512xf32, #tpu.memory_space<vmem>>, vector<1x8x256xf32>
    %305 = vector.shape_cast %304 : vector<1x8x256xf32> to vector<8x256xf32>
    %306 = vector.shape_cast %303 : vector<8x256xf32> to vector<1x8x256xf32>
    tpu.vector_store %arg6[%c0_114, %c0_115, %c0_116], %306 {strides = array<i32>} : memref<1x8x512xf32, #tpu.memory_space<vmem>>, vector<1x8x256xf32>,
    %307 = vector.extract_strided_slice %240 {offsets = [0, 256], sizes = [16, 256], strides = [1, 1]} : vector<16x512xf32> to vector<16x256xf32>
    %308 = vector.extract_strided_slice %245 {offsets = [0, 256], sizes = [16, 256], strides = [1, 1]} : vector<16x512xf32> to vector<16x256xf32>
    %cst_117 = arith.constant dense<0.000000e+00> : vector<16xf32>
    %309 = vector.multi_reduction <add>, %307, %cst_117 [1] : vector<16x256xf32> to vector<16xf32>
    %310 = vector.shape_cast %309 : vector<16xf32> to vector<16x1xf32>
    %cst_118 = arith.constant dense<0.000000e+00> : vector<16xf32>
    %311 = vector.multi_reduction <add>, %308, %cst_118 [1] : vector<16x256xf32> to vector<16xf32>
    %312 = vector.shape_cast %311 : vector<16xf32> to vector<16x1xf32>
    %313 = arith.addf %310, %312 : vector<16x1xf32>
    %cst_119 = arith.constant 3.906250e-03 : f32
    %314 = vector.broadcast %cst_119 : f32 to vector<16x1xf32>
    %315 = arith.mulf %313, %314 : vector<16x1xf32>
    %316 = vector.broadcast %315 : vector<16x1xf32> to vector<16x32xf32>
    %317 = arith.mulf %246, %316 : vector<16x32xf32>
    %cst_120 = arith.constant dense<0.000000e+00> : vector<32xf32>
    %318 = vector.multi_reduction <add>, %317, %cst_120 [0] : vector<16x32xf32> to vector<32xf32>
    %319 = vector.shape_cast %318 : vector<32xf32> to vector<1x32xf32>
    %320 = arith.addf %319, %251 : vector<1x32xf32>
    %321 = vector.broadcast %320 : vector<1x32xf32> to vector<16x32xf32>
    %322 = arith.mulf %247, %321 : vector<16x32xf32>
    %cst_121 = arith.constant dense<0.000000e+00> : vector<16xf32>
    %323 = vector.multi_reduction <add>, %322, %cst_121 [1] : vector<16x32xf32> to vector<16xf32>
    %324 = vector.shape_cast %323 : vector<16xf32> to vector<16x1xf32>
    %325 = arith.addf %324, %249 : vector<16x1xf32>
    %326 = vector.broadcast %320 : vector<1x32xf32> to vector<16x32xf32>
    %327 = arith.mulf %248, %326 : vector<16x32xf32>
    %cst_122 = arith.constant dense<0.000000e+00> : vector<16xf32>
    %328 = vector.multi_reduction <add>, %327, %cst_122 [1] : vector<16x32xf32> to vector<16xf32>
    %329 = vector.shape_cast %328 : vector<16xf32> to vector<16x1xf32>
    %330 = arith.addf %329, %250 : vector<16x1xf32>
    %331 = arith.maximumf %325, %330 : vector<16x1xf32>
    %332 = arith.subf %325, %331 : vector<16x1xf32>
    %333 = math.exp %332 : vector<16x1xf32>
    %334 = arith.subf %330, %331 : vector<16x1xf32>
    %335 = math.exp %334 : vector<16x1xf32>
    %336 = arith.addf %333, %335 : vector<16x1xf32>
    %337 = arith.divf %333, %336 : vector<16x1xf32>
    %338 = vector.broadcast %337 : vector<16x1xf32> to vector<16x16xf32>
    %339 = arith.mulf %257, %338 : vector<16x16xf32>
    %cst_123 = arith.constant dense<0.000000e+00> : vector<16xf32>
    %340 = vector.multi_reduction <add>, %339, %cst_123 [0] : vector<16x16xf32> to vector<16xf32>
    %341 = vector.shape_cast %340 : vector<16xf32> to vector<1x16xf32>
    %cst_124 = arith.constant 1.000000e+00 : f32
    %342 = vector.broadcast %cst_124 : f32 to vector<1x16xf32>
    %343 = arith.subf %342, %341 : vector<1x16xf32>
    %344 = vector.broadcast %341 : vector<1x16xf32> to vector<8x16xf32>
    %345 = arith.mulf %252, %344 : vector<8x16xf32>
    %346 = vector.broadcast %343 : vector<1x16xf32> to vector<8x16xf32>
    %347 = arith.mulf %252, %346 : vector<8x16xf32>
    %cst_125 = arith.constant dense<0.000000e+00> : vector<8x256xf32>
    %348 = tpu.matmul %345, %307, %cst_125 {dimension_numbers = #tpu.dot_dimension_numbers<[1], [0], [0], [1], [0, 0, 1, 1], [], []>, precision = #tpu.contract_precision<fp32>} : vector<8x16xf32>, vector<16x256xf32>, vector<8x256xf32> -> vector<8x256xf32>
    %cst_126 = arith.constant dense<0.000000e+00> : vector<8x256xf32>
    %349 = tpu.matmul %347, %308, %cst_126 {dimension_numbers = #tpu.dot_dimension_numbers<[1], [0], [0], [1], [0, 0, 1, 1], [], []>, precision = #tpu.contract_precision<fp32>} : vector<8x16xf32>, vector<16x256xf32>, vector<8x256xf32> -> vector<8x256xf32>
    %350 = arith.addf %348, %349 : vector<8x256xf32>
    %cst_127 = arith.constant 0.000000e+00 : f32
    %351 = vector.broadcast %cst_127 : f32 to vector<8x256xf32>
    %352 = arith.maximumf %350, %351 : vector<8x256xf32>
    %c0_128 = arith.constant 0 : index
    %c0_129 = arith.constant 0 : index
    %c256 = arith.constant 256 : index
    %353 = vector.load %arg6[%c0_128, %c0_129, %c256] : memref<1x8x512xf32, #tpu.memory_space<vmem>>, vector<1x8x256xf32>
    %354 = vector.shape_cast %353 : vector<1x8x256xf32> to vector<8x256xf32>
    %355 = vector.shape_cast %352 : vector<8x256xf32> to vector<1x8x256xf32>
    tpu.vector_store %arg6[%c0_128, %c0_129, %c256], %355 {strides = array<i32>} : memref<1x8x512xf32, #tpu.memory_space<vmem>>, vector<1x8x256xf32>,
    return
  }
  func.func @transform_0(%arg0: i32) -> (i32, i32, i32) {
    %c0_i32 = arith.constant 0 : i32
    %c0_i32_0 = arith.constant 0 : i32
    %c0_i32_1 = arith.constant 0 : i32
    return %arg0, %c0_i32, %c0_i32_0 : i32, i32, i32
  }
  func.func @transform_1(%arg0: i32) -> (i32, i32) {
    %c0_i32 = arith.constant 0 : i32
    %c0_i32_0 = arith.constant 0 : i32
    %c0_i32_1 = arith.constant 0 : i32
    return %c0_i32, %c0_i32_0 : i32, i32
  }
  func.func @transform_2(%arg0: i32) -> (i32, i32) {
    %c0_i32 = arith.constant 0 : i32
    %c0_i32_0 = arith.constant 0 : i32
    %c0_i32_1 = arith.constant 0 : i32
    return %c0_i32, %c0_i32_0 : i32, i32
  }
  func.func @transform_3(%arg0: i32) -> (i32, i32) {
    %c0_i32 = arith.constant 0 : i32
    %c0_i32_0 = arith.constant 0 : i32
    %c0_i32_1 = arith.constant 0 : i32
    return %c0_i32, %c0_i32_0 : i32, i32
  }
  func.func @transform_4(%arg0: i32) -> (i32, i32) {
    %c0_i32 = arith.constant 0 : i32
    %c0_i32_0 = arith.constant 0 : i32
    %c0_i32_1 = arith.constant 0 : i32
    return %c0_i32, %c0_i32_0 : i32, i32
  }
  func.func @transform_5(%arg0: i32) -> (i32, i32, i32) {
    %c0_i32 = arith.constant 0 : i32
    %c0_i32_0 = arith.constant 0 : i32
    %c0_i32_1 = arith.constant 0 : i32
    return %arg0, %c0_i32, %c0_i32_0 : i32, i32, i32
  }
}

</mosaic_0001>

<bundles_post_ra>
// kernel: tpu_custom_call.1
= control target key start
LH: loop header
LB: loop body
LE: loop exit
PB: predicated region body
PF: predicated region fallthrough
CT: control target
= control target key end

     0   :  { %10 = vsyncpa [#allocation3], 0  ;;  %s9478_s0 = inlined_call_operand.vmem [shape: f32[1,4,512], index: 0, kind: input, shape index: {}]   ;;  %s9479_s1 = inlined_call_operand.vmem [shape: f32[24,16], index: 1, kind: input, shape index: {}]   ;;  %s9480_s2 = inlined_call_operand.hbm [shape: f32[16,36], index: 2, kind: input, shape index: {}]   ;;  %s9481_s3 = inlined_call_operand.vmem [shape: f32[17,98], index: 3, kind: input, shape index: {}]   ;;  %s9482_s4 = inlined_call_operand.hbm [shape: f32[25,512], index: 4, kind: input, shape index: {}]   ;;  %s9483_s5 = inlined_call_operand.hbm [shape: f32[1,8,512], index: 5, kind: output, shape index: {}]  }
   0x1   :  { %11 = vsyncpa [#allocation6], 0 }
   0x2   :  { %12 = vsyncpa [#allocation4], 0  ;;  %s5862_s18 = smov [#allocation2]  }
   0x3   :  { %s22_s19 = sshll.u32 %s5862_s18, 4  ;;  %s23_s19 = int_to_ptr.vmem [resolvable:$true] %s22_s19 }
   0x4   :  { %s5804_s20 = scalar_lea.vmem %s23_s19, 256  ;;  %p5809_p1 = scmp.lt.s32.totalorder %s23_s19, %s23_s19 }
   0x5   :  { %p5805_p0 = scmp.ne.s32.totalorder %s23_s19, %s5804_s20  ;;  %p5810_p2 = scmp.lt.s32.totalorder %s5804_s20, %s5804_s20 }
   0x7   :  { %p5811_p3 = por %p5810_p2, %p5809_p1 }
   0x9   :  { %p5812_p4 = pnand %p5811_p3, %p5805_p0 }
   0xb   :  { %5815 = shalt.err (!%p5812_p4)
}
   0xc   :  { %s5863_s21 = smov 128   ;;  %s5864_s22 = smov 8  }
   0xd   :  { %28 = dma.hbm_to_vmem [thread:$0]  %s9480_s2, 256, %s23_s19, [#allocation3], %s5863_s21, %s5863_s21, %s5864_s22  }
   0xe   :  { %s5865_s25 = smov [#allocation5]  }
   0xf   :  { %s36_s26 = sshll.u32 %s5865_s25, 4  ;;  %s37_s26 = int_to_ptr.vmem [resolvable:$true] %s36_s26 }
  0x10   :  { %s5824_s27 = scalar_lea.vmem %s37_s26, 2048  ;;  %p5829_p6 = scmp.lt.s32.totalorder %s37_s26, %s37_s26 }
  0x11   :  { %p5825_p5 = scmp.ne.s32.totalorder %s37_s26, %s5824_s27  ;;  %p5830_p7 = scmp.lt.s32.totalorder %s5824_s27, %s5824_s27 }
  0x13   :  { %p5831_p8 = por %p5830_p7, %p5829_p6 }
  0x15   :  { %p5832_p9 = pnand %p5831_p8, %p5825_p5 }
  0x17   :  { %5835 = shalt.err (!%p5832_p9)
}
  0x18   :  { %s5866_s28 = smov 512   ;;  %s5867_s29 = smov 32  }
  0x19   :  { %42 = dma.hbm_to_vmem [thread:$0]  %s9482_s4, 2048, %s37_s26, [#allocation6], %s5866_s28, %s5866_s28, %s5867_s29  }
  0x1a   :  { %5856 = dma.done.wait [#allocation3], 256  }
  0x1b   :  { %5857 = vsyncadd [#allocation3], 4294967040 }
  0x1c   :  { %5858 = dma.done.wait [#allocation6], 2048  }
  0x1d   :  { %5859 = vsyncadd [#allocation6], 4294965248  ;;  %v9484_v0 = vmov 0.0   ;;  %v5869_v1 = vmov 12   ;;  %v5870_v2 = vmov 0   ;;  %vm64_vm0 = vcmask 1043456  }
  0x1e   :  { %139 = vmatprep.mubr.f32.mxu0 %v9484_v0  ;;  %236 = vmatprep.mubr.f32.mxu1 %v9484_v0  ;;  %vm57_vm1 = vcmask 31744   ;;  %v51_v3 = vld [vmem:[%s9478_s0] sm:$0xff]  ;;  %v50_v5 = vld [vmem:[%s9479_s1 + $0x8] sm:$0xff]  ;;  %v5871_v35 = vmov 1   ;;  %v5872_v42 = vmov 2   ;;  %v5873_v48 = vmov 3  }
  0x1f   :  { %5678 = vset.pattern.permute.xlu0 %v5869_v1  ;;  %5679 = vset.pattern.permute.xlu1 %v5870_v2  ;;  %v49_v4 = vld [vmem:[%s9479_s1] sm:$0xff]  ;;  %v55_v6 = vcombine.high %v51_v3, %v51_v3  ;;  %v65_v7 = vsel %vm64_vm0, %v51_v3, 0  ;;  %v62_v9 = vsel %vm57_vm1, %v50_v5, 0  ;;  %v52_v10 = vld [vmem:[%s9478_s0 + $0x8] sm:$0xff]  ;;  %v5874_v50 = vmov 4   ;;  %s5885_s0 = smov 33  }
  0x20   :  { %v59_v8 = vsel %vm57_vm1, %v49_v4, 0  ;;  %v5983_v11 = vld [vmem:[#allocation2] sm:$0xff]  ;;  %v5985_v12 = vand.u32 4294901760, %v65_v7  ;;  %v5989_v14 = vand.u32 4294901760, %v62_v9  ;;  %v56_v15 = vcombine.high %v52_v10, %v52_v10  ;;  %v5994_v17 = vld [vmem:[#allocation2 + $0x8] sm:$0xff]  ;;  %s5886_s13 = smov 34  }
  0x21   :  { %v5987_v13 = vand.u32 4294901760, %v59_v8  ;;  %1113 = vperm.xlu0 %5678, %v5983_v11   ;;  %1203 = vperm.xlu1 %5679, %v5983_v11   ;;  %v67_v16 = vsel %vm64_vm0, %v55_v6, 0  ;;  %v69_v37 = vsel %vm64_vm0, %v52_v10, 0  ;;  %v5875_v51 = vmov 5   ;;  %s5887_s14 = smov 127   ;;  %s5888_s15 = smov 31  }
  0x22   :  { %v103_v18 = vand.u32 4294901760, %v67_v16  ;;  %v199_v20 = vsub.f32 %v65_v7, %v5985_v12  ;;  %v6001_v21 = vsub.f32 %v62_v9, %v5989_v14  ;;  %v71_v22 = vsel %vm64_vm0, %v56_v15, 0  ;;  %s5889_s16 = smov 30   ;;  %s5890_s17 = smov 18  }
  0x23   :  { %v5997_v19 = vsub.f32 %v59_v8, %v5987_v13  ;;  %v6012_v27 = vand.u32 4294901760, %v71_v22  ;;  %v6031_v40 = vand.u32 4294901760, %v69_v37  ;;  %v5876_v52 = vmov 6   ;;  %s5891_s18 = smov 17   ;;  %s5892_s19 = smov 16  }
  0x24   :  { %104 = vmatprep.subr.mxu0 %v103_v18  ;;  %v193_v24 = vsub.f32 %v67_v16, %v103_v18  ;;  %v200_v25 = vand.u32 4294901760, %v199_v20  ;;  %v6008_v26 = vand.u32 4294901760, %v6001_v21  ;;  %v5877_v53 = vmov 7   ;;  %s5893_s20 = smov 15   ;;  %s5894_s21 = smov 2  }
  0x25   :  { %v6005_v23 = vand.u32 4294901760, %v5997_v19  ;;  %1118 = vperm.xlu0 %5678, %v5994_v17   ;;  %106 = vmatpush1.msra.mxu0 %v5985_v12  ;;  %v6022_v34 = vsub.f32 %v71_v22, %v6012_v27  ;;  %v6040_v43 = vsub.f32 %v69_v37, %v6031_v40  ;;  %v5878_v54 = vmov 8   ;;  %s5895_s22 = smov 14   ;;  %s5897_s23 = smov 1  }
  0x26   :  { %1207 = vperm.xlu1 %5679, %v5994_v17   ;;  %v194_v29 = vand.u32 4294901760, %v193_v24  ;;  %283 = vmatprep.subr.mxu0 %v193_v24  ;;  %v201_v30 = vsub.f32 %v199_v20, %v200_v25  ;;  %v154_v31 = vsub.f32 %v6001_v21, %v6008_v26  ;;  %v5879_v55 = vmov 9   ;;  %s5898_s24 = smov 126   ;;  %s5899_s25 = smov 114  }
  0x27   :  { %v143_v28 = vsub.f32 %v5997_v19, %v6005_v23  ;;  %v708_v41 = vand.u32 4294901760, %v6022_v34  ;;  %v714_v46 = vand.u32 4294901760, %v6040_v43  ;;  %v5880_v56 = vmov 10   ;;  %s5902_s26 = smov 113   ;;  %s5905_s27 = smov 112  }
  0x28   :  { %v195_v33 = vsub.f32 %v193_v24, %v194_v29  ;;  %v202_v36 = vand.u32 4294901760, %v201_v30  ;;  %v6027_v39 = vand.u32 4294901760, %v154_v31  ;;  %v5881_v57 = vmov 11   ;;  %s5908_s28 = smov 111   ;;  %s5911_s30 = smov 110  }
  0x29   :  { %v6019_v32 = vand.u32 4294901760, %v143_v28  ;;  %5680 = vset.pattern.permute.xlu0 %v5871_v35  ;;  %v709_v44 = vsub.f32 %v6022_v34, %v708_v41  ;;  %v715_v47 = vsub.f32 %v6040_v43, %v714_v46  ;;  %v5882_v58 = vmov 13   ;;  %s5914_s6 = smov 98   ;;  %s5917_s2 = smov 97  }
  0x2a   :  { %5681 = vset.pattern.permute.xlu1 %v5871_v35  ;;  %1283 = vperm.xlu0 %5680, %v5983_v11   ;;  %v196_v38 = vand.u32 4294901760, %v195_v33  ;;  %v5883_v59 = vmov 14   ;;  %v5884_v60 = vmov 15   ;;  %s5920_s7 = smov 96   ;;  %s5923_s4 = smov 95  }
  0x2b   :  { %145 = vmatmul.mubr.f32.vlgmr.msra.gmra.mxu0 %v6019_v32  ;;  %1287 = vperm.xlu1 %5681, %v5994_v17   ;;  %v710_v45 = vand.u32 4294901760, %v709_v44  ;;  %v716_v49 = vand.u32 4294901760, %v715_v47  ;;  %s5925_s8 = smov 94  }
  0x2c   :  { %150 = vmatprep.mubr.f32.mxu0 %v9484_v0  ;;  %286 = vmatpush1.msra.mxu0 %v199_v20 }
  0x2d   :  { %197 = vmatprep.subr.mxu1 %v196_v38  ;;  %454 = vmatprep.subr.mxu0 %v194_v29 }
  0x2e   :  { %203 = vmatpush1.msra.mxu1 %v202_v36  ;;  %5683 = vset.pattern.permute.xlu0 %v5872_v42 }
  0x2f   :  { %156 = vmatmul.mubr.f32.gmra.mxu0 %v6027_v39  ;;  %238 = vmatmul.mubr.f32.vlgmr.msra.gmra.mxu1 %v5987_v13 }
  0x30   :  { %367 = vmatprep.subr.mxu1 %v103_v18  ;;  %243 = vmatprep.mubr.f32.mxu1 %v9484_v0 }
  0x31   :  { %369 = vmatpush1.msra.mxu1 %v5985_v12  ;;  %319 = vmatprep.mubr.f32.mxu0 %v9484_v0 }
  0x32   :  { %537 = vmatprep.subr.mxu1 %v103_v18  ;;  %5682 = vset.pattern.permute.xlu1 %v5872_v42 }
  0x33   :  { %245 = vmatmul.mubr.f32.gmra.mxu1 %v5989_v14  ;;  %322 = vmatmul.mubr.f32.vlgmr.msra.gmra.mxu0 %v5997_v19 }
  0x34   :  { %327 = vmatprep.mubr.f32.mxu0 %v9484_v0  ;;  %402 = vmatprep.mubr.f32.mxu1 %v9484_v0 }
  0x35   :  { %458 = vmatpush1.msra.mxu0 %v200_v25  ;;  %1363 = vperm.xlu1 %5682, %v5983_v11  }
  0x36   :  { %618 = vmatprep.subr.mxu0 %v6012_v27  ;;  %1367 = vperm.xlu0 %5683, %v5994_v17  }
  0x37   :  { %330 = vmatmul.mubr.f32.gmra.mxu0 %v6001_v21  ;;  %406 = vmatmul.mubr.f32.vlgmr.msra.gmra.mxu1 %v6005_v23 }
  0x38   :  { %539 = vmatpush1.msra.mxu1 %v5985_v12  ;;  %411 = vmatprep.mubr.f32.mxu1 %v9484_v0 }
  0x39   :  { %491 = vmatprep.mubr.f32.mxu0 %v9484_v0  ;;  %711 = vmatprep.subr.mxu1 %v710_v45 }
  0x3a   :  { %5685 = vset.pattern.permute.xlu1 %v5873_v48  ;;  %5684 = vset.pattern.permute.xlu0 %v5873_v48  ;;  %v5896_v48 = vmov 16  }
  0x3b   :  { %415 = vmatmul.mubr.f32.gmra.mxu1 %v6008_v26  ;;  %493 = vmatmul.mubr.f32.vlgmr.msra.gmra.mxu0 %v5987_v13 }
  0x3c   :  { %498 = vmatprep.mubr.f32.mxu0 %v9484_v0  ;;  %572 = vmatprep.mubr.f32.mxu1 %v9484_v0 }
  0x3d   :  { %620 = vmatpush1.msra.mxu0 %v6031_v40  ;;  %1447 = vperm.xlu1 %5685, %v5994_v17  }
  0x3e   :  { %797 = vmatprep.subr.mxu0 %v6022_v34  ;;  %1443 = vperm.xlu0 %5684, %v5983_v11  }
  0x3f   :  { %500 = vmatmul.mubr.f32.gmra.mxu0 %v5989_v14  ;;  %574 = vmatmul.mubr.f32.vlgmr.msra.gmra.mxu1 %v5987_v13 }
  0x40   :  { %579 = vmatprep.mubr.f32.mxu1 %v9484_v0  ;;  %653 = vmatprep.mubr.f32.mxu0 %v9484_v0 }
  0x41   :  { %717 = vmatpush1.msra.mxu1 %v716_v49  ;;  %5686 = vset.pattern.permute.xlu1 %v5874_v50 }
  0x42   :  { %881 = vmatprep.subr.mxu1 %v6012_v27  ;;  %1523 = vperm.xlu1 %5686, %v5983_v11  }
  0x43   :  { %581 = vmatmul.mubr.f32.gmra.mxu1 %v5989_v14  ;;  %659 = vmatmul.mubr.f32.vlgmr.msra.gmra.mxu0 %v6019_v32 }
  0x44   :  { %750 = vmatprep.mubr.f32.mxu1 %v9484_v0  ;;  %664 = vmatprep.mubr.f32.mxu0 %v9484_v0 }
  0x45   :  { %800 = vmatpush1.msra.mxu0 %v6040_v43  ;;  %5687 = vset.pattern.permute.xlu0 %v5874_v50 }
  0x46   :  { %968 = vmatprep.subr.mxu0 %v708_v41  ;;  %5689 = vset.pattern.permute.xlu1 %v5875_v51 }
  0x47   :  { %752 = vmatmul.mubr.f32.vlgmr.msra.gmra.mxu1 %v5987_v13  ;;  %670 = vmatmul.mubr.f32.gmra.mxu0 %v6027_v39 }
  0x48   :  { %757 = vmatprep.mubr.f32.mxu1 %v9484_v0  ;;  %833 = vmatprep.mubr.f32.mxu0 %v9484_v0 }
  0x49   :  { %883 = vmatpush1.msra.mxu1 %v6031_v40  ;;  %1607 = vperm.xlu1 %5689, %v5994_v17  }
  0x4a   :  { %1051 = vmatprep.subr.mxu1 %v6012_v27  ;;  %1527 = vperm.xlu0 %5687, %v5994_v17  }
  0x4b   :  { %759 = vmatmul.mubr.f32.gmra.mxu1 %v5989_v14  ;;  %836 = vmatmul.mubr.f32.vlgmr.msra.gmra.mxu0 %v5997_v19 }
  0x4c   :  { %916 = vmatprep.mubr.f32.mxu1 %v9484_v0  ;;  %841 = vmatprep.mubr.f32.mxu0 %v9484_v0 }
  0x4d   :  { %972 = vmatpush1.msra.mxu0 %v714_v46  ;;  %5690 = vset.pattern.permute.xlu1 %v5876_v52 }
  0x4e   :  { %5688 = vset.pattern.permute.xlu0 %v5875_v51  ;;  %1683 = vperm.xlu1 %5690, %v5983_v11  }
  0x4f   :  { %920 = vmatmul.mubr.f32.vlgmr.msra.gmra.mxu1 %v6005_v23  ;;  %844 = vmatmul.mubr.f32.gmra.mxu0 %v6001_v21 }
  0x50   :  { %925 = vmatprep.mubr.f32.mxu1 %v9484_v0  ;;  %1005 = vmatprep.mubr.f32.mxu0 %v9484_v0 }
  0x51   :  { %1053 = vmatpush1.msra.mxu1 %v6031_v40  ;;  %1603 = vperm.xlu0 %5688, %v5983_v11  }
  0x52   :  { %5693 = vset.pattern.permute.xlu1 %v5877_v53 }
  0x53   :  { %929 = vmatmul.mubr.f32.gmra.mxu1 %v6008_v26  ;;  %1007 = vmatmul.mubr.f32.vlgmr.msra.gmra.mxu0 %v5987_v13 }
  0x54   :  { %1086 = vmatprep.mubr.f32.mxu1 %v9484_v0  ;;  %1012 = vmatprep.mubr.f32.mxu0 %v9484_v0 }
  0x55   :  { %5691 = vset.pattern.permute.xlu0 %v5876_v52  ;;  %1791 = vperm.xlu1 %5693, %v5994_v17  }
  0x56   :  { %1687 = vperm.xlu0 %5691, %v5994_v17  }
  0x57   :  { %1088 = vmatmul.mubr.f32.vlgmr.msra.gmra.mxu1 %v5987_v13  ;;  %1014 = vmatmul.mubr.f32.gmra.mxu0 %v5989_v14 }
  0x58   :  { %1093 = vmatprep.mubr.f32.mxu1 %v9484_v0  ;;  %3535 = vmatprep.mubr.f32.mxu0 %v9484_v0 }
  0x59   :  { %5694 = vset.pattern.permute.xlu1 %v5878_v54 }
  0x5a   :  { %5692 = vset.pattern.permute.xlu0 %v5877_v53  ;;  %1891 = vperm.xlu1 %5694, %v5983_v11  }
  0x5b   :  { %1095 = vmatmul.mubr.f32.gmra.mxu1 %v5989_v14  ;;  %1787 = vperm.xlu0 %5692, %v5983_v11  }
  0x5c   :  { %3631 = vmatprep.mubr.f32.mxu1 %v9484_v0 }
  0x5e   :  { %5697 = vset.pattern.permute.xlu1 %v5879_v55 }
  0x5f   :  { %5695 = vset.pattern.permute.xlu0 %v5878_v54  ;;  %1999 = vperm.xlu1 %5697, %v5994_v17  }
  0x60   :  { %1895 = vperm.xlu0 %5695, %v5994_v17  }
  0x63   :  { %5698 = vset.pattern.permute.xlu1 %v5880_v56 }
  0x64   :  { %5696 = vset.pattern.permute.xlu0 %v5879_v55  ;;  %2075 = vperm.xlu1 %5698, %v5983_v11  }
  0x65   :  { %1995 = vperm.xlu0 %5696, %v5983_v11  }
  0x68   :  { %5701 = vset.pattern.permute.xlu1 %v5881_v57 }
  0x69   :  { %5699 = vset.pattern.permute.xlu0 %v5880_v56  ;;  %2159 = vperm.xlu1 %5701, %v5994_v17  }
  0x6a   :  { %2079 = vperm.xlu0 %5699, %v5994_v17  }
  0x6d   :  { %5702 = vset.pattern.permute.xlu1 %v5882_v58 }
  0x6e   :  { %5700 = vset.pattern.permute.xlu0 %v5881_v57  ;;  %2259 = vperm.xlu1 %5702, %v5983_v11  }
  0x6f   :  { %2155 = vperm.xlu0 %5700, %v5983_v11  }
  0x72   :  { %5705 = vset.pattern.permute.xlu1 %v5883_v59 }
  0x73   :  { %5703 = vset.pattern.permute.xlu0 %v5882_v58  ;;  %2367 = vperm.xlu1 %5705, %v5994_v17  }
  0x74   :  { %2263 = vperm.xlu0 %5703, %v5994_v17  }
  0x77   :  { %5706 = vset.pattern.permute.xlu1 %v5884_v60 }
  0x78   :  { %5704 = vset.pattern.permute.xlu0 %v5883_v59  ;;  %2443 = vperm.xlu1 %5706, %v5983_v11  }
  0x79   :  { %2363 = vperm.xlu0 %5704, %v5983_v11  }
  0x7c   :  { %5709 = vset.pattern.permute.xlu1 %v5896_v48 }
  0x7d   :  { %5707 = vset.pattern.permute.xlu0 %v5884_v60 }
  0x9c   :  { %v6155_v33 = vpop.permute.xlu1 %1203  ;;  %v6161_v38 = vpop.permute.xlu0 %1113 }
  0x9d   :  { %9882 = vst [vmem:[#allocation11_spill] sm:$0xff] %v6155_v33  ;;  %9883 = vst [vmem:[#allocation12_spill] sm:$0xff] %v6161_v38 }
  0xa0   :  { %v6171_v44 = vpop.permute.xlu0 %1118 }
  0xa1   :  { %v6163_v39 = vpop.permute.xlu1 %1207  ;;  %9886 = vst [vmem:[#allocation15_spill] sm:$0xff] %v6171_v44 }
  0xa2   :  { %9884 = vst [vmem:[#allocation13_spill] sm:$0xff] %v6163_v39 }
  0xa5   :  { %v6185_v47 = vpop.permute.xlu0 %1283 }
  0xa6   :  { %v6169_v43 = vpop.permute.xlu1 %1287  ;;  %9889 = vst [vmem:[#allocation18_spill] sm:$0xff] %v6185_v47 }
  0xa7   :  { %9885 = vst [vmem:[#allocation14_spill] sm:$0xff] %v6169_v43 }
  0xb0   :  { %v6183_v46 = vpop.permute.xlu1 %1363 }
  0xb1   :  { %9888 = vst [vmem:[#allocation17_spill] sm:$0xff] %v6183_v46  ;;  %v6194_v50 = vpop.permute.xlu0 %1367  ;;  %v6606_v46 = vld [vmem:[#allocation5 + $0x4] ss:$8 sm:$0xf] }
  0xb2   :  { %9891 = vst [vmem:[#allocation20_spill] sm:$0xff] %v6194_v50 }
  0xb8   :  { %v6192_v49 = vpop.permute.xlu1 %1447 }
  0xb9   :  { %9890 = vst [vmem:[#allocation19_spill] sm:$0xff] %v6192_v49  ;;  %v6206_v55 = vpop.permute.xlu0 %1443 }
  0xba   :  { %9893 = vst [vmem:[#allocation22_spill] sm:$0xff] %v6206_v55  ;;  %v6580_v55 = vld [vmem:[#allocation2] sm:$0xff] }
  0xbd   :  { %v6204_v54 = vpop.permute.xlu1 %1523 }
  0xbe   :  { %9892 = vst [vmem:[#allocation21_spill] sm:$0xff] %v6204_v54  ;;  %v9538_v54 = vmov 27  }
  0xeb   :  { %v146_v61 = vpop.f32.mrf.mxu0 }
  0xed   :  { %v148_v62 = vpop.f32.mrf.mxu0 }
  0xef   :  { %v157_v63 = vpop.f32.mrf.mxu0  ;;  %v239_v1 = vpop.f32.mrf.mxu1 }
  0xf0   :  { %v240_v12 = vadd.f32 %v239_v1, %v146_v61 }
  0xf1   :  { %v159_v2 = vpop.f32.mrf.mxu0  ;;  %v241_v3 = vpop.f32.mrf.mxu1 }
  0xf2   :  { %v242_v21 = vadd.f32 %v241_v3, %v148_v62  ;;  %v6217_v62 = vpop.permute.xlu1 %1607 }
  0xf3   :  { %v246_v4 = vpop.f32.mrf.mxu1  ;;  %v323_v5 = vpop.f32.mrf.mxu0  ;;  %9894 = vst [vmem:[#allocation23_spill] sm:$0xff] %v6217_v62 }
  0xf4   :  { %v324_v15 = vadd.f32 %v323_v5, %v240_v12  ;;  %v247_v34 = vadd.f32 %v246_v4, %v157_v63  ;;  %v6219_v63 = vpop.permute.xlu0 %1527 }
  0xf5   :  { %v248_v6 = vpop.f32.mrf.mxu1  ;;  %v325_v7 = vpop.f32.mrf.mxu0  ;;  %9895 = vst [vmem:[#allocation24_spill] sm:$0xff] %v6219_v63 }
  0xf6   :  { %v6121_v8 = vadd.f32 %v248_v6, %v159_v2  ;;  %v326_v24 = vadd.f32 %v325_v7, %v242_v21  ;;  %v6231_v5 = vpop.permute.xlu1 %1683 }
  0xf7   :  { %v331_v9 = vpop.f32.mrf.mxu0  ;;  %v407_v10 = vpop.f32.mrf.mxu1  ;;  %9896 = vst [vmem:[#allocation25_spill] sm:$0xff] %v6231_v5 }
  0xf8   :  { %v408_v19 = vadd.f32 %v407_v10, %v324_v15  ;;  %v332_v35 = vadd.f32 %v331_v9, %v247_v34  ;;  %v6233_v6 = vpop.permute.xlu0 %1603 }
  0xf9   :  { %v6123_v13 = vpop.f32.mrf.mxu0  ;;  %v409_v14 = vpop.f32.mrf.mxu1  ;;  %9897 = vst [vmem:[#allocation26_spill] sm:$0xff] %v6233_v6 }
  0xfa   :  { %v410_v27 = vadd.f32 %v409_v14, %v326_v24  ;;  %v334_v58 = vadd.f32 %v6123_v13, %v6121_v8  ;;  %v6243_v13 = vpop.permute.xlu1 %1791 }
  0xfb   :  { %v416_v16 = vpop.f32.mrf.mxu1  ;;  %v494_v18 = vpop.f32.mrf.mxu0  ;;  %9899 = vst [vmem:[#allocation28_spill] sm:$0xff] %v6243_v13 }
  0xfc   :  { %v495_v22 = vadd.f32 %v494_v18, %v408_v19  ;;  %v417_v37 = vadd.f32 %v416_v16, %v332_v35  ;;  %v6245_v14 = vpop.permute.xlu0 %1687 }
  0xfd   :  { %v6125_v20 = vpop.f32.mrf.mxu1  ;;  %v496_v26 = vpop.f32.mrf.mxu0  ;;  %9900 = vst [vmem:[#allocation29_spill] sm:$0xff] %v6245_v14 }
  0xfe   :  { %v497_v30 = vadd.f32 %v496_v26, %v410_v27  ;;  %v419_v61 = vadd.f32 %v6125_v20, %v334_v58  ;;  %v6255_v21 = vpop.permute.xlu1 %1891 }
  0xff   :  { %v575_v23 = vpop.f32.mrf.mxu1  ;;  %v501_v36 = vpop.f32.mrf.mxu0  ;;  %9901 = vst [vmem:[#allocation30_spill] sm:$0xff] %v6255_v21 }
 0x100   :  { %v576_v25 = vadd.f32 %v575_v23, %v495_v22  ;;  %v502_v41 = vadd.f32 %v501_v36, %v417_v37  ;;  %v6257_v22 = vpop.permute.xlu0 %1787 }
 0x101   :  { %v577_v29 = vpop.f32.mrf.mxu1  ;;  %v503_v51 = vpop.f32.mrf.mxu0  ;;  %9902 = vst [vmem:[#allocation31_spill] sm:$0xff] %v6257_v22 }
 0x102   :  { %v6127_v28 = vmax.f32 %v576_v25, 0.0  ;;  %v578_v31 = vadd.f32 %v577_v29, %v497_v30  ;;  %v504_v1 = vadd.f32 %v503_v51, %v419_v61  ;;  %v6263_v30 = vpop.permute.xlu1 %1999 }
 0x103   :  { %v582_v40 = vpop.f32.mrf.mxu1  ;;  %v660_v52 = vpop.f32.mrf.mxu0  ;;  %9903 = vst [vmem:[#allocation32_spill] sm:$0xff] %v6263_v30 }
 0x104   :  { %1226 = vrot.lane.b32.xlu1 %v6127_v28, %s5885_s0  ;;  %1145 = vrot.lane.b32.xlu0 %v6127_v28, %s5886_s13  ;;  %v6137_v32 = vmax.f32 %v578_v31, 0.0  ;;  %v583_v42 = vadd.f32 %v582_v40, %v502_v41  ;;  %v6265_v31 = vpop.permute.xlu0 %1895 }
 0x105   :  { %v584_v53 = vpop.f32.mrf.mxu1  ;;  %v662_v56 = vpop.f32.mrf.mxu0  ;;  %9904 = vst [vmem:[#allocation33_spill] sm:$0xff] %v6265_v31 }
 0x106   :  { %v6177_v45 = vmax.f32 %v583_v42, 0.0  ;;  %v585_v4 = vadd.f32 %v584_v53, %v504_v1  ;;  %v6275_v42 = vpop.permute.xlu1 %2075 }
 0x107   :  { %v753_v57 = vpop.f32.mrf.mxu1  ;;  %v6214_v59 = vpop.f32.mrf.mxu0  ;;  %9905 = vst [vmem:[#allocation34_spill] sm:$0xff] %v6275_v42  ;;  %v9507_v42 = vmov 17  }
 0x108   :  { %1306 = vrot.lane.b32.xlu1 %v6127_v28, %s5867_s29  ;;  %2202 = vrot.lane.b32.xlu0 %v6127_v28, %s5887_s14  ;;  %9887 = vst [vmem:[#allocation16_spill] sm:$0xff] %v6177_v45  ;;  %v6237_v9 = vmax.f32 %v585_v4, 0.0  ;;  %v754_v15 = vadd.f32 %v753_v57, %v660_v52  ;;  %v6277_v51 = vpop.permute.xlu0 %1995 }
 0x109   :  { %v755_v60 = vpop.f32.mrf.mxu1  ;;  %v6225_v2 = vpop.f32.mrf.mxu0  ;;  %9906 = vst [vmem:[#allocation35_spill] sm:$0xff] %v6277_v51 }
 0x10a   :  { %9898 = vst [vmem:[#allocation27_spill] sm:$0xff] %v6237_v9  ;;  %v756_v19 = vadd.f32 %v755_v60, %v662_v56  ;;  %v6285_v57 = vpop.permute.xlu1 %2159 }
 0x10b   :  { %v760_v3 = vpop.f32.mrf.mxu1  ;;  %v837_v8 = vpop.f32.mrf.mxu0  ;;  %9907 = vst [vmem:[#allocation36_spill] sm:$0xff] %v6285_v57 }
 0x10c   :  { %1386 = vrot.lane.b32.xlu1 %v6127_v28, %s5888_s15  ;;  %1149 = vrot.lane.b32.xlu0 %v6137_v32, %s5886_s13  ;;  %v838_v20 = vadd.f32 %v837_v8, %v754_v15  ;;  %v6287_v58 = vpop.permute.xlu0 %2079  ;;  %v761_v61 = vadd.f32 %v760_v3, %v6214_v59 }
 0x10d   :  { %v6235_v7 = vpop.f32.mrf.mxu1  ;;  %v839_v10 = vpop.f32.mrf.mxu0  ;;  %9908 = vst [vmem:[#allocation37_spill] sm:$0xff] %v6287_v58 }
 0x10e   :  { %v840_v25 = vadd.f32 %v839_v10, %v756_v19  ;;  %v6300_v1 = vpop.permute.xlu1 %2259  ;;  %v763_v15 = vadd.f32 %v6235_v7, %v6225_v2 }
 0x10f   :  { %v921_v12 = vpop.f32.mrf.mxu1  ;;  %v845_v16 = vpop.f32.mrf.mxu0  ;;  %9910 = vst [vmem:[#allocation39_spill] sm:$0xff] %v6300_v1 }
 0x110   :  { %1466 = vrot.lane.b32.xlu1 %v6127_v28, %s5889_s16  ;;  %1310 = vrot.lane.b32.xlu0 %v6137_v32, %s5867_s29  ;;  %v922_v26 = vadd.f32 %v921_v12, %v838_v20  ;;  %v6302_v4 = vpop.permute.xlu0 %2155  ;;  %v846_v8 = vadd.f32 %v845_v16, %v761_v61 }
 0x111   :  { %v923_v18 = vpop.f32.mrf.mxu1  ;;  %v847_v23 = vpop.f32.mrf.mxu0  ;;  %9911 = vst [vmem:[#allocation40_spill] sm:$0xff] %v6302_v4 }
 0x112   :  { %v924_v34 = vadd.f32 %v923_v18, %v840_v25  ;;  %v6308_v10 = vpop.permute.xlu1 %2367 }
 0x113   :  { %v930_v24 = vpop.f32.mrf.mxu1  ;;  %v1008_v29 = vpop.f32.mrf.mxu0  ;;  %9912 = vst [vmem:[#allocation41_spill] sm:$0xff] %v6308_v10 }
 0x114   :  { %1546 = vrot.lane.b32.xlu1 %v6127_v28, %s5890_s17  ;;  %1470 = vrot.lane.b32.xlu0 %v6137_v32, %s5889_s16  ;;  %v1009_v35 = vadd.f32 %v1008_v29, %v922_v26  ;;  %v6310_v59 = vpop.permute.xlu0 %2263  ;;  %v931_v3 = vadd.f32 %v930_v24, %v846_v8  ;;  %v848_v24 = vadd.f32 %v847_v23, %v763_v15 }
 0x115   :  { %v932_v27 = vpop.f32.mrf.mxu1  ;;  %v1010_v37 = vpop.f32.mrf.mxu0  ;;  %9913 = vst [vmem:[#allocation42_spill] sm:$0xff] %v6310_v59  ;;  %v6545_v59 = vld [vmem:[#allocation5] ss:$8 sm:$0xf] }
 0x116   :  { %v1011_v41 = vadd.f32 %v1010_v37, %v924_v34  ;;  %v6322_v16 = vpop.permute.xlu1 %2443  ;;  %v933_v7 = vadd.f32 %v932_v27, %v848_v24 }
 0x117   :  { %v1089_v36 = vpop.f32.mrf.mxu1  ;;  %v1015_v12 = vpop.f32.mrf.mxu0  ;;  %9914 = vst [vmem:[#allocation43_spill] sm:$0xff] %v6322_v16 }
 0x118   :  { %1626 = vrot.lane.b32.xlu1 %v6127_v28, %s5891_s18  ;;  %1630 = vrot.lane.b32.xlu0 %v6137_v32, %s5891_s18  ;;  %v1090_v40 = vadd.f32 %v1089_v36, %v1009_v35  ;;  %v6324_v18 = vpop.permute.xlu0 %2363  ;;  %v1016_v19 = vadd.f32 %v1015_v12, %v931_v3 }
 0x119   :  { %v1091_v52 = vpop.f32.mrf.mxu1  ;;  %9915 = vst [vmem:[#allocation44_spill] sm:$0xff] %v6324_v18  ;;  %v1017_v29 = vpop.f32.mrf.mxu0 }
 0x11a   :  { %v6279_v53 = vmax.f32 %v1090_v40, 0.0  ;;  %v1092_v56 = vadd.f32 %v1091_v52, %v1011_v41  ;;  %v1018_v36 = vadd.f32 %v1017_v29, %v933_v7 }
 0x11b   :  { %v1096_v20 = vpop.f32.mrf.mxu1 }
 0x11c   :  { %1730 = vrot.lane.b32.xlu1 %v6127_v28, %s5892_s19  ;;  %1838 = vrot.lane.b32.xlu0 %v6137_v32, %s5893_s20  ;;  %v6289_v60 = vmax.f32 %v1092_v56, 0.0  ;;  %v1097_v2 = vadd.f32 %v1096_v20, %v1016_v19 }
 0x11d   :  { %v1098_v37 = vpop.f32.mrf.mxu1 }
 0x11e   :  { %9909 = vst [vmem:[#allocation38_spill] sm:$0xff] %v6289_v60  ;;  %v6334_v34 = vmax.f32 %v1097_v2, 0.0  ;;  %v1099_v27 = vadd.f32 %v1098_v37, %v1018_v36 }
 0x120   :  { %1834 = vrot.lane.b32.xlu1 %v6127_v28, %s5893_s20  ;;  %2022 = vrot.lane.b32.xlu0 %v6137_v32, %s5894_s21  ;;  %v6356_v52 = vmax.f32 %v1099_v27, 0.0 }
 0x122   :  { %9921 = vst [vmem:[#allocation50_spill] sm:$0xff] %v6356_v52 }
 0x124   :  { %1938 = vrot.lane.b32.xlu1 %v6127_v28, %s5895_s22  ;;  %2206 = vrot.lane.b32.xlu0 %v6137_v32, %s5887_s14 }
 0x128   :  { %2018 = vrot.lane.b32.xlu1 %v6127_v28, %s5894_s21  ;;  %1228 = vrot.lane.b32.xlu0 %v6177_v45, %s5885_s0 }
 0x12c   :  { %2098 = vrot.lane.b32.xlu1 %v6127_v28, %s5897_s23  ;;  %1388 = vrot.lane.b32.xlu0 %v6177_v45, %s5888_s15 }
 0x130   :  { %2306 = vrot.lane.b32.xlu1 %v6127_v28, %s5898_s24  ;;  %1548 = vrot.lane.b32.xlu0 %v6177_v45, %s5890_s17 }
 0x134   :  { %1230 = vrot.lane.b32.xlu1 %v6137_v32, %s5885_s0  ;;  %1732 = vrot.lane.b32.xlu0 %v6177_v45, %s5892_s19 }
 0x138   :  { %1390 = vrot.lane.b32.xlu1 %v6137_v32, %s5888_s15  ;;  %1940 = vrot.lane.b32.xlu0 %v6177_v45, %s5895_s22 }
 0x13c   :  { %1550 = vrot.lane.b32.xlu1 %v6137_v32, %s5890_s17  ;;  %2100 = vrot.lane.b32.xlu0 %v6177_v45, %s5897_s23 }
 0x140   :  { %1734 = vrot.lane.b32.xlu1 %v6137_v32, %s5892_s19  ;;  %2308 = vrot.lane.b32.xlu0 %v6177_v45, %s5898_s24 }
 0x144   :  { %1942 = vrot.lane.b32.xlu1 %v6137_v32, %s5895_s22  ;;  %1232 = vrot.lane.b32.xlu0 %v6237_v9, %s5885_s0 }
 0x148   :  { %2102 = vrot.lane.b32.xlu1 %v6137_v32, %s5897_s23  ;;  %1392 = vrot.lane.b32.xlu0 %v6237_v9, %s5888_s15 }
 0x14c   :  { %2310 = vrot.lane.b32.xlu1 %v6137_v32, %s5898_s24  ;;  %1552 = vrot.lane.b32.xlu0 %v6237_v9, %s5890_s17 }
 0x150   :  { %1147 = vrot.lane.b32.xlu1 %v6177_v45, %s5886_s13  ;;  %1736 = vrot.lane.b32.xlu0 %v6237_v9, %s5892_s19 }
 0x154   :  { %1308 = vrot.lane.b32.xlu1 %v6177_v45, %s5867_s29  ;;  %1944 = vrot.lane.b32.xlu0 %v6237_v9, %s5895_s22 }
 0x158   :  { %1468 = vrot.lane.b32.xlu1 %v6177_v45, %s5889_s16  ;;  %2104 = vrot.lane.b32.xlu0 %v6237_v9, %s5897_s23 }
 0x15c   :  { %1628 = vrot.lane.b32.xlu1 %v6177_v45, %s5891_s18  ;;  %2312 = vrot.lane.b32.xlu0 %v6237_v9, %s5898_s24 }
 0x160   :  { %1836 = vrot.lane.b32.xlu1 %v6177_v45, %s5893_s20  ;;  %2210 = vrot.lane.b32.xlu0 %v6279_v53, %s5887_s14 }
 0x164   :  { %2020 = vrot.lane.b32.xlu1 %v6177_v45, %s5894_s21  ;;  %1157 = vrot.lane.b32.xlu0 %v6289_v60, %s5886_s13 }
 0x168   :  { %2204 = vrot.lane.b32.xlu1 %v6177_v45, %s5887_s14  ;;  %1318 = vrot.lane.b32.xlu0 %v6289_v60, %s5867_s29 }
 0x16c   :  { %1478 = vrot.lane.b32.xlu0 %v6289_v60, %s5889_s16  ;;  %1151 = vrot.lane.b32.xlu1 %v6237_v9, %s5886_s13 }
 0x170   :  { %1638 = vrot.lane.b32.xlu0 %v6289_v60, %s5891_s18  ;;  %1312 = vrot.lane.b32.xlu1 %v6237_v9, %s5867_s29 }
 0x174   :  { %1846 = vrot.lane.b32.xlu0 %v6289_v60, %s5893_s20  ;;  %1472 = vrot.lane.b32.xlu1 %v6237_v9, %s5889_s16 }
 0x176   :  { %v6330_v25 = vpop.permute.xlu1 %1226  ;;  %v6332_v26 = vpop.permute.xlu0 %1145 }
 0x177   :  { %9916 = vst [vmem:[#allocation45_spill] sm:$0xff] %v6330_v25 }
 0x178   :  { %2030 = vrot.lane.b32.xlu0 %v6289_v60, %s5894_s21  ;;  %1632 = vrot.lane.b32.xlu1 %v6237_v9, %s5891_s18 }
 0x17a   :  { %v6340_v23 = vpop.permute.xlu1 %1306  ;;  %v6342_v35 = vpop.permute.xlu0 %2202 }
 0x17b   :  { %9917 = vst [vmem:[#allocation46_spill] sm:$0xff] %v6340_v23  ;;  %9918 = vst [vmem:[#allocation47_spill] sm:$0xff] %v6342_v35  ;;  %v9503_v35 = vmov 25  }
 0x17c   :  { %1236 = vrot.lane.b32.xlu0 %v6334_v34, %s5885_s0  ;;  %1840 = vrot.lane.b32.xlu1 %v6237_v9, %s5893_s20 }
 0x17e   :  { %v6348_v40 = vpop.permute.xlu1 %1386  ;;  %v6350_v41 = vpop.permute.xlu0 %1149 }
 0x17f   :  { %9919 = vst [vmem:[#allocation48_spill] sm:$0xff] %v6348_v40  ;;  %9920 = vst [vmem:[#allocation49_spill] sm:$0xff] %v6350_v41  ;;  %v6608_v40 = vld [vmem:[#allocation5 + $0x5] ss:$8 sm:$0xf] }
 0x180   :  { %2316 = vrot.lane.b32.xlu0 %v6334_v34, %s5898_s24  ;;  %2024 = vrot.lane.b32.xlu1 %v6237_v9, %s5894_s21 }
 0x182   :  { %v6358_v56 = vpop.permute.xlu1 %1466  ;;  %v6360_v61 = vpop.permute.xlu0 %1310 }
 0x183   :  { %9922 = vst [vmem:[#allocation51_spill] sm:$0xff] %v6358_v56  ;;  %9923 = vst [vmem:[#allocation52_spill] sm:$0xff] %v6360_v61 }
 0x184   :  { %1240 = vrot.lane.b32.xlu0 %v6356_v52, %s5885_s0  ;;  %2208 = vrot.lane.b32.xlu1 %v6237_v9, %s5887_s14 }
 0x186   :  { %v6366_v8 = vpop.permute.xlu1 %1546  ;;  %v6368_v3 = vpop.permute.xlu0 %1470 }
 0x187   :  { %9924 = vst [vmem:[#allocation53_spill] sm:$0xff] %v6366_v8  ;;  %9925 = vst [vmem:[#allocation54_spill] sm:$0xff] %v6368_v3  ;;  %v9499_v3 = vmov 29  }
 0x188   :  { %1400 = vrot.lane.b32.xlu0 %v6356_v52, %s5888_s15  ;;  %1153 = vrot.lane.b32.xlu1 %v6279_v53, %s5886_s13 }
 0x18a   :  { %v6374_v12 = vpop.permute.xlu1 %1626  ;;  %v6376_v15 = vpop.permute.xlu0 %1630 }
 0x18b   :  { %9926 = vst [vmem:[#allocation55_spill] sm:$0xff] %v6374_v12  ;;  %9927 = vst [vmem:[#allocation56_spill] sm:$0xff] %v6376_v15 }
 0x18c   :  { %1560 = vrot.lane.b32.xlu0 %v6356_v52, %s5890_s17  ;;  %1234 = vrot.lane.b32.xlu1 %v6279_v53, %s5885_s0 }
 0x18e   :  { %v6382_v19 = vpop.permute.xlu1 %1730  ;;  %v6384_v20 = vpop.permute.xlu0 %1838 }
 0x18f   :  { %9928 = vst [vmem:[#allocation57_spill] sm:$0xff] %v6382_v19  ;;  %9929 = vst [vmem:[#allocation58_spill] sm:$0xff] %v6384_v20 }
 0x190   :  { %1744 = vrot.lane.b32.xlu0 %v6356_v52, %s5892_s19  ;;  %2314 = vrot.lane.b32.xlu1 %v6279_v53, %s5898_s24 }
 0x192   :  { %v6390_v24 = vpop.permute.xlu1 %1834  ;;  %v6392_v2 = vpop.permute.xlu0 %2022 }
 0x193   :  { %9930 = vst [vmem:[#allocation59_spill] sm:$0xff] %v6390_v24  ;;  %9931 = vst [vmem:[#allocation60_spill] sm:$0xff] %v6392_v2  ;;  %v6539_v24 = vld [vmem:[#allocation5 + $0x1] ss:$8 sm:$0xf] }
 0x194   :  { %1952 = vrot.lane.b32.xlu0 %v6356_v52, %s5895_s22  ;;  %1238 = vrot.lane.b32.xlu1 %v6289_v60, %s5885_s0 }
 0x196   :  { %v6398_v7 = vpop.permute.xlu1 %1938  ;;  %v6400_v29 = vpop.permute.xlu0 %2206 }
 0x197   :  { %9932 = vst [vmem:[#allocation61_spill] sm:$0xff] %v6398_v7  ;;  %9933 = vst [vmem:[#allocation62_spill] sm:$0xff] %v6400_v29 }
 0x198   :  { %2112 = vrot.lane.b32.xlu0 %v6356_v52, %s5897_s23  ;;  %1398 = vrot.lane.b32.xlu1 %v6289_v60, %s5888_s15 }
 0x19a   :  { %v6406_v36 = vpop.permute.xlu1 %2018  ;;  %v6408_v37 = vpop.permute.xlu0 %1228 }
 0x19b   :  { %9934 = vst [vmem:[#allocation63_spill] sm:$0xff] %v6406_v36 }
 0x19c   :  { %2447 = vperm.xlu0 %5707, %v5994_v17   ;;  %1558 = vrot.lane.b32.xlu1 %v6289_v60, %s5890_s17 }
 0x19e   :  { %v6413_v27 = vpop.permute.xlu1 %2098  ;;  %v6415_v0 = vpop.permute.xlu0 %1388 }
 0x19f   :  { %9935 = vst [vmem:[#allocation64_spill] sm:$0xff] %v6413_v27  ;;  %v9516_v27 = vmov 26  }
 0x1a0   :  { %2386 = vrot.lane.b32.xlu0 %v6127_v28, %s5899_s25  ;;  %1742 = vrot.lane.b32.xlu1 %v6289_v60, %s5892_s19 }
 0x1a1   :  { %5708 = vset.pattern.permute.xlu0 %v5896_v48 }
 0x1a2   :  { %v6422_v2 = vpop.permute.xlu1 %2306  ;;  %v6424_v20 = vpop.permute.xlu0 %1548 }
 0x1a3   :  { %9936 = vst [vmem:[#allocation65_spill] sm:$0xff] %v6422_v2 }
 0x1a4   :  { %2390 = vrot.lane.b32.xlu0 %v6137_v32, %s5899_s25  ;;  %1950 = vrot.lane.b32.xlu1 %v6289_v60, %s5895_s22 }
 0x1a6   :  { %v6430_v16 = vpop.permute.xlu1 %1230  ;;  %v6432_v18 = vpop.permute.xlu0 %1732 }
 0x1a7   :  { %9937 = vst [vmem:[#allocation66_spill] sm:$0xff] %v6430_v16 }
 0x1a8   :  { %2394 = vrot.lane.b32.xlu0 %v6279_v53, %s5899_s25  ;;  %2110 = vrot.lane.b32.xlu1 %v6289_v60, %s5897_s23 }
 0x1aa   :  { %v6438_v48 = vpop.permute.xlu1 %1390  ;;  %v6440_v15 = vpop.permute.xlu0 %1940 }
 0x1ab   :  { %9938 = vst [vmem:[#allocation67_spill] sm:$0xff] %v6438_v48 }
 0x1ac   :  { %2523 = vperm.xlu0 %5708, %v5983_v11   ;;  %1155 = vrot.lane.b32.xlu1 %v6334_v34, %s5886_s13 }
 0x1ae   :  { %v6445_v1 = vpop.permute.xlu1 %1550  ;;  %v6447_v2 = vpop.permute.xlu0 %2100 }
 0x1af   :  { %9939 = vst [vmem:[#allocation68_spill] sm:$0xff] %v6445_v1 }
 0x1b0   :  { %5711 = vset.pattern.permute.xlu0 %v9499_v3  ;;  %2212 = vrot.lane.b32.xlu1 %v6334_v34, %s5887_s14 }
 0x1b1   :  { %1134 = vperm.xlu0 %5711, %v5994_v17  }
 0x1b2   :  { %v6453_v60 = vpop.permute.xlu1 %1734  ;;  %v6455_v4 = vpop.permute.xlu0 %2308 }
 0x1b3   :  { %9940 = vst [vmem:[#allocation69_spill] sm:$0xff] %v6453_v60  ;;  %9941 = vst [vmem:[#allocation70_spill] sm:$0xff] %v6455_v4  ;;  %v6564_v4 = vld [vmem:[#allocation5 + $0x2] ss:$8 sm:$0xf] }
 0x1b4   :  { %1159 = vrot.lane.b32.xlu1 %v6356_v52, %s5886_s13 }
 0x1b5   :  { %5712 = vset.pattern.permute.xlu0 %v9503_v35 }
 0x1b6   :  { %v6460_v1 = vpop.permute.xlu1 %1942  ;;  %1707 = vperm.xlu0 %5712, %v5983_v11   ;;  %v6463_v3 = vpop.permute.xlu0 %1232 }
 0x1b7   :  { %9942 = vst [vmem:[#allocation71_spill] sm:$0xff] %v6460_v1  ;;  %9943 = vst [vmem:[#allocation72_spill] sm:$0xff] %v6463_v3 }
 0x1b8   :  { %1320 = vrot.lane.b32.xlu1 %v6356_v52, %s5867_s29 }
 0x1ba   :  { %v6467_v29 = vpop.permute.xlu1 %2102  ;;  %2468 = vrot.lane.b32.xlu0 %v6177_v45, %s5902_s26  ;;  %v6471_v60 = vpop.permute.xlu0 %1392 }
 0x1bb   :  { %9944 = vst [vmem:[#allocation73_spill] sm:$0xff] %v6467_v29  ;;  %9945 = vst [vmem:[#allocation74_spill] sm:$0xff] %v6471_v60  ;;  %5715 = vset.pattern.permute.xlu0 %v9507_v42 }
 0x1bc   :  { %1480 = vrot.lane.b32.xlu1 %v6356_v52, %s5889_s16 }
 0x1be   :  { %v6476_v35 = vpop.permute.xlu1 %2310  ;;  %2472 = vrot.lane.b32.xlu0 %v6237_v9, %s5902_s26  ;;  %v6480_v1 = vpop.permute.xlu0 %1552 }
 0x1bf   :  { %9946 = vst [vmem:[#allocation75_spill] sm:$0xff] %v6476_v35  ;;  %9947 = vst [vmem:[#allocation76_spill] sm:$0xff] %v6480_v1 }
 0x1c0   :  { %1640 = vrot.lane.b32.xlu1 %v6356_v52, %s5891_s18 }
 0x1c2   :  { %v6484_v29 = vpop.permute.xlu1 %1147  ;;  %2476 = vrot.lane.b32.xlu0 %v6334_v34, %s5902_s26  ;;  %v6488_v48 = vpop.permute.xlu0 %1736 }
 0x1c3   :  { %9948 = vst [vmem:[#allocation77_spill] sm:$0xff] %v6488_v48 }
 0x1c4   :  { %1848 = vrot.lane.b32.xlu1 %v6356_v52, %s5893_s20 }
 0x1c6   :  { %v6492_v42 = vpop.permute.xlu1 %1308  ;;  %2631 = vperm.xlu0 %5715, %v5994_v17   ;;  %v6495_v35 = vpop.permute.xlu0 %1944 }
 0x1c7   :  { %9949 = vst [vmem:[#allocation78_spill] sm:$0xff] %v6495_v35 }
 0x1c8   :  { %2032 = vrot.lane.b32.xlu1 %v6356_v52, %s5894_s21  ;;  %v9521_v52 = vmov 18  }
 0x1ca   :  { %v6499_v61 = vpop.permute.xlu1 %1468  ;;  %5716 = vset.pattern.permute.xlu0 %v9516_v27  ;;  %v6502_v51 = vpop.permute.xlu0 %2104  ;;  %v1161_v27 = vlaneseq }
 0x1cb   :  { %9950 = vst [vmem:[#allocation79_spill] sm:$0xff] %v6502_v51  ;;  %1811 = vperm.xlu0 %5716, %v5983_v11  }
 0x1cc   :  { %1314 = vrot.lane.b32.xlu1 %v6279_v53, %s5867_s29  ;;  %v6524_v41 = vshrl.u32 %v1161_v27, 7 }
 0x1ce   :  { %v6507_v36 = vpop.permute.xlu1 %1628  ;;  %v6509_v21 = vpop.permute.xlu0 %2312  ;;  %9953 = vst [vmem:[#allocation82_spill] sm:$0xff] %v6524_v41 }
 0x1cf   :  { %9951 = vst [vmem:[#allocation80_spill] sm:$0xff] %v6509_v21  ;;  %2572 = vrot.lane.b32.xlu0 %v6177_v45, %s5905_s27 }
 0x1d0   :  { %1316 = vrot.lane.b32.xlu1 %v6334_v34, %s5867_s29  ;;  %5719 = vset.pattern.permute.xlu0 %v9521_v52  ;;  %v6534_v52 = vand.u32 127, %v1161_v27 }
 0x1d2   :  { %v6516_v16 = vpop.permute.xlu1 %1836  ;;  %v6518_v11 = vpop.permute.xlu0 %2210  ;;  %vm1242_vm2 = vcmp.lt.s32.totalorder %v6534_v52, 33  ;;  %vm1163_vm3 = vcmp.lt.s32.totalorder %v6534_v52, 34  ;;  %vm1402_vm4 = vcmp.lt.s32.totalorder %v6534_v52, 31  ;;  %vm1322_vm5 = vcmp.lt.s32.totalorder %v6534_v52, 32 }
 0x1d3   :  { %9952 = vst [vmem:[#allocation81_spill] sm:$0xff] %v6518_v11  ;;  %2576 = vrot.lane.b32.xlu0 %v6237_v9, %s5905_s27  ;;  %v6537_v11 = vsub.s32 1, %v6524_v41  ;;  %v1248_v27 = vsel %vm1242_vm2, %v6408_v37, %v6463_v3  ;;  %v6570_v3 = vld [vmem:[#allocation5 + $0x3] ss:$8 sm:$0xf]  ;;  %vm1562_vm6 = vcmp.lt.s32.totalorder %v6534_v52, 18 }
 0x1d4   :  { %2388 = vrot.lane.b32.xlu1 %v6177_v45, %s5899_s25  ;;  %vm1482_vm7 = vcmp.lt.s32.totalorder %v6534_v52, 30  ;;  %vm1746_vm8 = vcmp.lt.s32.totalorder %v6534_v52, 16  ;;  %vm1642_vm9 = vcmp.lt.s32.totalorder %v6534_v52, 17  ;;  %vm9718_vm10 = vcmp.lt.s32.totalorder %v6534_v52, 14 }
 0x1d5   :  { %9955 = vst [vmem:[#allocation84_spill] sm:$0xff] %v6537_v11  ;;  %v6557_v19 = vrot.slane %v6539_v24, %v6537_v11  ;;  %v6562_v6 = vrot.slane %v6545_v59, %v6537_v11  ;;  %vm1850_vm11 = vcmp.lt.s32.totalorder %v6534_v52, 15  ;;  %vm9713_vm12 = vcmp.lt.s32.totalorder %v6534_v52, 1 }
 0x1d6   :  { %v6526_v7 = vpop.permute.xlu1 %2020  ;;  %v6528_v22 = vpop.permute.xlu0 %1157  ;;  %vm9710_vm13 = vcmp.lt.s32.totalorder %v6534_v52, 2  ;;  %vm2218_vm14 = vcmp.lt.s32.totalorder %v6534_v52, 127  ;;  %vm9701_vm15 = vcmp.lt.s32.totalorder %v6534_v52, 126  ;;  %vm2402_vm0 = vcmp.lt.s32.totalorder %v6534_v52, 114 }
 0x1d7   :  { %9954 = vst [vmem:[#allocation83_spill] sm:$0xff] %v6528_v22  ;;  %2580 = vrot.lane.b32.xlu0 %v6334_v34, %s5905_s27  ;;  %9958 = vst [vmem:[#allocation87_spill] sm:$0xff] %v6557_v19  ;;  %vm9724_vm1 = vcmp.lt.s32.totalorder %v6534_v52, 113 }
 0x1d8   :  { %2392 = vrot.lane.b32.xlu1 %v6237_v9, %s5899_s25  ;;  %9959 = vst [vmem:[#allocation88_spill] sm:$0xff] %v6562_v6 }
 0x1da   :  { %v6541_v10 = vpop.permute.xlu1 %2204  ;;  %v6543_v5 = vpop.permute.xlu0 %1318 }
 0x1db   :  { %9956 = vst [vmem:[#allocation85_spill] sm:$0xff] %v6541_v10  ;;  %9957 = vst [vmem:[#allocation86_spill] sm:$0xff] %v6543_v5  ;;  %2735 = vperm.xlu0 %5719, %v5994_v17   ;;  %v1279_v10 = vmul.f32 %v6557_v19, %v1248_v27  ;;  %v6589_v27 = vrot.slane %v6564_v4, %v6537_v11  ;;  %v9966_v5 = vmov 29  }
 0x1dc   :  { %2396 = vrot.lane.b32.xlu1 %v6334_v34, %s5899_s25 }
 0x1dd   :  { %9962 = vst [vmem:[#allocation91_spill] sm:$0xff] %v6589_v27  ;;  %v1295_v47 = vmul.f32 %v6169_v43, %v1279_v10  ;;  %v1568_v10 = vsel %vm1562_vm6, %v6424_v20, %v6480_v1 }
 0x1de   :  { %v6566_v17 = vpop.permute.xlu0 %1478  ;;  %v6568_v21 = vpop.permute.xlu1 %1151 }
 0x1df   :  { %9960 = vst [vmem:[#allocation89_spill] sm:$0xff] %v6566_v17  ;;  %9961 = vst [vmem:[#allocation90_spill] sm:$0xff] %v6568_v21  ;;  %v1169_v12 = vsel %vm1163_vm3, %v6484_v29, %v6568_v21  ;;  %5720 = vset.pattern.permute.xlu0 %v9538_v54  ;;  %v6583_v17 = vld [vmem:[#allocation2 + $0x8] sm:$0xff]  ;;  %v1408_v54 = vsel %vm1402_vm4, %v6415_v0, %v6471_v60  ;;  %v6599_v21 = vrot.slane %v6570_v3, %v6537_v11 }
 0x1e0   :  { %v1199_v8 = vmul.f32 %v6562_v6, %v1169_v12  ;;  %1915 = vperm.xlu0 %5720, %v6580_v55   ;;  %2527 = vperm.xlu1 %5709, %v6583_v17   ;;  %v1126_v12 = vmul.f32 %v6171_v44, %v6237_v9 }
 0x1e1   :  { %9963 = vst [vmem:[#allocation92_spill] sm:$0xff] %v6599_v21  ;;  %v1439_v38 = vmul.f32 %v6599_v21, %v1408_v54  ;;  %v6630_v54 = vrot.slane %v6606_v46, %v6537_v11 }
 0x1e2   :  { %v1215_v19 = vmul.f32 %v6163_v39, %v1199_v8  ;;  %v6602_v6 = vpop.permute.xlu0 %1638  ;;  %v6604_v56 = vpop.permute.xlu1 %1312 }
 0x1e3   :  { %9964 = vst [vmem:[#allocation93_spill] sm:$0xff] %v6602_v6  ;;  %9965 = vst [vmem:[#allocation94_spill] sm:$0xff] %v6604_v56  ;;  %v1328_v60 = vsel %vm1322_vm5, %v6492_v42, %v6604_v56  ;;  %v9553_v56 = vmov 19   ;;  %v1455_v23 = vmul.f32 %v6192_v49, %v1439_v38 }
 0x1e4   :  { %v1223_v8 = vadd.f32 %v1215_v19, %v1126_v12  ;;  %v1359_v6 = vmul.f32 %v6589_v27, %v1328_v60  ;;  %2676 = vrot.lane.b32.xlu0 %v6177_v45, %s5908_s28  ;;  %5710 = vset.pattern.permute.xlu1 %v9966_v5  ;;  %9967 = vst [vmem:[#allocation95_spill] sm:$0xff] %v6630_v54  ;;  %v6632_v60 = vld [vmem:[#allocation5 + $0x6] ss:$8 sm:$0xf] }
 0x1e5   :  { %1130 = vperm.xlu1 %5710, %v6580_v55   ;;  %5723 = vset.pattern.permute.xlu0 %v9553_v56  ;;  %v6636_v5 = vrot.slane %v6608_v40, %v6537_v11  ;;  %v6644_v56 = vld [vmem:[#allocation5 + $0x7] ss:$8 sm:$0xf]  ;;  %v6664_v38 = vrot.slane %v6632_v60, %v6537_v11 }
 0x1e6   :  { %v1303_v19 = vadd.f32 %v1295_v47, %v1223_v8  ;;  %v1375_v12 = vmul.f32 %v6194_v50, %v1359_v6  ;;  %v6639_v21 = vpop.permute.xlu0 %1846  ;;  %v6641_v1 = vpop.permute.xlu1 %1472  ;;  %v1752_v8 = vsel %vm1746_vm8, %v6432_v18, %v6488_v48  ;;  %v9975_v48 = vmov 25  }
 0x1e7   :  { %9968 = vst [vmem:[#allocation96_spill] sm:$0xff] %v6636_v5  ;;  %9969 = vst [vmem:[#allocation97_spill] sm:$0xff] %v6639_v21  ;;  %v1488_v27 = vsel %vm1482_vm7, %v6499_v61, %v6641_v1  ;;  %v1599_v33 = vmul.f32 %v6636_v5, %v1568_v10  ;;  %v6666_v10 = vld [vmem:[#allocation5 + $0x20] ss:$8 sm:$0xf] }
 0x1e8   :  { %9970 = vst [vmem:[#allocation98_spill] sm:$0xff] %v6641_v1  ;;  %v1383_v47 = vadd.f32 %v1375_v12, %v1303_v19  ;;  %v1519_v6 = vmul.f32 %v6630_v54, %v1488_v27  ;;  %2680 = vrot.lane.b32.xlu0 %v6237_v9, %s5908_s28  ;;  %9971 = vst [vmem:[#allocation99_spill] sm:$0xff] %v6664_v38  ;;  %v6670_v27 = vrot.slane %v6644_v56, %v6537_v11  ;;  %v6679_v54 = vld [vmem:[#allocation5 + $0x21] ss:$8 sm:$0xf] }
 0x1e9   :  { %1394 = vrot.lane.b32.xlu1 %v6279_v53, %s5888_s15  ;;  %v1615_v25 = vmul.f32 %v6217_v62, %v1599_v33  ;;  %v6703_v33 = vrot.slane %v6666_v10, %v6537_v11 }
 0x1ea   :  { %9972 = vst [vmem:[#allocation100_spill] sm:$0xff] %v6670_v27  ;;  %v1463_v19 = vadd.f32 %v1455_v23, %v1383_v47  ;;  %v1535_v12 = vmul.f32 %v6219_v63, %v1519_v6  ;;  %v6673_v1 = vpop.permute.xlu0 %2030  ;;  %v6675_v5 = vpop.permute.xlu1 %1632  ;;  %5713 = vset.pattern.permute.xlu1 %v9975_v48  ;;  %v6687_v23 = vmul.f32 %v6670_v27, %v1752_v8  ;;  %v6705_v8 = vld [vmem:[#allocation5 + $0x22] ss:$8 sm:$0xf] }
 0x1eb   :  { %9973 = vst [vmem:[#allocation101_spill] sm:$0xff] %v6673_v1  ;;  %9974 = vst [vmem:[#allocation102_spill] sm:$0xff] %v6675_v5  ;;  %v1648_v21 = vsel %vm1642_vm9, %v6507_v36, %v6675_v5  ;;  %v1960_v48 = vsel %vm9718_vm10, %v6440_v15, %v6495_v35  ;;  %v6718_v27 = vld [vmem:[#allocation5 + $0x23] ss:$8 sm:$0xf] }
 0x1ec   :  { %9976 = vst [vmem:[#allocation103_spill] sm:$0xff] %v6687_v23  ;;  %v1543_v47 = vadd.f32 %v1535_v12, %v1463_v19  ;;  %v6690_v6 = vmul.f32 %v6664_v38, %v1648_v21  ;;  %2684 = vrot.lane.b32.xlu0 %v6334_v34, %s5908_s28  ;;  %9978 = vst [vmem:[#allocation105_spill] sm:$0xff] %v6703_v33  ;;  %v6709_v21 = vrot.slane %v6679_v54, %v6537_v11 }
 0x1ed   :  { %1396 = vrot.lane.b32.xlu1 %v6334_v34, %s5888_s15  ;;  %v1799_v1 = vmul.f32 %v6243_v13, %v6687_v23  ;;  %s5928_s15 = smov 64  }
 0x1ee   :  { %9977 = vst [vmem:[#allocation104_spill] sm:$0xff] %v6690_v6  ;;  %9979 = vst [vmem:[#allocation106_spill] sm:$0xff] %v6709_v21  ;;  %v1623_v19 = vadd.f32 %v1615_v25, %v1543_v47  ;;  %v1695_v12 = vmul.f32 %v6245_v14, %v6690_v6  ;;  %v6713_v5 = vpop.permute.xlu0 %1236  ;;  %v6715_v35 = vpop.permute.xlu1 %1840  ;;  %v1991_v25 = vmul.f32 %v6709_v21, %v1960_v48 }
 0x1ef   :  { %9980 = vst [vmem:[#allocation107_spill] sm:$0xff] %v6713_v5  ;;  %9981 = vst [vmem:[#allocation108_spill] sm:$0xff] %v6715_v35  ;;  %v1856_v38 = vsel %vm1850_vm11, %v6516_v16, %v6715_v35  ;;  %v2120_v5 = vsel %vm9713_vm12, %v6447_v2, %v6502_v51  ;;  %v6739_v35 = vrot.slane %v6705_v8, %v6537_v11 }
 0x1f0   :  { %v1703_v47 = vadd.f32 %v1695_v12, %v1623_v19  ;;  %v6728_v6 = vmul.f32 %v6703_v33, %v1856_v38  ;;  %2839 = vperm.xlu0 %5723, %v6583_v17   ;;  %v6743_v48 = vrot.slane %v6718_v27, %v6537_v11  ;;  %v2007_v21 = vmul.f32 %v6263_v30, %v1991_v25 }
 0x1f1   :  { %1711 = vperm.xlu1 %5713, %v6583_v17   ;;  %9983 = vst [vmem:[#allocation110_spill] sm:$0xff] %v6739_v35 }
 0x1f2   :  { %9982 = vst [vmem:[#allocation109_spill] sm:$0xff] %v6728_v6  ;;  %9984 = vst [vmem:[#allocation111_spill] sm:$0xff] %v6743_v48  ;;  %v1807_v38 = vadd.f32 %v1799_v1, %v1703_v47  ;;  %v1903_v19 = vmul.f32 %v6265_v31, %v6728_v6  ;;  %v6747_v12 = vpop.permute.xlu0 %2316  ;;  %v6749_v23 = vpop.permute.xlu1 %2024  ;;  %v6757_v33 = vmul.f32 %v6743_v48, %v2120_v5  ;;  %v9581_v47 = vmov 28  }
 0x1f3   :  { %9985 = vst [vmem:[#allocation112_spill] sm:$0xff] %v6747_v12  ;;  %9986 = vst [vmem:[#allocation113_spill] sm:$0xff] %v6749_v23  ;;  %v2040_v51 = vsel %vm9710_vm13, %v6526_v7, %v6749_v23  ;;  %v9990_v5 = vmov 17  }
 0x1f4   :  { %9987 = vst [vmem:[#allocation114_spill] sm:$0xff] %v6757_v33  ;;  %v1911_v11 = vadd.f32 %v1903_v19, %v1807_v38  ;;  %v2071_v1 = vmul.f32 %v6739_v35, %v2040_v51  ;;  %5724 = vset.pattern.permute.xlu0 %v9581_v47  ;;  %v2167_v51 = vmul.f32 %v6285_v57, %v6757_v33  ;;  %v9585_v47 = vmov 30  }
 0x1f5   :  { %2179 = vperm.xlu0 %5724, %v6580_v55   ;;  %2466 = vrot.lane.b32.xlu1 %v6127_v28, %s5902_s26  ;;  %v9589_v33 = vmov 21  }
 0x1f6   :  { %v2015_v6 = vadd.f32 %v2007_v21, %v1911_v11  ;;  %v2087_v12 = vmul.f32 %v6287_v58, %v2071_v1  ;;  %v6765_v23 = vpop.permute.xlu0 %1240  ;;  %v6767_v25 = vpop.permute.xlu1 %2208  ;;  %5714 = vset.pattern.permute.xlu1 %v9990_v5  ;;  %v9580_v21 = vmov 20  }
 0x1f7   :  { %9988 = vst [vmem:[#allocation115_spill] sm:$0xff] %v6765_v23  ;;  %9989 = vst [vmem:[#allocation116_spill] sm:$0xff] %v6767_v25 }
 0x1f8   :  { %v2095_v38 = vadd.f32 %v2087_v12, %v2015_v6 }
 0x1f9   :  { %2780 = vrot.lane.b32.xlu0 %v6177_v45, %s5911_s30  ;;  %2470 = vrot.lane.b32.xlu1 %v6137_v32, %s5902_s26 }
 0x1fa   :  { %v6776_v11 = vpop.permute.xlu1 %1153  ;;  %5727 = vset.pattern.permute.xlu0 %v9580_v21  ;;  %v6779_v19 = vadd.f32 %v2167_v51, %v2095_v38  ;;  %v6781_v1 = vpop.permute.xlu0 %1400  ;;  %v9998_v38 = vmov 26  }
 0x1fb   :  { %9991 = vst [vmem:[#allocation117_spill] sm:$0xff] %v6776_v11  ;;  %9993 = vst [vmem:[#allocation119_spill] sm:$0xff] %v6781_v1 }
 0x1fc   :  { %9992 = vst [vmem:[#allocation118_spill] sm:$0xff] %v6779_v19 }
 0x1fd   :  { %2784 = vrot.lane.b32.xlu0 %v6237_v9, %s5911_s30  ;;  %2474 = vrot.lane.b32.xlu1 %v6279_v53, %s5902_s26 }
 0x1fe   :  { %v6787_v6 = vpop.permute.xlu1 %1234  ;;  %v6789_v12 = vpop.permute.xlu0 %1560 }
 0x1ff   :  { %9994 = vst [vmem:[#allocation120_spill] sm:$0xff] %v6787_v6  ;;  %9995 = vst [vmem:[#allocation121_spill] sm:$0xff] %v6789_v12 }
 0x201   :  { %2788 = vrot.lane.b32.xlu0 %v6334_v34, %s5911_s30  ;;  %2627 = vperm.xlu1 %5714, %v6580_v55  }
 0x202   :  { %v6794_v5 = vpop.permute.xlu1 %2314  ;;  %v6802_v21 = vpop.permute.xlu0 %1744 }
 0x203   :  { %9996 = vst [vmem:[#allocation122_spill] sm:$0xff] %v6794_v5  ;;  %9999 = vst [vmem:[#allocation124_spill] sm:$0xff] %v6802_v21  ;;  %v10004_v5 = vmov 18  }
 0x205   :  { %2919 = vperm.xlu0 %5727, %v6583_v17   ;;  %1474 = vrot.lane.b32.xlu1 %v6279_v53, %s5889_s16 }
 0x206   :  { %v6799_v51 = vpop.permute.xlu1 %1238  ;;  %5717 = vset.pattern.permute.xlu1 %v9998_v38  ;;  %v6810_v11 = vpop.permute.xlu0 %1952 }
 0x207   :  { %9997 = vst [vmem:[#allocation123_spill] sm:$0xff] %v6799_v51  ;;  %10001 = vst [vmem:[#allocation126_spill] sm:$0xff] %v6810_v11 }
 0x209   :  { %5728 = vset.pattern.permute.xlu0 %v9585_v47  ;;  %1476 = vrot.lane.b32.xlu1 %v6334_v34, %s5889_s16 }
 0x20a   :  { %2283 = vperm.xlu0 %5728, %v6580_v55   ;;  %v6808_v6 = vpop.permute.xlu1 %1398  ;;  %v6825_v48 = vpop.permute.xlu0 %2112 }
 0x20b   :  { %10000 = vst [vmem:[#allocation125_spill] sm:$0xff] %v6808_v6  ;;  %10005 = vst [vmem:[#allocation129_spill] sm:$0xff] %v6825_v48 }
 0x20d   :  { %1815 = vperm.xlu1 %5717, %v6583_v17  }
 0x20e   :  { %2860 = vrot.lane.b32.xlu0 %v6177_v45, %s5914_s6  ;;  %v6815_v38 = vpop.permute.xlu1 %1558 }
 0x20f   :  { %10002 = vst [vmem:[#allocation127_spill] sm:$0xff] %v6815_v38  ;;  %5731 = vset.pattern.permute.xlu0 %v9589_v33 }
 0x211   :  { %2570 = vrot.lane.b32.xlu1 %v6127_v28, %s5905_s27 }
 0x212   :  { %2864 = vrot.lane.b32.xlu0 %v6237_v9, %s5914_s6  ;;  %v6822_v47 = vpop.permute.xlu1 %1742  ;;  %5718 = vset.pattern.permute.xlu1 %v10004_v5 }
 0x213   :  { %10003 = vst [vmem:[#allocation128_spill] sm:$0xff] %v6822_v47  ;;  %v9596_v47 = vmov 31  }
 0x215   :  { %2574 = vrot.lane.b32.xlu1 %v6137_v32, %s5905_s27 }
 0x216   :  { %2868 = vrot.lane.b32.xlu0 %v6334_v34, %s5914_s6  ;;  %v6831_v35 = vpop.permute.xlu1 %1950 }
 0x217   :  { %10006 = vst [vmem:[#allocation130_spill] sm:$0xff] %v6831_v35  ;;  %v6833_v33 = vpop.permute.xlu0 %2447 }
 0x218   :  { %10007 = vst [vmem:[#allocation131_spill] sm:$0xff] %v6833_v33  ;;  %v6852_v33 = vsub.s32 0, %v6524_v41  ;;  %v1250_v41 = vsel %vm1242_vm2, %v6765_v23, %v6408_v37 }
 0x219   :  { %2578 = vrot.lane.b32.xlu1 %v6279_v53, %s5905_s27 }
 0x21a   :  { %2999 = vperm.xlu0 %5731, %v6583_v17   ;;  %v6838_v19 = vpop.permute.xlu1 %2110  ;;  %10012 = vst [vmem:[#allocation136_spill] sm:$0xff] %v6852_v33 }
 0x21b   :  { %10008 = vst [vmem:[#allocation132_spill] sm:$0xff] %v6838_v19  ;;  %v6840_v5 = vpop.permute.xlu0 %2386 }
 0x21c   :  { %10009 = vst [vmem:[#allocation133_spill] sm:$0xff] %v6840_v5  ;;  %v10014_v5 = vmov 27  }
 0x21d   :  { %2731 = vperm.xlu1 %5718, %v6580_v55  }
 0x21e   :  { %5732 = vset.pattern.permute.xlu0 %v9596_v47  ;;  %v6844_v25 = vpop.permute.xlu1 %1155 }
 0x21f   :  { %10010 = vst [vmem:[#allocation134_spill] sm:$0xff] %v6844_v25  ;;  %2547 = vperm.xlu0 %5732, %v6580_v55   ;;  %v6847_v35 = vpop.permute.xlu0 %2390  ;;  %v6863_v25 = vrot.slane %v6539_v24, %v6852_v33  ;;  %v6880_v24 = vrot.slane %v6570_v3, %v6852_v33 }
 0x220   :  { %10011 = vst [vmem:[#allocation135_spill] sm:$0xff] %v6847_v35  ;;  %v9602_v35 = vmov 22  }
 0x221   :  { %1554 = vrot.lane.b32.xlu1 %v6279_v53, %s5890_s17  ;;  %v1278_v23 = vmul.f32 %v6863_v25, %v1250_v41 }
 0x222   :  { %v6854_v19 = vpop.permute.xlu1 %2212  ;;  %5721 = vset.pattern.permute.xlu1 %v10014_v5  ;;  %v6874_v5 = vrot.slane %v6545_v59, %v6852_v33  ;;  %v1410_v59 = vsel %vm1402_vm4, %v6781_v1, %v6415_v0 }
 0x223   :  { %10013 = vst [vmem:[#allocation137_spill] sm:$0xff] %v6854_v19  ;;  %2940 = vrot.lane.b32.xlu0 %v6177_v45, %s5917_s2  ;;  %v6859_v47 = vpop.permute.xlu0 %2394  ;;  %v1125_v19 = vmul.f32 %v6171_v44, %v6177_v45  ;;  %v1438_v41 = vmul.f32 %v6880_v24, %v1410_v59  ;;  %v1570_v59 = vsel %vm1562_vm6, %v6789_v12, %v6424_v20 }
 0x224   :  { %10015 = vst [vmem:[#allocation138_spill] sm:$0xff] %v6859_v47  ;;  %5735 = vset.pattern.permute.xlu0 %v9602_v35 }
 0x225   :  { %1556 = vrot.lane.b32.xlu1 %v6334_v34, %s5890_s17 }
 0x226   :  { %v6876_v47 = vpop.permute.xlu1 %1159 }
 0x227   :  { %10016 = vst [vmem:[#allocation139_spill] sm:$0xff] %v6876_v47  ;;  %v1171_v35 = vsel %vm1163_vm3, %v6876_v47, %v6484_v29  ;;  %2944 = vrot.lane.b32.xlu0 %v6237_v9, %s5917_s2  ;;  %v6888_v37 = vpop.permute.xlu0 %2523  ;;  %v6901_v29 = vrot.slane %v6564_v4, %v6852_v33  ;;  %v6916_v4 = vrot.slane %v6608_v40, %v6852_v33 }
 0x228   :  { %10017 = vst [vmem:[#allocation140_spill] sm:$0xff] %v6888_v37  ;;  %v1198_v3 = vmul.f32 %v6874_v5, %v1171_v35  ;;  %v1294_v35 = vmul.f32 %v6169_v43, %v1278_v23  ;;  %v6938_v43 = vrot.slane %v6644_v56, %v6852_v33  ;;  %v6957_v56 = vrot.slane %v6632_v60, %v6852_v33 }
 0x229   :  { %1919 = vperm.xlu1 %5721, %v6583_v17   ;;  %v6973_v60 = vrot.slane %v6679_v54, %v6852_v33  ;;  %v1170_v54 = vsel %vm1163_vm3, %v6528_v22, %v6332_v26 }
 0x22a   :  { %v1214_v47 = vmul.f32 %v6163_v39, %v1198_v3  ;;  %v6904_v37 = vpop.permute.xlu1 %1320 }
 0x22b   :  { %10018 = vst [vmem:[#allocation141_spill] sm:$0xff] %v6904_v37  ;;  %v1330_v0 = vsel %vm1322_vm5, %v6904_v37, %v6492_v42  ;;  %2948 = vrot.lane.b32.xlu0 %v6334_v34, %s5917_s2  ;;  %v6929_v42 = vrot.slane %v6606_v46, %v6852_v33  ;;  %v1598_v46 = vmul.f32 %v6916_v4, %v1570_v59 }
 0x22c   :  { %v1222_v1 = vadd.f32 %v1214_v47, %v1125_v19  ;;  %v1358_v3 = vmul.f32 %v6901_v29, %v1330_v0  ;;  %v6919_v39 = vpop.permute.xlu0 %1134  ;;  %v10021_v19 = vmov 19   ;;  %v1454_v0 = vmul.f32 %v6192_v49, %v1438_v41  ;;  %v2332_v49 = vld [vmem:[#allocation5 + $0x26] ss:$8 sm:$0xf] }
 0x22d   :  { %10019 = vst [vmem:[#allocation142_spill] sm:$0xff] %v6919_v39  ;;  %2674 = vrot.lane.b32.xlu1 %v6127_v28, %s5908_s28 }
 0x22e   :  { %v1302_v23 = vadd.f32 %v1294_v35, %v1222_v1  ;;  %v1374_v40 = vmul.f32 %v6194_v50, %v1358_v3  ;;  %v6932_v47 = vpop.permute.xlu1 %1480  ;;  %5722 = vset.pattern.permute.xlu1 %v10021_v19  ;;  %v1754_v1 = vsel %vm1746_vm8, %v6802_v21, %v6432_v18  ;;  %v10053_v50 = vld [vmem:[#allocation116_spill] sm:$0xff] }
 0x22f   :  { %10020 = vst [vmem:[#allocation143_spill] sm:$0xff] %v6932_v47  ;;  %v1490_v20 = vsel %vm1482_vm7, %v6932_v47, %v6499_v61  ;;  %3079 = vperm.xlu0 %5735, %v6583_v17   ;;  %v6963_v12 = vmul.f32 %v6938_v43, %v1754_v1  ;;  %v6981_v1 = vrot.slane %v6666_v10, %v6852_v33  ;;  %v10051_v47 = vmov 20  }
 0x230   :  { %v1382_v35 = vadd.f32 %v1374_v40, %v1302_v23  ;;  %v1518_v41 = vmul.f32 %v6929_v42, %v1490_v20  ;;  %v9613_v23 = vmov 32   ;;  %v1614_v40 = vmul.f32 %v6217_v62, %v1598_v46 }
 0x231   :  { %v6951_v3 = vpop.permute.xlu0 %1707  ;;  %2678 = vrot.lane.b32.xlu1 %v6137_v32, %s5908_s28  ;;  %10024 = vst [vmem:[#allocation146_spill] sm:$0xff] %v6963_v12 }
 0x232   :  { %10022 = vst [vmem:[#allocation144_spill] sm:$0xff] %v6951_v3  ;;  %v1462_v61 = vadd.f32 %v1454_v0, %v1382_v35  ;;  %v1534_v59 = vmul.f32 %v6219_v63, %v1518_v41  ;;  %v6960_v19 = vpop.permute.xlu1 %1640  ;;  %v10048_v63 = vld [vmem:[#allocation22_spill] sm:$0xff] }
 0x233   :  { %10023 = vst [vmem:[#allocation145_spill] sm:$0xff] %v6960_v19  ;;  %v1650_v18 = vsel %vm1642_vm9, %v6960_v19, %v6507_v36  ;;  %5736 = vset.pattern.permute.xlu0 %v9613_v23  ;;  %v1962_v36 = vsel %vm9718_vm10, %v6810_v11, %v6440_v15  ;;  %v7003_v15 = vrot.slane %v6718_v27, %v6852_v33 }
 0x234   :  { %v1542_v0 = vadd.f32 %v1534_v59, %v1462_v61  ;;  %v6976_v20 = vmul.f32 %v6957_v56, %v1650_v18  ;;  %2651 = vperm.xlu0 %5736, %v6580_v55   ;;  %v1798_v61 = vmul.f32 %v6243_v13, %v6963_v12  ;;  %v1990_v18 = vmul.f32 %v6973_v60, %v1962_v36  ;;  %v10066_v12 = vld [vmem:[#allocation57_spill] sm:$0xff] }
 0x235   :  { %v6987_v46 = vpop.permute.xlu0 %2468  ;;  %2682 = vrot.lane.b32.xlu1 %v6279_v53, %s5908_s28  ;;  %v1194_v27 = vmul.f32 %v6874_v5, %v1170_v54 }
 0x236   :  { %10025 = vst [vmem:[#allocation147_spill] sm:$0xff] %v6976_v20  ;;  %10026 = vst [vmem:[#allocation148_spill] sm:$0xff] %v6987_v46  ;;  %v1622_v35 = vadd.f32 %v1614_v40, %v1542_v0  ;;  %v1694_v10 = vmul.f32 %v6245_v14, %v6976_v20  ;;  %v6997_v41 = vpop.permute.xlu1 %1848  ;;  %v10028_v40 = vld [vmem:[#allocation45_spill] sm:$0xff]  ;;  %v10040_v14 = vld [vmem:[#allocation48_spill] sm:$0xff] }
 0x237   :  { %10027 = vst [vmem:[#allocation149_spill] sm:$0xff] %v6997_v41  ;;  %v1858_v59 = vsel %vm1850_vm11, %v6997_v41, %v6516_v16  ;;  %v1249_v0 = vsel %vm1242_vm2, %v6799_v51, %v10028_v40  ;;  %v2122_v16 = vsel %vm9713_vm12, %v6825_v48, %v6447_v2  ;;  %v9617_v41 = vmov 23  }
 0x238   :  { %v1702_v23 = vadd.f32 %v1694_v10, %v1622_v35  ;;  %v7015_v11 = vmul.f32 %v6981_v1, %v1858_v59  ;;  %3020 = vrot.lane.b32.xlu0 %v6177_v45, %s5920_s7  ;;  %v7030_v35 = vrot.slane %v6705_v8, %v6852_v33  ;;  %v1274_v59 = vmul.f32 %v6863_v25, %v1249_v0  ;;  %v10034_v25 = vld [vmem:[#allocation46_spill] sm:$0xff] }
 0x239   :  { %v7024_v36 = vpop.permute.xlu0 %2472  ;;  %2835 = vperm.xlu1 %5722, %v6580_v55   ;;  %5739 = vset.pattern.permute.xlu0 %v9617_v41  ;;  %v2006_v48 = vmul.f32 %v6263_v30, %v1990_v18  ;;  %v7043_v41 = vmul.f32 %v7003_v15, %v2122_v16  ;;  %v1409_v19 = vsel %vm1402_vm4, %v6808_v6, %v10040_v14 }
 0x23a   :  { %10029 = vst [vmem:[#allocation45_spill] sm:$0xff] %v7015_v11  ;;  %v1806_v10 = vadd.f32 %v1798_v61, %v1702_v23  ;;  %v1902_v5 = vmul.f32 %v6265_v31, %v7015_v11  ;;  %v7034_v54 = vpop.permute.xlu1 %2032  ;;  %v10032_v61 = vld [vmem:[#allocation11_spill] sm:$0xff]  ;;  %v1434_v62 = vmul.f32 %v6880_v24, %v1409_v19  ;;  %v9641_v19 = vmov 33  }
 0x23b   :  { %10030 = vst [vmem:[#allocation150_spill] sm:$0xff] %v7034_v54  ;;  %v2042_v2 = vsel %vm9710_vm13, %v7034_v54, %v6526_v7  ;;  %10031 = vst [vmem:[#allocation151_spill] sm:$0xff] %v7043_v41  ;;  %v1210_v31 = vmul.f32 %v10032_v61, %v1194_v27  ;;  %v10035_v7 = vld [vmem:[#allocation86_spill] sm:$0xff]  ;;  %v2166_v21 = vmul.f32 %v6285_v57, %v7043_v41 }
 0x23c   :  { %v1910_v8 = vadd.f32 %v1902_v5, %v1806_v10  ;;  %v2070_v23 = vmul.f32 %v7030_v35, %v2042_v2  ;;  %3024 = vrot.lane.b32.xlu0 %v6237_v9, %s5920_s7  ;;  %v1329_v18 = vsel %vm1322_vm5, %v10035_v7, %v10034_v25  ;;  %v10037_v5 = vmov 28   ;;  %v10038_v2 = vld [vmem:[#allocation12_spill] sm:$0xff]  ;;  %v10039_v54 = vld [vmem:[#allocation18_spill] sm:$0xff]  ;;  %v10057_v7 = vld [vmem:[#allocation93_spill] sm:$0xff] }
 0x23d   :  { %v7049_v13 = vpop.permute.xlu0 %2476  ;;  %1634 = vrot.lane.b32.xlu1 %v6279_v53, %s5891_s18  ;;  %v1121_v27 = vmul.f32 %v10038_v2, %v6127_v28  ;;  %v1290_v30 = vmul.f32 %v10039_v54, %v1274_v59 }
 0x23e   :  { %10033 = vst [vmem:[#allocation152_spill] sm:$0xff] %v7049_v13  ;;  %v2014_v0 = vadd.f32 %v2006_v48, %v1910_v8  ;;  %v2086_v16 = vmul.f32 %v6287_v58, %v2070_v23  ;;  %v7058_v10 = vpop.permute.xlu1 %1314  ;;  %5725 = vset.pattern.permute.xlu1 %v10037_v5  ;;  %v1354_v23 = vmul.f32 %v6901_v29, %v1329_v18  ;;  %v10045_v29 = vld [vmem:[#allocation89_spill] sm:$0xff] }
 0x23f   :  { %10036 = vst [vmem:[#allocation46_spill] sm:$0xff] %v7058_v10  ;;  %v1218_v8 = vadd.f32 %v1210_v31, %v1121_v27  ;;  %v10044_v31 = vld [vmem:[#allocation51_spill] sm:$0xff] }
 0x240   :  { %v2094_v48 = vadd.f32 %v2086_v16, %v2014_v0  ;;  %3028 = vrot.lane.b32.xlu0 %v6334_v34, %s5920_s7  ;;  %v10043_v0 = vld [vmem:[#allocation17_spill] sm:$0xff]  ;;  %v1489_v18 = vsel %vm1482_vm7, %v10045_v29, %v10044_v31  ;;  %v10056_v10 = vld [vmem:[#allocation55_spill] sm:$0xff] }
 0x241   :  { %1636 = vrot.lane.b32.xlu1 %v6334_v34, %s5891_s18  ;;  %v7075_v5 = vpop.permute.xlu0 %2631  ;;  %v1298_v58 = vadd.f32 %v1290_v30, %v1218_v8  ;;  %v1370_v16 = vmul.f32 %v10043_v0, %v1354_v23  ;;  %v1450_v30 = vmul.f32 %v10048_v63, %v1434_v62  ;;  %v10049_v8 = vld [vmem:[#allocation53_spill] sm:$0xff]  ;;  %v1514_v23 = vmul.f32 %v6929_v42, %v1489_v18  ;;  %v10054_v18 = vld [vmem:[#allocation84_spill] sm:$0xff] }
 0x242   :  { %10041 = vst [vmem:[#allocation48_spill] sm:$0xff] %v7075_v5  ;;  %v7077_v59 = vadd.f32 %v2166_v21, %v2094_v48  ;;  %v7079_v57 = vpop.permute.xlu1 %1316  ;;  %v1569_v24 = vsel %vm1562_vm6, %v6815_v38, %v10049_v8  ;;  %v1649_v44 = vsel %vm1642_vm9, %v10057_v7, %v10056_v10  ;;  %v10062_v7 = vld [vmem:[#allocation70_spill] sm:$0xff]  ;;  %v7148_v51 = vrot.slane %v2332_v49, %v10054_v18  ;;  %v10078_v5 = vld [vmem:[#allocation31_spill] sm:$0xff] }
 0x243   :  { %10042 = vst [vmem:[#allocation153_spill] sm:$0xff] %v7079_v57  ;;  %v1378_v48 = vadd.f32 %v1370_v16, %v1298_v58  ;;  %v2228_v58 = vld [vmem:[#allocation5 + $0x25] ss:$8 sm:$0xf]  ;;  %v1594_v29 = vmul.f32 %v6916_v4, %v1569_v24  ;;  %v7152_v41 = vmul.f32 %v6957_v56, %v1649_v44 }
 0x244   :  { %3159 = vperm.xlu0 %5739, %v6583_v17   ;;  %v7113_v6 = vrot.slane %v2228_v58, %v10054_v18  ;;  %v10055_v57 = vld [vmem:[#allocation21_spill] sm:$0xff] }
 0x245   :  { %2183 = vperm.xlu1 %5725, %v6583_v17   ;;  %v1458_v38 = vadd.f32 %v1450_v30, %v1378_v48  ;;  %v1530_v37 = vmul.f32 %v10055_v57, %v1514_v23  ;;  %v7129_v48 = vrot.slane %v2228_v58, %v6852_v33  ;;  %v7133_v30 = vrot.slane %v2332_v49, %v6852_v33 }
 0x246   :  { %v7089_v27 = vpop.permute.xlu0 %1811  ;;  %v7091_v21 = vpop.permute.xlu1 %2388  ;;  %10064 = vst [vmem:[#allocation55_spill] sm:$0xff] %v7152_v41 }
 0x247   :  { %10046 = vst [vmem:[#allocation51_spill] sm:$0xff] %v7089_v27  ;;  %10047 = vst [vmem:[#allocation154_spill] sm:$0xff] %v7091_v21  ;;  %v1538_v22 = vadd.f32 %v1530_v37, %v1458_v38  ;;  %v10063_v27 = vld [vmem:[#allocation26_spill] sm:$0xff] }
 0x248   :  { %5740 = vset.pattern.permute.xlu0 %v9641_v19  ;;  %v10052_v19 = vld [vmem:[#allocation137_spill] sm:$0xff]  ;;  %v1610_v3 = vmul.f32 %v10063_v27, %v1594_v29  ;;  %v10069_v29 = vld [vmem:[#allocation42_spill] sm:$0xff] }
 0x249   :  { %2755 = vperm.xlu0 %5740, %v6580_v55   ;;  %2778 = vrot.lane.b32.xlu1 %v6127_v28, %s5911_s30  ;;  %v2222_v42 = vsel %vm2218_vm14, %v10053_v50, %v10052_v19  ;;  %v10061_v19 = vld [vmem:[#allocation80_spill] sm:$0xff] }
 0x24a   :  { %v7104_v16 = vpop.permute.xlu0 %2572  ;;  %v2393_v62 = vpop.permute.xlu1 %2392  ;;  %5726 = vset.pattern.permute.xlu1 %v10051_v47  ;;  %v10058_v47 = vld [vmem:[#allocation85_spill] sm:$0xff]  ;;  %v7136_v24 = vmul.f32 %v7113_v6, %v2222_v42  ;;  %v2328_v58 = vsel %vm9701_vm15, %v10062_v7, %v10061_v19  ;;  %v10068_v7 = vld [vmem:[#allocation112_spill] sm:$0xff] }
 0x24b   :  { %10050 = vst [vmem:[#allocation53_spill] sm:$0xff] %v7104_v16  ;;  %v2224_v4 = vsel %vm2218_vm14, %v10058_v47, %v10053_v50  ;;  %v9657_v47 = vmov 24   ;;  %v2412_v42 = vld [vmem:[#allocation5 + $0x27] ss:$8 sm:$0xf]  ;;  %v2326_v49 = vsel %vm9701_vm15, %v10061_v19, %v10068_v7  ;;  %v2408_v44 = vsel %vm2402_vm0, %v7091_v21, %v2393_v62 }
 0x24c   :  { %10059 = vst [vmem:[#allocation116_spill] sm:$0xff] %v7136_v24  ;;  %v7155_v11 = vmul.f32 %v7129_v48, %v2224_v4  ;;  %v2358_v37 = vmul.f32 %v7133_v30, %v2328_v58  ;;  %v7178_v56 = vrot.slane %v2412_v42, %v6852_v33  ;;  %v2271_v19 = vmul.f32 %v10069_v29, %v7136_v24  ;;  %v2492_v21 = vld [vmem:[#allocation5 + $0x40] ss:$8 sm:$0xf] }
 0x24d   :  { %3100 = vrot.lane.b32.xlu0 %v6177_v45, %s5923_s4  ;;  %2782 = vrot.lane.b32.xlu1 %v6137_v32, %s5911_s30  ;;  %v7183_v4 = vrot.slane %v2412_v42, %v10054_v18  ;;  %v2359_v58 = vmul.f32 %v7148_v51, %v2326_v49  ;;  %v10072_v42 = vld [vmem:[#allocation25_spill] sm:$0xff]  ;;  %v7199_v20 = vrot.slane %v2492_v21, %v6852_v33 }
 0x24e   :  { %v7138_v23 = vpop.permute.xlu0 %2576  ;;  %v7140_v50 = vpop.permute.xlu1 %2396  ;;  %5743 = vset.pattern.permute.xlu0 %v9657_v47  ;;  %10065 = vst [vmem:[#allocation80_spill] sm:$0xff] %v7155_v11  ;;  %v10067_v47 = vld [vmem:[#allocation128_spill] sm:$0xff]  ;;  %v1690_v45 = vmul.f32 %v10072_v42, %v7152_v41  ;;  %v10075_v49 = vld [vmem:[#allocation97_spill] sm:$0xff] }
 0x24f   :  { %10060 = vst [vmem:[#allocation84_spill] sm:$0xff] %v7140_v50  ;;  %v1753_v39 = vsel %vm1746_vm8, %v10067_v47, %v10066_v12  ;;  %v2406_v38 = vsel %vm2402_vm0, %v2393_v62, %v7140_v50  ;;  %v1618_v62 = vadd.f32 %v1610_v3, %v1538_v22  ;;  %v2270_v47 = vmul.f32 %v10069_v29, %v7155_v11  ;;  %v10074_v3 = vld [vmem:[#allocation59_spill] sm:$0xff] }
 0x250   :  { %v7188_v50 = vmul.f32 %v6938_v43, %v1753_v39  ;;  %v2439_v24 = vmul.f32 %v7183_v4, %v2406_v38  ;;  %v7202_v39 = vrot.slane %v2492_v21, %v10054_v18  ;;  %v10073_v43 = vld [vmem:[#allocation41_spill] sm:$0xff]  ;;  %v10076_v38 = vld [vmem:[#allocation118_spill] sm:$0xff] }
 0x251   :  { %3104 = vrot.lane.b32.xlu0 %v6237_v9, %s5923_s4  ;;  %2786 = vrot.lane.b32.xlu1 %v6279_v53, %s5911_s30  ;;  %v2438_v9 = vmul.f32 %v7178_v56, %v2408_v44  ;;  %v2374_v22 = vmul.f32 %v10073_v43, %v2358_v37  ;;  %v1857_v44 = vsel %vm1850_vm11, %v10075_v49, %v10074_v3 }
 0x252   :  { %v7185_v7 = vpop.permute.xlu0 %2580  ;;  %10071 = vst [vmem:[#allocation155_spill] sm:$0xff] %v7188_v50  ;;  %v2279_v29 = vadd.f32 %v2271_v19, %v10076_v38  ;;  %v2278_v11 = vadd.f32 %v2270_v47, %v7077_v59  ;;  %v1698_v21 = vadd.f32 %v1690_v45, %v1618_v62  ;;  %v2488_v37 = vsel %vm9724_vm1, %v6987_v46, %v7024_v36  ;;  %v10079_v38 = vld [vmem:[#allocation61_spill] sm:$0xff]  ;;  %v10080_v59 = vld [vmem:[#allocation130_spill] sm:$0xff]  ;;  %v10081_v47 = vld [vmem:[#allocation131_spill] sm:$0xff] }
 0x253   :  { %10070 = vst [vmem:[#allocation57_spill] sm:$0xff] %v7185_v7  ;;  %v1794_v7 = vmul.f32 %v10078_v5, %v7188_v50  ;;  %v2486_v49 = vsel %vm9724_vm1, %v7024_v36, %v7049_v13  ;;  %v2375_v19 = vmul.f32 %v10073_v43, %v2359_v58  ;;  %v1961_v45 = vsel %vm9718_vm10, %v10080_v59, %v10079_v38  ;;  %v10086_v43 = vld [vmem:[#allocation66_spill] sm:$0xff] }
 0x254   :  { %v2454_v62 = vmul.f32 %v10081_v47, %v2438_v9  ;;  %v2455_v50 = vmul.f32 %v10081_v47, %v2439_v24  ;;  %v7238_v16 = vmul.f32 %v6981_v1, %v1857_v44  ;;  %v7244_v36 = vmul.f32 %v7199_v20, %v2488_v37 }
 0x255   :  { %3108 = vrot.lane.b32.xlu0 %v6334_v34, %s5923_s4  ;;  %2915 = vperm.xlu1 %5726, %v6580_v55   ;;  %v7247_v9 = vmul.f32 %v7202_v39, %v2486_v49  ;;  %v2382_v24 = vadd.f32 %v2374_v22, %v2278_v11  ;;  %v2383_v58 = vadd.f32 %v2375_v19, %v2279_v29  ;;  %v10085_v47 = vmov 30   ;;  %v10089_v22 = vld [vmem:[#allocation88_spill] sm:$0xff]  ;;  %v10091_v19 = vld [vmem:[#allocation87_spill] sm:$0xff] }
 0x256   :  { %v7214_v41 = vpop.permute.xlu0 %2735  ;;  %10083 = vst [vmem:[#allocation118_spill] sm:$0xff] %v7244_v36  ;;  %v1802_v1 = vadd.f32 %v1794_v7, %v1698_v21  ;;  %v1986_v44 = vmul.f32 %v6973_v60, %v1961_v45  ;;  %v10090_v60 = vld [vmem:[#allocation30_spill] sm:$0xff]  ;;  %v9682_v21 = vmov 34  }
 0x257   :  { %10077 = vst [vmem:[#allocation59_spill] sm:$0xff] %v7214_v41  ;;  %v10082_v41 = vld [vmem:[#allocation49_spill] sm:$0xff]  ;;  %10084 = vst [vmem:[#allocation61_spill] sm:$0xff] %v7247_v9  ;;  %v2462_v37 = vadd.f32 %v2454_v62, %v2382_v24 }
 0x258   :  { %v1168_v46 = vsel %vm1163_vm3, %v6332_v26, %v10082_v41  ;;  %v1247_v26 = vsel %vm1242_vm2, %v10028_v40, %v10086_v43  ;;  %v2463_v41 = vadd.f32 %v2455_v50, %v2383_v58  ;;  %v1898_v40 = vmul.f32 %v10090_v60, %v7238_v16  ;;  %v10105_v43 = vld [vmem:[#allocation47_spill] sm:$0xff] }
 0x259   :  { %3239 = vperm.xlu0 %5743, %v6583_v17   ;;  %1738 = vrot.lane.b32.xlu1 %v6279_v53, %s5892_s19  ;;  %v1195_v49 = vmul.f32 %v10089_v22, %v1168_v46  ;;  %v1275_v45 = vmul.f32 %v10091_v19, %v1247_v26  ;;  %v10092_v46 = vld [vmem:[#allocation63_spill] sm:$0xff]  ;;  %v10098_v26 = vld [vmem:[#allocation52_spill] sm:$0xff] }
 0x25a   :  { %5729 = vset.pattern.permute.xlu1 %v10085_v47  ;;  %v10093_v47 = vld [vmem:[#allocation101_spill] sm:$0xff]  ;;  %v1906_v58 = vadd.f32 %v1898_v40, %v1802_v1  ;;  %v10095_v22 = vld [vmem:[#allocation35_spill] sm:$0xff]  ;;  %v1327_v19 = vsel %vm1322_vm5, %v10034_v25, %v10098_v26 }
 0x25b   :  { %v7255_v13 = vpop.permute.xlu0 %1915  ;;  %v7257_v59 = vpop.permute.xlu1 %2527  ;;  %v2041_v62 = vsel %vm9710_vm13, %v10093_v47, %v10092_v46 }
 0x25c   :  { %10087 = vst [vmem:[#allocation156_spill] sm:$0xff] %v7255_v13  ;;  %10088 = vst [vmem:[#allocation157_spill] sm:$0xff] %v7257_v59  ;;  %v2534_v11 = vmul.f32 %v7257_v59, %v7244_v36  ;;  %v2535_v29 = vmul.f32 %v7257_v59, %v7247_v9  ;;  %v2002_v59 = vmul.f32 %v10095_v22, %v1986_v44  ;;  %v9694_v13 = vmov 35  }
 0x25d   :  { %3178 = vrot.lane.b32.xlu0 %v6127_v28, %s5925_s8  ;;  %1740 = vrot.lane.b32.xlu1 %v6334_v34, %s5892_s19  ;;  %v2066_v1 = vmul.f32 %v7030_v35, %v2041_v62  ;;  %v1122_v44 = vmul.f32 %v10038_v2, %v6137_v32  ;;  %v10102_v62 = vld [vmem:[#allocation91_spill] sm:$0xff]  ;;  %v10112_v2 = vld [vmem:[#allocation54_spill] sm:$0xff] }
 0x25e   :  { %v7270_v7 = vadd.f32 %v2534_v11, %v2462_v37  ;;  %v7272_v50 = vadd.f32 %v2535_v29, %v2463_v41  ;;  %5744 = vset.pattern.permute.xlu0 %v9682_v21  ;;  %v1211_v41 = vmul.f32 %v10032_v61, %v1195_v49  ;;  %v10096_v37 = vld [vmem:[#allocation64_spill] sm:$0xff]  ;;  %v1291_v49 = vmul.f32 %v10039_v54, %v1275_v45  ;;  %v10099_v21 = vld [vmem:[#allocation67_spill] sm:$0xff]  ;;  %v10103_v45 = vld [vmem:[#allocation34_spill] sm:$0xff] }
 0x25f   :  { %v7280_v24 = vpop.permute.xlu0 %2676  ;;  %v10097_v11 = vld [vmem:[#allocation132_spill] sm:$0xff]  ;;  %v1407_v47 = vsel %vm1402_vm4, %v10040_v14, %v10099_v21  ;;  %v1355_v26 = vmul.f32 %v10102_v62, %v1327_v19  ;;  %v2082_v54 = vmul.f32 %v10103_v45, %v2066_v1  ;;  %v10104_v61 = vld [vmem:[#allocation62_spill] sm:$0xff] }
 0x260   :  { %10094 = vst [vmem:[#allocation88_spill] sm:$0xff] %v7280_v24  ;;  %v7283_v9 = vpop.permute.xlu1 %1130  ;;  %v2121_v29 = vsel %vm9713_vm12, %v10097_v11, %v10096_v37  ;;  %v2010_v11 = vadd.f32 %v2002_v59, %v1906_v58  ;;  %v1219_v35 = vadd.f32 %v1211_v41, %v1122_v44  ;;  %v2223_v14 = vsel %vm2218_vm14, %v10105_v43, %v10104_v61  ;;  %v10106_v59 = vld [vmem:[#allocation92_spill] sm:$0xff] }
 0x261   :  { %3182 = vrot.lane.b32.xlu0 %v6137_v32, %s5925_s8  ;;  %2287 = vperm.xlu1 %5729, %v6583_v17   ;;  %v7308_v36 = vmul.f32 %v7003_v15, %v2121_v29  ;;  %v1435_v58 = vmul.f32 %v10106_v59, %v1407_v47  ;;  %v10108_v41 = vmov 21   ;;  %v10109_v44 = vld [vmem:[#allocation40_spill] sm:$0xff]  ;;  %v1371_v21 = vmul.f32 %v10043_v0, %v1355_v26  ;;  %v10115_v59 = vld [vmem:[#allocation65_spill] sm:$0xff] }
 0x262   :  { %v1299_v15 = vadd.f32 %v1291_v49, %v1219_v35  ;;  %v2090_v19 = vadd.f32 %v2082_v54, %v2010_v11  ;;  %v1487_v47 = vsel %vm1482_vm7, %v10044_v31, %v10112_v2  ;;  %v7338_v49 = vmul.f32 %v7129_v48, %v2223_v14  ;;  %v10114_v35 = vld [vmem:[#allocation75_spill] sm:$0xff]  ;;  %v10117_v43 = vld [vmem:[#allocation68_spill] sm:$0xff] }
 0x263   :  { %v7301_v40 = vpop.permute.xlu0 %2680  ;;  %10100 = vst [vmem:[#allocation87_spill] sm:$0xff] %v7308_v36  ;;  %v2162_v62 = vmul.f32 %v10109_v44, %v7308_v36  ;;  %v1451_v11 = vmul.f32 %v10048_v63, %v1435_v58  ;;  %v2327_v26 = vsel %vm9701_vm15, %v10115_v59, %v10114_v35  ;;  %v1567_v31 = vsel %vm1562_vm6, %v10049_v8, %v10117_v43  ;;  %v10118_v2 = vld [vmem:[#allocation95_spill] sm:$0xff] }
 0x264   :  { %v7310_v25 = vpop.permute.xlu1 %1394  ;;  %10113 = vst [vmem:[#allocation62_spill] sm:$0xff] %v7338_v49  ;;  %v1379_v54 = vadd.f32 %v1371_v21, %v1299_v15  ;;  %v10119_v21 = vld [vmem:[#allocation135_spill] sm:$0xff]  ;;  %v10120_v15 = vld [vmem:[#allocation133_spill] sm:$0xff]  ;;  %v2354_v0 = vmul.f32 %v7133_v30, %v2327_v26 }
 0x265   :  { %10101 = vst [vmem:[#allocation63_spill] sm:$0xff] %v7310_v25  ;;  %3186 = vrot.lane.b32.xlu0 %v6279_v53, %s5925_s8  ;;  %2858 = vrot.lane.b32.xlu1 %v6127_v28, %s5914_s6  ;;  %v10111_v25 = vld [vmem:[#allocation38_spill] sm:$0xff]  ;;  %v2170_v48 = vadd.f32 %v2162_v62, %v2090_v19  ;;  %v2407_v58 = vsel %vm2402_vm0, %v10120_v15, %v10119_v21  ;;  %v10121_v59 = vld [vmem:[#allocation39_spill] sm:$0xff]  ;;  %v10122_v19 = vld [vmem:[#allocation96_spill] sm:$0xff] }
 0x266   :  { %5730 = vset.pattern.permute.xlu1 %v10108_v41  ;;  %v2266_v63 = vmul.f32 %v10121_v59, %v7338_v49  ;;  %v1459_v8 = vadd.f32 %v1451_v11, %v1379_v54  ;;  %v1595_v62 = vmul.f32 %v10122_v19, %v1567_v31  ;;  %v10125_v49 = vld [vmem:[#allocation56_spill] sm:$0xff]  ;;  %v10127_v26 = vld [vmem:[#allocation69_spill] sm:$0xff] }
 0x267   :  { %v7323_v29 = vpop.permute.xlu0 %2684  ;;  %v1647_v30 = vsel %vm1642_vm9, %v10056_v10, %v10125_v49  ;;  %v10126_v54 = vld [vmem:[#allocation44_spill] sm:$0xff] }
 0x268   :  { %10107 = vst [vmem:[#allocation64_spill] sm:$0xff] %v7323_v29  ;;  %v7328_v1 = vpop.permute.xlu1 %1396  ;;  %v2274_v43 = vadd.f32 %v2266_v63, %v2170_v48  ;;  %v2370_v11 = vmul.f32 %v10126_v54, %v2354_v0  ;;  %v10128_v48 = vld [vmem:[#allocation43_spill] sm:$0xff] }
 0x269   :  { %10110 = vst [vmem:[#allocation91_spill] sm:$0xff] %v7328_v1  ;;  %2214 = vrot.lane.b32.xlu0 %v10111_v25, %s5887_s14  ;;  %2862 = vrot.lane.b32.xlu1 %v6137_v32, %s5914_s6  ;;  %v1515_v1 = vmul.f32 %v10118_v2, %v1487_v47  ;;  %v2434_v2 = vmul.f32 %v7178_v56, %v2407_v58 }
 0x26a   :  { %v1611_v56 = vmul.f32 %v10063_v27, %v1595_v62  ;;  %v2378_v31 = vadd.f32 %v2370_v11, %v2274_v43  ;;  %v10131_v43 = vld [vmem:[#allocation100_spill] sm:$0xff]  ;;  %v10132_v62 = vmov 31  }
 0x26b   :  { %v7347_v41 = vpop.permute.xlu0 %2839  ;;  %v1531_v15 = vmul.f32 %v10055_v57, %v1515_v1  ;;  %v1751_v1 = vsel %vm1746_vm8, %v10066_v12, %v10127_v26  ;;  %v2450_v58 = vmul.f32 %v10128_v48, %v2434_v2  ;;  %v10133_v2 = vld [vmem:[#allocation140_spill] sm:$0xff] }
 0x26c   :  { %10116 = vst [vmem:[#allocation92_spill] sm:$0xff] %v7347_v41  ;;  %v7353_v14 = vpop.permute.xlu1 %1711 }
 0x26d   :  { %3259 = vperm.xlu0 %5744, %v6580_v55   ;;  %2866 = vrot.lane.b32.xlu1 %v6279_v53, %s5914_s6  ;;  %v1539_v63 = vadd.f32 %v1531_v15, %v1459_v8  ;;  %v7403_v8 = vmul.f32 %v10131_v43, %v1751_v1 }
 0x26f   :  { %v1619_v12 = vadd.f32 %v1611_v56, %v1539_v63 }
 0x270   :  { %v7368_v47 = vpop.permute.xlu0 %2179  ;;  %v7370_v36 = vpop.permute.xlu1 %2466 }
 0x271   :  { %10123 = vst [vmem:[#allocation75_spill] sm:$0xff] %v7368_v47  ;;  %10124 = vst [vmem:[#allocation95_spill] sm:$0xff] %v7370_v36  ;;  %5747 = vset.pattern.permute.xlu0 %v9694_v13  ;;  %2995 = vperm.xlu1 %5730, %v6580_v55   ;;  %v10130_v13 = vld [vmem:[#allocation99_spill] sm:$0xff] }
 0x272   :  { %3287 = vperm.xlu0 %5747, %v6583_v17   ;;  %v7390_v0 = vmul.f32 %v10130_v13, %v1647_v30  ;;  %v2458_v13 = vadd.f32 %v2450_v58, %v2378_v31  ;;  %v1795_v31 = vmul.f32 %v10078_v5, %v7403_v8  ;;  %v10136_v58 = vld [vmem:[#allocation71_spill] sm:$0xff] }
 0x273   :  { %v1959_v43 = vsel %vm9718_vm10, %v10079_v38, %v10136_v58  ;;  %v10143_v58 = vld [vmem:[#allocation60_spill] sm:$0xff]  ;;  %vm2874_vm10 = vcmp.lt.s32.totalorder %v6534_v52, 98 }
 0x274   :  { %v7387_v19 = vpop.permute.xlu0 %2780  ;;  %v2471_v10 = vpop.permute.xlu1 %2470 }
 0x275   :  { %10129 = vst [vmem:[#allocation135_spill] sm:$0xff] %v7387_v19  ;;  %v2487_v55 = vsel %vm9724_vm1, %v7370_v36, %v2471_v10  ;;  %1842 = vrot.lane.b32.xlu1 %v6279_v53, %s5893_s20  ;;  %v10135_v36 = vld [vmem:[#allocation58_spill] sm:$0xff] }
 0x276   :  { %v7396_v15 = vmul.f32 %v7199_v20, %v2487_v55  ;;  %2398 = vrot.lane.b32.xlu0 %v10111_v25, %s5899_s25  ;;  %5733 = vset.pattern.permute.xlu1 %v10132_v62  ;;  %v1691_v55 = vmul.f32 %v10072_v42, %v7390_v0  ;;  %v1855_v63 = vsel %vm1850_vm11, %v10074_v3, %v10135_v36 }
 0x278   :  { %v2530_v30 = vmul.f32 %v10133_v2, %v7396_v15  ;;  %v7408_v11 = vpop.permute.xlu0 %2784  ;;  %v7410_v20 = vpop.permute.xlu1 %2474  ;;  %v1699_v1 = vadd.f32 %v1691_v55, %v1619_v12  ;;  %v10140_v55 = vld [vmem:[#allocation106_spill] sm:$0xff] }
 0x279   :  { %10134 = vst [vmem:[#allocation96_spill] sm:$0xff] %v7410_v20  ;;  %1844 = vrot.lane.b32.xlu1 %v6334_v34, %s5893_s20  ;;  %v1987_v36 = vmul.f32 %v10140_v55, %v1959_v43  ;;  %v10145_v43 = vld [vmem:[#allocation73_spill] sm:$0xff] }
 0x27a   :  { %v7418_v56 = vadd.f32 %v2530_v30, %v2458_v13  ;;  %2478 = vrot.lane.b32.xlu0 %v10111_v25, %s5902_s26  ;;  %v10139_v13 = vld [vmem:[#allocation105_spill] sm:$0xff]  ;;  %v1803_v12 = vadd.f32 %v1795_v31, %v1699_v1  ;;  %v10144_v31 = vmov 22  }
 0x27b   :  { %v7435_v30 = vmul.f32 %v10139_v13, %v1855_v63  ;;  %v2039_v63 = vsel %vm9710_vm13, %v10092_v46, %v10143_v58  ;;  %v2003_v1 = vmul.f32 %v10095_v22, %v1987_v36  ;;  %v2119_v13 = vsel %vm9713_vm12, %v10096_v37, %v10145_v43  ;;  %v10150_v36 = vld [vmem:[#allocation81_spill] sm:$0xff]  ;;  %v10154_v22 = vld [vmem:[#allocation138_spill] sm:$0xff] }
 0x27c   :  { %v7430_v62 = vpop.permute.xlu0 %2788  ;;  %v7432_v3 = vpop.permute.xlu1 %2627  ;;  %vm9746_vm13 = vcmp.lt.s32.totalorder %v6534_v52, 111  ;;  %vm2794_vm12 = vcmp.lt.s32.totalorder %v6534_v52, 110 }
 0x27d   :  { %10137 = vst [vmem:[#allocation99_spill] sm:$0xff] %v7430_v62  ;;  %10138 = vst [vmem:[#allocation100_spill] sm:$0xff] %v7432_v3  ;;  %2551 = vperm.xlu1 %5733, %v6583_v17   ;;  %v1899_v38 = vmul.f32 %v10090_v60, %v7435_v30  ;;  %v10147_v60 = vld [vmem:[#allocation110_spill] sm:$0xff]  ;;  %v2696_v27 = vsel %vm9746_vm13, %v7280_v24, %v7301_v40 }
 0x27e   :  { %2582 = vrot.lane.b32.xlu0 %v10111_v25, %s5905_s27  ;;  %v2067_v46 = vmul.f32 %v10147_v60, %v2039_v63  ;;  %v10152_v63 = vld [vmem:[#allocation122_spill] sm:$0xff] }
 0x27f   :  { %v1907_v17 = vadd.f32 %v1899_v38, %v1803_v12  ;;  %v10149_v12 = vld [vmem:[#allocation111_spill] sm:$0xff] }
 0x280   :  { %v7441_v5 = vpop.permute.xlu1 %1474  ;;  %v7443_v26 = vpop.permute.xlu0 %2919  ;;  %v7469_v38 = vmul.f32 %v10149_v12, %v2119_v13  ;;  %v2083_v60 = vmul.f32 %v10103_v45, %v2067_v46  ;;  %v2405_v46 = vsel %vm2402_vm0, %v10119_v21, %v10154_v22  ;;  %v7604_v22 = vld [vmem:[#allocation5 + $0x44] ss:$8 sm:$0xf]  ;;  %v7630_v24 = vld [vmem:[#allocation5 + $0x45] ss:$8 sm:$0xf] }
 0x281   :  { %10141 = vst [vmem:[#allocation105_spill] sm:$0xff] %v7441_v5  ;;  %10142 = vst [vmem:[#allocation106_spill] sm:$0xff] %v7443_v26  ;;  %2938 = vrot.lane.b32.xlu1 %v6127_v28, %s5917_s2  ;;  %v2011_v42 = vadd.f32 %v2003_v1, %v1907_v17  ;;  %v2325_v17 = vsel %vm9701_vm15, %v10114_v35, %v10152_v63  ;;  %v2435_v21 = vmul.f32 %v7183_v4, %v2405_v46 }
 0x282   :  { %2686 = vrot.lane.b32.xlu0 %v10111_v25, %s5908_s28  ;;  %5734 = vset.pattern.permute.xlu1 %v10144_v31  ;;  %v2221_v31 = vsel %vm2218_vm14, %v10104_v61, %v10150_v36  ;;  %v2163_v12 = vmul.f32 %v10109_v44, %v7469_v38  ;;  %v2355_v35 = vmul.f32 %v7148_v51, %v2325_v17  ;;  %v7512_v44 = vld [vmem:[#allocation2] sm:$0xff]  ;;  %vm9766_vm15 = vcmp.lt.s32.totalorder %v6534_v52, 112 }
 0x283   :  { %v7487_v13 = vmul.f32 %v7113_v6, %v2221_v31  ;;  %v2091_v61 = vadd.f32 %v2083_v60, %v2011_v42  ;;  %v7502_v6 = vld [vmem:[#allocation5 + $0x41] ss:$8 sm:$0xf]  ;;  %v2485_v42 = vsel %vm9724_vm1, %v2471_v10, %v7410_v20  ;;  %10175 = vst [vmem:[#allocation178_spill] sm:$0xff] %v7604_v22  ;;  %v7628_v57 = vrot.slane %v7604_v22, %v6852_v33 }
 0x284   :  { %v7461_v55 = vpop.permute.xlu1 %1476  ;;  %10156 = vst [vmem:[#allocation161_spill] sm:$0xff] %v7502_v6  ;;  %v2371_v17 = vmul.f32 %v10126_v54, %v2355_v35  ;;  %v2601_v10 = vrot.slane %v7502_v6, %v6852_v33  ;;  %v7522_v45 = vmul.f32 %v7202_v39, %v2485_v42  ;;  %v10160_v39 = vmov 32   ;;  %v10176_v36 = vld [vmem:[#allocation53_spill] sm:$0xff] }
 0x285   :  { %10146 = vst [vmem:[#allocation158_spill] sm:$0xff] %v7461_v55  ;;  %v7464_v58 = vpop.permute.xlu0 %2283  ;;  %2942 = vrot.lane.b32.xlu1 %v6137_v32, %s5917_s2  ;;  %v2267_v60 = vmul.f32 %v10121_v59, %v7487_v13  ;;  %v2171_v51 = vadd.f32 %v2163_v12, %v2091_v61  ;;  %v2451_v12 = vmul.f32 %v10128_v48, %v2435_v21  ;;  %v7597_v48 = vld [vmem:[#allocation5 + $0x43] ss:$8 sm:$0xf]  ;;  %10179 = vst [vmem:[#allocation181_spill] sm:$0xff] %v7628_v57 }
 0x286   :  { %10148 = vst [vmem:[#allocation110_spill] sm:$0xff] %v7464_v58  ;;  %2790 = vrot.lane.b32.xlu0 %v10111_v25, %s5911_s30  ;;  %10157 = vst [vmem:[#allocation162_spill] sm:$0xff] %v7522_v45  ;;  %v7539_v42 = vrot.slane %v7502_v6, %v10054_v18  ;;  %v2592_v49 = vsel %vm9766_vm15, %v10176_v36, %v7138_v23  ;;  %v2800_v36 = vsel %vm2794_vm12, %v7387_v19, %v7408_v11 }
 0x287   :  { %v2275_v61 = vadd.f32 %v2267_v60, %v2171_v51  ;;  %v2531_v60 = vmul.f32 %v10133_v2, %v7522_v45  ;;  %10173 = vst [vmem:[#allocation176_spill] sm:$0xff] %v7597_v48  ;;  %v7632_v55 = vmul.f32 %v2601_v10, %v2592_v49  ;;  %vm2954_vm1 = vcmp.lt.s32.totalorder %v6534_v52, 97 }
 0x288   :  { %v7477_v37 = vpop.permute.xlu1 %1815 }
 0x289   :  { %10151 = vst [vmem:[#allocation111_spill] sm:$0xff] %v7477_v37  ;;  %v7484_v1 = vpop.permute.xlu0 %2860  ;;  %2946 = vrot.lane.b32.xlu1 %v6279_v53, %s5917_s2  ;;  %v2379_v35 = vadd.f32 %v2371_v17, %v2275_v61  ;;  %10180 = vst [vmem:[#allocation182_spill] sm:$0xff] %v7632_v55 }
 0x28a   :  { %10153 = vst [vmem:[#allocation159_spill] sm:$0xff] %v7484_v1  ;;  %2870 = vrot.lane.b32.xlu0 %v10111_v25, %s5914_s6 }
 0x28c   :  { %v7500_v63 = vpop.permute.xlu1 %2570 }
 0x28d   :  { %10155 = vst [vmem:[#allocation160_spill] sm:$0xff] %v7500_v63  ;;  %v7507_v31 = vpop.permute.xlu0 %2864  ;;  %3075 = vperm.xlu1 %5734, %v7512_v44  }
 0x28e   :  { %2950 = vrot.lane.b32.xlu0 %v10111_v25, %s5917_s2 }
 0x290   :  { %v2575_v43 = vpop.permute.xlu1 %2574 }
 0x291   :  { %v2591_v4 = vsel %vm9766_vm15, %v7500_v63, %v2575_v43  ;;  %v7527_v46 = vpop.permute.xlu0 %2868  ;;  %1946 = vrot.lane.b32.xlu1 %v6279_v53, %s5895_s22 }
 0x292   :  { %10158 = vst [vmem:[#allocation163_spill] sm:$0xff] %v7527_v46  ;;  %v7530_v20 = vmul.f32 %v2601_v10, %v2591_v4  ;;  %3030 = vrot.lane.b32.xlu0 %v10111_v25, %s5920_s7  ;;  %5737 = vset.pattern.permute.xlu1 %v10160_v39  ;;  %v2459_v39 = vadd.f32 %v2451_v12, %v2379_v35  ;;  %v7568_v12 = vld [vmem:[#allocation2 + $0x8] sm:$0xff] }
 0x294   :  { %10159 = vst [vmem:[#allocation164_spill] sm:$0xff] %v7530_v20  ;;  %v2634_v21 = vmul.f32 %v7432_v3, %v7530_v20  ;;  %v7545_v51 = vpop.permute.xlu1 %2578  ;;  %v2539_v2 = vadd.f32 %v2531_v60, %v2459_v39  ;;  %v7590_v39 = vld [vmem:[#allocation5 + $0x42] ss:$8 sm:$0xf] }
 0x295   :  { %10161 = vst [vmem:[#allocation165_spill] sm:$0xff] %v7545_v51  ;;  %v2589_v4 = vsel %vm9766_vm15, %v2575_v43, %v7545_v51  ;;  %v7550_v54 = vpop.permute.xlu0 %2999  ;;  %1948 = vrot.lane.b32.xlu1 %v6334_v34, %s5895_s22  ;;  %10171 = vst [vmem:[#allocation174_spill] sm:$0xff] %v7590_v39  ;;  %v2705_v59 = vrot.slane %v7590_v39, %v6852_v33  ;;  %v2709_v19 = vrot.slane %v7590_v39, %v10054_v18 }
 0x296   :  { %10162 = vst [vmem:[#allocation166_spill] sm:$0xff] %v7550_v54  ;;  %v7553_v17 = vadd.f32 %v2634_v21, %v7418_v56  ;;  %v7556_v61 = vmul.f32 %v7539_v42, %v2589_v4  ;;  %3110 = vrot.lane.b32.xlu0 %v10111_v25, %s5923_s4  ;;  %v10168_v21 = vmov 23   ;;  %v7661_v39 = vrot.slane %v7630_v24, %v6852_v33 }
 0x297   :  { %v7634_v5 = vmul.f32 %v2705_v59, %v2696_v27  ;;  %v10183_v27 = vld [vmem:[#allocation57_spill] sm:$0xff] }
 0x298   :  { %10163 = vst [vmem:[#allocation167_spill] sm:$0xff] %v7556_v61  ;;  %v2635_v63 = vmul.f32 %v7432_v3, %v7556_v61  ;;  %v7564_v43 = vpop.permute.xlu1 %2731  ;;  %v2880_v61 = vsel %vm2874_vm10, %v7484_v1, %v7507_v31  ;;  %v2590_v49 = vsel %vm9766_vm15, %v7138_v23, %v10183_v27  ;;  %10184 = vst [vmem:[#allocation185_spill] sm:$0xff] %v7661_v39  ;;  %vm9774_vm15 = vcmp.lt.s32.totalorder %v6534_v52, 95 }
 0x299   :  { %10164 = vst [vmem:[#allocation168_spill] sm:$0xff] %v7564_v43  ;;  %2655 = vperm.xlu1 %5737, %v7568_v12   ;;  %10181 = vst [vmem:[#allocation183_spill] sm:$0xff] %v7634_v5  ;;  %v2694_v1 = vsel %vm9746_vm13, %v7301_v40, %v7323_v29  ;;  %v7672_v23 = vrot.slane %v7604_v22, %v10054_v18  ;;  %v2910_v29 = vmul.f32 %v7628_v57, %v2880_v61  ;;  %v7704_v61 = vld [vmem:[#allocation5 + $0x46] ss:$8 sm:$0xf] }
 0x29a   :  { %v7566_v51 = vadd.f32 %v2635_v63, %v2539_v2  ;;  %v7571_v56 = vpop.permute.xlu0 %2547  ;;  %3190 = vrot.lane.b32.xlu0 %v10111_v25, %s5925_s8  ;;  %v7691_v45 = vmul.f32 %v7539_v42, %v2590_v49 }
 0x29b   :  { %10165 = vst [vmem:[#allocation169_spill] sm:$0xff] %v7571_v56  ;;  %10187 = vst [vmem:[#allocation187_spill] sm:$0xff] %v7672_v23 }
 0x29c   :  { %v7575_v35 = vpop.permute.xlu1 %1554  ;;  %10191 = vst [vmem:[#allocation189_spill] sm:$0xff] %v7691_v45 }
 0x29d   :  { %10166 = vst [vmem:[#allocation170_spill] sm:$0xff] %v7575_v35  ;;  %3018 = vrot.lane.b32.xlu1 %v6127_v28, %s5920_s7 }
 0x29e   :  { %v7579_v60 = vpop.permute.xlu0 %2940  ;;  %5738 = vset.pattern.permute.xlu1 %v10168_v21 }
 0x29f   :  { %10167 = vst [vmem:[#allocation171_spill] sm:$0xff] %v7579_v60 }
 0x2a0   :  { %v7582_v2 = vpop.permute.xlu1 %1556 }
 0x2a1   :  { %10169 = vst [vmem:[#allocation172_spill] sm:$0xff] %v7582_v2  ;;  %3022 = vrot.lane.b32.xlu1 %v6137_v32, %s5920_s7  ;;  %v7619_v2 = vrot.slane %v7597_v48, %v6852_v33 }
 0x2a2   :  { %v7586_v63 = vpop.permute.xlu0 %2944 }
 0x2a3   :  { %10178 = vst [vmem:[#allocation180_spill] sm:$0xff] %v7619_v2  ;;  %v2830_v10 = vmul.f32 %v7619_v2, %v2800_v36  ;;  %v2960_v36 = vsel %vm2954_vm1, %v7579_v60, %v7586_v63  ;;  %v2798_v60 = vsel %vm2794_vm12, %v7408_v11, %v7430_v62  ;;  %v7719_v11 = vrot.slane %v7630_v24, %v10054_v18 }
 0x2a4   :  { %v7588_v4 = vpop.permute.xlu1 %1919  ;;  %v2990_v49 = vmul.f32 %v7661_v39, %v2960_v36 }
 0x2a5   :  { %10170 = vst [vmem:[#allocation173_spill] sm:$0xff] %v7588_v4  ;;  %3026 = vrot.lane.b32.xlu1 %v6279_v53, %s5920_s7  ;;  %v2846_v42 = vmul.f32 %v7347_v41, %v2830_v10  ;;  %10195 = vst [vmem:[#allocation193_spill] sm:$0xff] %v7719_v11 }
 0x2a6   :  { %v7594_v3 = vpop.permute.xlu0 %2948 }
 0x2a7   :  { %10172 = vst [vmem:[#allocation175_spill] sm:$0xff] %v7594_v3  ;;  %v2958_v10 = vsel %vm2954_vm1, %v7586_v63, %v7594_v3 }
 0x2a8   :  { %v7599_v21 = vpop.permute.xlu1 %2674 }
 0x2a9   :  { %10174 = vst [vmem:[#allocation177_spill] sm:$0xff] %v7599_v21  ;;  %3155 = vperm.xlu1 %5738, %v7512_v44  }
 0x2aa   :  { %v7615_v6 = vpop.permute.xlu0 %3079 }
 0x2ab   :  { %10177 = vst [vmem:[#allocation179_spill] sm:$0xff] %v7615_v6 }
 0x2ac   :  { %v2679_v35 = vpop.permute.xlu1 %2678 }
 0x2ad   :  { %v2695_v25 = vsel %vm9746_vm13, %v7599_v21, %v2679_v35  ;;  %2026 = vrot.lane.b32.xlu1 %v6279_v53, %s5894_s21  ;;  %v7657_v21 = vrot.slane %v7597_v48, %v10054_v18 }
 0x2ae   :  { %v7646_v20 = vmul.f32 %v2705_v59, %v2695_v25  ;;  %v10186_v59 = vmov 33  }
 0x2af   :  { %v7663_v25 = vpop.permute.xlu0 %2651  ;;  %5741 = vset.pattern.permute.xlu1 %v10186_v59  ;;  %v10189_v59 = vld [vmem:[#allocation48_spill] sm:$0xff] }
 0x2b0   :  { %10182 = vst [vmem:[#allocation184_spill] sm:$0xff] %v7646_v20  ;;  %10185 = vst [vmem:[#allocation186_spill] sm:$0xff] %v7663_v25  ;;  %v2738_v27 = vmul.f32 %v7564_v43, %v7646_v20  ;;  %v7680_v2 = vpop.permute.xlu1 %2682  ;;  %v2638_v48 = vmul.f32 %v10189_v59, %v7632_v55  ;;  %v10190_v25 = vld [vmem:[#allocation59_spill] sm:$0xff] }
 0x2b1   :  { %10188 = vst [vmem:[#allocation188_spill] sm:$0xff] %v7680_v2  ;;  %v2742_v40 = vmul.f32 %v10190_v25, %v7634_v5  ;;  %v2693_v22 = vsel %vm9746_vm13, %v2679_v35, %v7680_v2  ;;  %2028 = vrot.lane.b32.xlu1 %v6334_v34, %s5894_s21  ;;  %v7707_v5 = vmul.f32 %v2709_v19, %v2694_v1  ;;  %vm3034_vm13 = vcmp.lt.s32.totalorder %v6534_v52, 96 }
 0x2b2   :  { %v7698_v20 = vadd.f32 %v2738_v27, %v7553_v17  ;;  %v7700_v55 = vmul.f32 %v2709_v19, %v2693_v22  ;;  %v2646_v35 = vadd.f32 %v2638_v48, %v7270_v7  ;;  %v2878_v22 = vsel %vm2874_vm10, %v7507_v31, %v7527_v46 }
 0x2b3   :  { %10193 = vst [vmem:[#allocation191_spill] sm:$0xff] %v7707_v5  ;;  %v7711_v2 = vpop.permute.xlu0 %3020  ;;  %v2831_v1 = vmul.f32 %v7657_v21, %v2798_v60  ;;  %v2926_v17 = vmul.f32 %v7443_v26, %v2910_v29  ;;  %v7730_v27 = vrot.slane %v7704_v61, %v6852_v33  ;;  %v2639_v31 = vmul.f32 %v10189_v59, %v7691_v45  ;;  %v10207_v45 = vld [vmem:[#allocation146_spill] sm:$0xff] }
 0x2b4   :  { %10192 = vst [vmem:[#allocation190_spill] sm:$0xff] %v7698_v20  ;;  %10194 = vst [vmem:[#allocation192_spill] sm:$0xff] %v7711_v2  ;;  %v2739_v7 = vmul.f32 %v7564_v43, %v7700_v55  ;;  %v7723_v48 = vpop.permute.xlu1 %2835  ;;  %v2750_v19 = vadd.f32 %v2742_v40, %v2646_v35  ;;  %v2743_v29 = vmul.f32 %v10190_v25, %v7707_v5 }
 0x2b5   :  { %10196 = vst [vmem:[#allocation194_spill] sm:$0xff] %v7723_v48  ;;  %10197 = vst [vmem:[#allocation195_spill] sm:$0xff] %v7730_v27  ;;  %2759 = vperm.xlu1 %5741, %v7568_v12   ;;  %v2911_v40 = vmul.f32 %v7672_v23, %v2878_v22  ;;  %v3006_v35 = vmul.f32 %v7550_v54, %v2990_v49  ;;  %v2647_v62 = vadd.f32 %v2639_v31, %v7272_v50  ;;  %v10200_v49 = vld [vmem:[#allocation104_spill] sm:$0xff] }
 0x2b6   :  { %v7739_v36 = vadd.f32 %v2739_v7, %v7566_v51  ;;  %v2854_v60 = vadd.f32 %v2846_v42, %v2750_v19  ;;  %v2847_v51 = vmul.f32 %v7347_v41, %v2831_v1  ;;  %v2991_v59 = vmul.f32 %v7719_v11, %v2958_v10  ;;  %v10199_v19 = vld [vmem:[#allocation147_spill] sm:$0xff]  ;;  %v10209_v11 = vld [vmem:[#allocation45_spill] sm:$0xff] }
 0x2b7   :  { %v3025_v46 = vpop.permute.xlu0 %3024  ;;  %v1718_v22 = vmul.f32 %v7353_v14, %v10199_v19  ;;  %v1719_v25 = vmul.f32 %v7353_v14, %v10200_v49  ;;  %v7763_v50 = vrot.slane %v7704_v61, %v10054_v18  ;;  %v2751_v31 = vadd.f32 %v2743_v29, %v2647_v62  ;;  %v10204_v19 = vld [vmem:[#allocation16_spill] sm:$0xff]  ;;  %v10206_v41 = vld [vmem:[#allocation27_spill] sm:$0xff] }
 0x2b8   :  { %10198 = vst [vmem:[#allocation196_spill] sm:$0xff] %v7739_v36  ;;  %v3040_v63 = vsel %vm3034_vm13, %v7711_v2, %v3025_v46  ;;  %v7750_v3 = vpop.permute.xlu1 %1634  ;;  %v2934_v7 = vadd.f32 %v2926_v17, %v2854_v60  ;;  %v2927_v1 = vmul.f32 %v7443_v26, %v2911_v40  ;;  %v10205_v2 = vld [vmem:[#allocation142_spill] sm:$0xff]  ;;  %v1822_v43 = vmul.f32 %v7477_v37, %v10207_v45  ;;  %v10210_v36 = vld [vmem:[#allocation109_spill] sm:$0xff] }
 0x2b9   :  { %v3070_v42 = vmul.f32 %v7730_v27, %v3040_v63  ;;  %3098 = vrot.lane.b32.xlu1 %v6127_v28, %s5923_s4  ;;  %10201 = vst [vmem:[#allocation147_spill] sm:$0xff] %v7763_v50  ;;  %v10203_v63 = vmov 24   ;;  %v1141_v49 = vmul.f32 %v10205_v2, %v10204_v19  ;;  %v1142_v5 = vmul.f32 %v10205_v2, %v10206_v41  ;;  %v10208_v27 = vld [vmem:[#allocation103_spill] sm:$0xff] }
 0x2ba   :  { %v3014_v17 = vadd.f32 %v3006_v35, %v2934_v7  ;;  %5742 = vset.pattern.permute.xlu1 %v10203_v63  ;;  %v1823_v62 = vmul.f32 %v7477_v37, %v10208_v27  ;;  %v2855_v40 = vadd.f32 %v2847_v51, %v2751_v31  ;;  %v3007_v35 = vmul.f32 %v7550_v54, %v2991_v59  ;;  %v5782_v37 = vld [vmem:[#allocation5 + $0x2] ss:$8 sm:$0xf] }
 0x2bb   :  { %v3086_v10 = vmul.f32 %v7615_v6, %v3070_v42  ;;  %v7767_v60 = vpop.permute.xlu0 %3028  ;;  %v1726_v63 = vadd.f32 %v1718_v22, %v1141_v49  ;;  %v1727_v26 = vadd.f32 %v1719_v25, %v1142_v5  ;;  %v1926_v39 = vmul.f32 %v7588_v4, %v10209_v11  ;;  %v10213_v22 = vld [vmem:[#allocation151_spill] sm:$0xff]  ;;  %v10214_v49 = vld [vmem:[#allocation114_spill] sm:$0xff] }
 0x2bc   :  { %10202 = vst [vmem:[#allocation104_spill] sm:$0xff] %v7767_v60  ;;  %v7778_v29 = vpop.permute.xlu1 %1636  ;;  %v3038_v42 = vsel %vm3034_vm13, %v3025_v46, %v7767_v60  ;;  %v1927_v45 = vmul.f32 %v7588_v4, %v10210_v36  ;;  %v2935_v27 = vadd.f32 %v2927_v1, %v2855_v40 }
 0x2bd   :  { %v3094_v7 = vadd.f32 %v3086_v10, %v3014_v17  ;;  %3102 = vrot.lane.b32.xlu1 %v6137_v32, %s5923_s4  ;;  %v3071_v51 = vmul.f32 %v7763_v50, %v3038_v42  ;;  %v1830_v31 = vadd.f32 %v1822_v43, %v1726_v63  ;;  %v1831_v17 = vadd.f32 %v1823_v62, %v1727_v26 }
 0x2be   :  { %v3015_v46 = vadd.f32 %v3007_v35, %v2935_v27  ;;  %v10218_v63 = vmov 34  }
 0x2bf   :  { %v7791_v59 = vpop.permute.xlu0 %3159  ;;  %v3087_v5 = vmul.f32 %v7615_v6, %v3071_v51  ;;  %v1934_v25 = vadd.f32 %v1926_v39, %v1830_v31  ;;  %v1935_v11 = vadd.f32 %v1927_v45, %v1831_v17  ;;  %v7811_v39 = vld [vmem:[#allocation5 + $0x47] ss:$8 sm:$0xf] }
 0x2c0   :  { %10211 = vst [vmem:[#allocation16_spill] sm:$0xff] %v7791_v59  ;;  %v7793_v10 = vpop.permute.xlu1 %2183  ;;  %v7835_v17 = vrot.slane %v7811_v39, %v10054_v18 }
 0x2c1   :  { %10212 = vst [vmem:[#allocation142_spill] sm:$0xff] %v7793_v10  ;;  %v2190_v36 = vmul.f32 %v7793_v10, %v10213_v22  ;;  %v2191_v54 = vmul.f32 %v7793_v10, %v10214_v49  ;;  %3106 = vrot.lane.b32.xlu1 %v6279_v53, %s5923_s4  ;;  %v3095_v1 = vadd.f32 %v3087_v5, %v3015_v46  ;;  %v10222_v49 = vld [vmem:[#allocation55_spill] sm:$0xff] }
 0x2c2   :  { %10219 = vst [vmem:[#allocation45_spill] sm:$0xff] %v7835_v17  ;;  %v1137_v46 = vmul.f32 %v7283_v9, %v6127_v28  ;;  %v1138_v22 = vmul.f32 %v7283_v9, %v6137_v32 }
 0x2c3   :  { %v7802_v40 = vadd.f32 %v2190_v36, %v1934_v25  ;;  %v7804_v26 = vadd.f32 %v2191_v54, %v1935_v11  ;;  %v7822_v54 = vrot.slane %v7811_v39, %v6852_v33 }
 0x2c4   :  { %v7806_v43 = vpop.permute.xlu0 %2755  ;;  %v7808_v62 = vpop.permute.xlu1 %2778 }
 0x2c5   :  { %10215 = vst [vmem:[#allocation27_spill] sm:$0xff] %v7806_v43  ;;  %3235 = vperm.xlu1 %5742, %v7512_v44   ;;  %10217 = vst [vmem:[#allocation103_spill] sm:$0xff] %v7822_v54 }
 0x2c8   :  { %v7813_v35 = vpop.permute.xlu0 %3100  ;;  %v7815_v42 = vpop.permute.xlu1 %2782 }
 0x2c9   :  { %10216 = vst [vmem:[#allocation146_spill] sm:$0xff] %v7813_v35  ;;  %2106 = vrot.lane.b32.xlu1 %v6279_v53, %s5897_s23 }
 0x2ca   :  { %5745 = vset.pattern.permute.xlu1 %v10218_v63  ;;  %v10223_v63 = vld [vmem:[#allocation144_spill] sm:$0xff] }
 0x2cc   :  { %v3105_v45 = vpop.permute.xlu0 %3104  ;;  %v7825_v27 = vpop.permute.xlu1 %2786 }
 0x2cd   :  { %v3120_v51 = vsel %vm9774_vm15, %v7813_v35, %v3105_v45  ;;  %2108 = vrot.lane.b32.xlu1 %v6334_v34, %s5897_s23 }
 0x2ce   :  { %v3150_v31 = vmul.f32 %v7822_v54, %v3120_v51  ;;  %v1714_v51 = vmul.f32 %v10223_v63, %v10222_v49  ;;  %v10227_v49 = vld [vmem:[#allocation51_spill] sm:$0xff] }
 0x2d0   :  { %v3166_v5 = vmul.f32 %v7791_v59, %v3150_v31  ;;  %v7840_v25 = vpop.permute.xlu0 %3108  ;;  %v7842_v11 = vpop.permute.xlu1 %2915  ;;  %v1715_v31 = vmul.f32 %v10223_v63, %v7390_v0  ;;  %v1722_v35 = vadd.f32 %v1714_v51, %v1137_v46 }
 0x2d1   :  { %10220 = vst [vmem:[#allocation109_spill] sm:$0xff] %v7840_v25  ;;  %10221 = vst [vmem:[#allocation151_spill] sm:$0xff] %v7842_v11  ;;  %v3118_v36 = vsel %vm9774_vm15, %v3105_v45, %v7840_v25  ;;  %3180 = vrot.lane.b32.xlu1 %v10204_v19, %s5925_s8  ;;  %v10226_v25 = vld [vmem:[#allocation155_spill] sm:$0xff]  ;;  %v1819_v19 = vmul.f32 %v10227_v49, %v7403_v8  ;;  %v2187_v8 = vmul.f32 %v7368_v47, %v7469_v38  ;;  %v10235_v38 = vld [vmem:[#allocation50_spill] sm:$0xff] }
 0x2d2   :  { %v7851_v6 = vadd.f32 %v3166_v5, %v3094_v7  ;;  %v3151_v28 = vmul.f32 %v7835_v17, %v3118_v36  ;;  %v1723_v45 = vadd.f32 %v1715_v31, %v1138_v22  ;;  %v1818_v7 = vmul.f32 %v10227_v49, %v10226_v25  ;;  %v10231_v31 = vld [vmem:[#allocation87_spill] sm:$0xff]  ;;  %v10259_v17 = vld [vmem:[#allocation90_spill] sm:$0xff] }
 0x2d3   :  { %v2186_v25 = vmul.f32 %v7368_v47, %v10231_v31  ;;  %vm3194_vm15 = vcmp.lt.s32.totalorder %v6534_v52, 94  ;;  %v10257_v47 = vld [vmem:[#allocation83_spill] sm:$0xff] }
 0x2d4   :  { %10224 = vst [vmem:[#allocation114_spill] sm:$0xff] %v7851_v6  ;;  %v3167_v32 = vmul.f32 %v7791_v59, %v3151_v28  ;;  %v7859_v60 = vpop.permute.xlu0 %3239  ;;  %v7861_v10 = vpop.permute.xlu1 %1738  ;;  %v1826_v0 = vadd.f32 %v1818_v7, %v1722_v35  ;;  %v1827_v51 = vadd.f32 %v1819_v19, %v1723_v45  ;;  %v10230_v28 = vld [vmem:[#allocation156_spill] sm:$0xff]  ;;  %v10232_v35 = vld [vmem:[#allocation62_spill] sm:$0xff]  ;;  %v2291_v7 = vmul.f32 %v7464_v58, %v7487_v13  ;;  %v10240_v6 = vld [vmem:[#allocation167_spill] sm:$0xff] }
 0x2d5   :  { %10225 = vst [vmem:[#allocation55_spill] sm:$0xff] %v7859_v60  ;;  %3184 = vrot.lane.b32.xlu1 %v10206_v41, %s5925_s8  ;;  %v1922_v22 = vmul.f32 %v10230_v28, %v7238_v16  ;;  %v1923_v41 = vmul.f32 %v10230_v28, %v7435_v30 }
 0x2d6   :  { %v7865_v5 = vadd.f32 %v3167_v32, %v3095_v1  ;;  %v2290_v32 = vmul.f32 %v7464_v58, %v10232_v35  ;;  %v10236_v35 = vld [vmem:[#allocation162_spill] sm:$0xff]  ;;  %v10267_v58 = vld [vmem:[#allocation80_spill] sm:$0xff] }
 0x2d7   :  { %v1930_v1 = vadd.f32 %v1922_v22, %v1826_v0  ;;  %v1931_v16 = vadd.f32 %v1923_v41, %v1827_v51  ;;  %v2554_v22 = vmul.f32 %v7571_v56, %v7396_v15  ;;  %v2555_v51 = vmul.f32 %v7571_v56, %v10236_v35 }
 0x2d8   :  { %10228 = vst [vmem:[#allocation144_spill] sm:$0xff] %v7865_v5  ;;  %v7871_v46 = vpop.permute.xlu0 %3178  ;;  %v7873_v36 = vpop.permute.xlu1 %1740 }
 0x2d9   :  { %10229 = vst [vmem:[#allocation155_spill] sm:$0xff] %v7871_v46  ;;  %3188 = vrot.lane.b32.xlu1 %v6334_v34, %s5925_s8  ;;  %v2194_v31 = vadd.f32 %v2186_v25, %v1930_v1  ;;  %v2195_v0 = vadd.f32 %v2187_v8, %v1931_v16  ;;  %v10238_v25 = vld [vmem:[#allocation164_spill] sm:$0xff]  ;;  %v10239_v1 = vld [vmem:[#allocation186_spill] sm:$0xff] }
 0x2da   :  { %v2658_v5 = vmul.f32 %v10239_v1, %v10238_v25  ;;  %v2659_v60 = vmul.f32 %v10239_v1, %v10240_v6  ;;  %v10258_v1 = vld [vmem:[#allocation134_spill] sm:$0xff] }
 0x2db   :  { %v2298_v41 = vadd.f32 %v2290_v32, %v2194_v31  ;;  %v2299_v59 = vadd.f32 %v2291_v7, %v2195_v0  ;;  %v10242_v31 = vld [vmem:[#allocation184_spill] sm:$0xff]  ;;  %v2763_v0 = vmul.f32 %v7806_v43, %v7700_v55  ;;  %v1167_v56 = vsel %vm1163_vm3, %v10259_v17, %v10258_v1  ;;  %v10265_v17 = vld [vmem:[#allocation123_spill] sm:$0xff] }
 0x2dc   :  { %v3183_v45 = vpop.permute.xlu0 %3182  ;;  %v7890_v19 = vpop.permute.xlu1 %2287  ;;  %v2762_v7 = vmul.f32 %v7806_v43, %v10242_v31 }
 0x2dd   :  { %10233 = vst [vmem:[#allocation87_spill] sm:$0xff] %v7890_v19  ;;  %v7895_v30 = vsel %vm3194_vm15, %v7871_v46, %v3183_v45  ;;  %2216 = vrot.lane.b32.xlu1 %v10235_v38, %s5887_s14  ;;  %v2562_v15 = vadd.f32 %v2554_v22, %v2298_v41  ;;  %v2563_v32 = vadd.f32 %v2555_v51, %v2299_v59 }
 0x2de   :  { %10234 = vst [vmem:[#allocation62_spill] sm:$0xff] %v7895_v30 }
 0x2df   :  { %v2666_v6 = vadd.f32 %v2658_v5, %v2562_v15  ;;  %v2667_v25 = vadd.f32 %v2659_v60, %v2563_v32  ;;  %v10249_v60 = vld [vmem:[#allocation38_spill] sm:$0xff] }
 0x2e0   :  { %v7903_v13 = vpop.permute.xlu0 %3186  ;;  %v7914_v16 = vpop.permute.xlu1 %2858  ;;  %v10252_v32 = vld [vmem:[#allocation82_spill] sm:$0xff] }
 0x2e1   :  { %10237 = vst [vmem:[#allocation50_spill] sm:$0xff] %v7903_v13  ;;  %v7912_v8 = vsel %vm3194_vm15, %v3183_v45, %v7903_v13  ;;  %3263 = vperm.xlu1 %5745, %v7568_v12   ;;  %v10244_v45 = vmov 35   ;;  %v2770_v13 = vadd.f32 %v2762_v7, %v2666_v6  ;;  %v2771_v12 = vadd.f32 %v2763_v0, %v2667_v25  ;;  %v5780_v0 = vld [vmem:[#allocation5] ss:$8 sm:$0xf] }
 0x2e2   :  { %10241 = vst [vmem:[#allocation162_spill] sm:$0xff] %v7912_v8  ;;  %v7948_v31 = vsub.s32 2, %v10252_v32  ;;  %v7951_v7 = vsub.s32 3, %v10252_v32  ;;  %v10253_v25 = vld [vmem:[#allocation117_spill] sm:$0xff]  ;;  %v2294_v8 = vmul.f32 %v7890_v19, %v10267_v58 }
 0x2e3   :  { %v5781_v32 = vld [vmem:[#allocation5 + $0x1] ss:$8 sm:$0xf] }
 0x2e4   :  { %v7921_v35 = vpop.permute.xlu0 %2214  ;;  %v7923_v46 = vpop.permute.xlu1 %2862  ;;  %v1185_v6 = vrot.slane %v5780_v0, %v7948_v31  ;;  %v1269_v43 = vrot.slane %v5781_v32, %v7951_v7  ;;  %v1349_v58 = vrot.slane %v5782_v37, %v7951_v7 }
 0x2e5   :  { %10243 = vst [vmem:[#allocation164_spill] sm:$0xff] %v7921_v35  ;;  %5746 = vset.pattern.permute.xlu1 %v10244_v45  ;;  %v10254_v45 = vld [vmem:[#allocation49_spill] sm:$0xff] }
 0x2e6   :  { %3283 = vperm.xlu1 %5746, %v7512_v44  }
 0x2e8   :  { %v7927_v22 = vpop.permute.xlu0 %3259  ;;  %v7931_v41 = vpop.permute.xlu1 %2866 }
 0x2e9   :  { %10245 = vst [vmem:[#allocation167_spill] sm:$0xff] %v7927_v22  ;;  %v3266_v59 = vadd.f32 %v7927_v22, %v2770_v13  ;;  %v3267_v51 = vadd.f32 %v7927_v22, %v2771_v12  ;;  %10246 = vst [vmem:[#allocation184_spill] sm:$0xff] %v7931_v41  ;;  %v1166_v12 = vsel %vm1163_vm3, %v10254_v45, %v10253_v25  ;;  %v10275_v41 = vld [vmem:[#allocation13_spill] sm:$0xff] }
 0x2ea   :  { %2318 = vrot.lane.b32.xlu1 %v10249_v60, %s5898_s24  ;;  %v1265_v22 = vrot.slane %v5781_v32, %v7948_v31  ;;  %v1164_v45 = vsel %vm1163_vm3, %v10253_v25, %v10257_v47  ;;  %v1196_v50 = vmul.f32 %v1185_v6, %v1166_v12  ;;  %v10263_v47 = vld [vmem:[#allocation120_spill] sm:$0xff]  ;;  %v10264_v25 = vld [vmem:[#allocation66_spill] sm:$0xff] }
 0x2eb   :  { %v7933_v55 = vmax.f32 %v3266_v59, 0.0  ;;  %v7935_v5 = vmax.f32 %v3267_v51, 0.0  ;;  %v10256_v51 = vld [vmem:[#allocation12_spill] sm:$0xff]  ;;  %v1245_v4 = vsel %vm1242_vm2, %v10264_v25, %v10263_v47  ;;  %v1243_v28 = vsel %vm1242_vm2, %v10263_v47, %v10265_v17  ;;  %v10270_v25 = vld [vmem:[#allocation15_spill] sm:$0xff] }
 0x2ec   :  { %v7939_v15 = vpop.permute.xlu1 %2995  ;;  %v1127_v11 = vmul.f32 %v10270_v25, %v6334_v34  ;;  %v1128_v47 = vmul.f32 %v10270_v25, %v10235_v38  ;;  %v10272_v25 = vld [vmem:[#allocation118_spill] sm:$0xff] }
 0x2ed   :  { %10247 = vst [vmem:[#allocation197_spill] sm:$0xff] %v7933_v55  ;;  %10248 = vst [vmem:[#allocation198_spill] sm:$0xff] %v7935_v5  ;;  %v3319_v44 = vadd.f32 %v7935_v5, %v7933_v55  ;;  %v1124_v55 = vmul.f32 %v10256_v51, %v10249_v60  ;;  %v1189_v5 = vrot.slane %v5780_v0, %v7951_v7  ;;  %v10261_v0 = vld [vmem:[#allocation72_spill] sm:$0xff] }
 0x2ee   :  { %10250 = vst [vmem:[#allocation38_spill] sm:$0xff] %v7939_v15  ;;  %2320 = vrot.lane.b32.xlu1 %v10235_v38, %s5898_s24  ;;  %v10262_v15 = vld [vmem:[#allocation115_spill] sm:$0xff] }
 0x2ef   :  { %3320 = vadd.xlane.f32.xlu0 %v3319_v44  ;;  %v1123_v44 = vmul.f32 %v10256_v51, %v6279_v53  ;;  %v10260_v51 = vld [vmem:[#allocation107_spill] sm:$0xff]  ;;  %v1197_v30 = vmul.f32 %v1189_v5, %v1164_v45  ;;  %v1276_v45 = vmul.f32 %v1265_v22, %v1245_v4  ;;  %v10277_v4 = vld [vmem:[#allocation46_spill] sm:$0xff] }
 0x2f0   :  { %v7945_v13 = vpop.permute.xlu1 %1842  ;;  %v1246_v54 = vsel %vm1242_vm2, %v10261_v0, %v10260_v51  ;;  %v1244_v32 = vsel %vm1242_vm2, %v10260_v51, %v10262_v15  ;;  %v10268_v15 = vld [vmem:[#allocation116_spill] sm:$0xff]  ;;  %vm10393_vm2 = vcmp.lt.s32.totalorder %v6534_v52, 113 }
 0x2f1   :  { %10251 = vst [vmem:[#allocation199_spill] sm:$0xff] %v7945_v13  ;;  %v2295_v12 = vmul.f32 %v7890_v19, %v10268_v15  ;;  %v1200_v13 = vmul.f32 %v1185_v6, %v1167_v56  ;;  %v1280_v17 = vmul.f32 %v1265_v22, %v1246_v54  ;;  %v1281_v23 = vmul.f32 %v1269_v43, %v1244_v32  ;;  %v10273_v32 = vld [vmem:[#allocation61_spill] sm:$0xff] }
 0x2f2   :  { %2400 = vrot.lane.b32.xlu1 %v10235_v38, %s5899_s25  ;;  %v1277_v19 = vmul.f32 %v1269_v43, %v1243_v28  ;;  %v2302_v56 = vadd.f32 %v2294_v8, %v7802_v40  ;;  %v10278_v40 = vld [vmem:[#allocation52_spill] sm:$0xff]  ;;  %v10279_v28 = vld [vmem:[#allocation141_spill] sm:$0xff] }
 0x2f3   :  { %v2303_v6 = vadd.f32 %v2295_v12, %v7804_v26  ;;  %v1216_v49 = vmul.f32 %v10275_v41, %v1200_v13  ;;  %v1325_v26 = vsel %vm1322_vm5, %v10278_v40, %v10277_v4  ;;  %v10280_v8 = vld [vmem:[#allocation153_spill] sm:$0xff]  ;;  %v10284_v12 = vld [vmem:[#allocation18_spill] sm:$0xff] }
 0x2f4   :  { %v7960_v59 = vpop.permute.xlu1 %1844  ;;  %v1324_v22 = vsel %vm1322_vm5, %v10280_v8, %v10279_v28  ;;  %v10285_v40 = vld [vmem:[#allocation14_spill] sm:$0xff] }
 0x2f5   :  { %10255 = vst [vmem:[#allocation117_spill] sm:$0xff] %v7960_v59  ;;  %v10266_v59 = vld [vmem:[#allocation139_spill] sm:$0xff]  ;;  %v1296_v28 = vmul.f32 %v10285_v40, %v1280_v17 }
 0x2f6   :  { %2480 = vrot.lane.b32.xlu1 %v10235_v38, %s5902_s26  ;;  %v1165_v0 = vsel %vm1163_vm3, %v10258_v1, %v10266_v59  ;;  %v1345_v1 = vrot.slane %v5782_v37, %v7948_v31  ;;  %v10271_v59 = vld [vmem:[#allocation11_spill] sm:$0xff]  ;;  %vm10396_vm3 = vmmov %vm10393_vm2 }
 0x2f7   :  { %v1212_v15 = vmul.f32 %v10271_v59, %v1196_v50  ;;  %v1201_v57 = vmul.f32 %v1189_v5, %v1165_v0  ;;  %v1213_v37 = vmul.f32 %v10271_v59, %v1197_v30  ;;  %v10276_v50 = vld [vmem:[#allocation86_spill] sm:$0xff]  ;;  %v1292_v59 = vmul.f32 %v10284_v12, %v1276_v45 }
 0x2f8   :  { %v8003_v51 = vpop.permute.xlu1 %2551  ;;  %v1323_v43 = vsel %vm1322_vm5, %v10277_v4, %v10276_v50  ;;  %v10281_v5 = vld [vmem:[#allocation94_spill] sm:$0xff]  ;;  %v1361_v45 = vmul.f32 %v1349_v58, %v1324_v22 }
 0x2f9   :  { %10269 = vst [vmem:[#allocation49_spill] sm:$0xff] %v8003_v51  ;;  %v2558_v54 = vmul.f32 %v8003_v51, %v10272_v25  ;;  %v2559_v35 = vmul.f32 %v8003_v51, %v10273_v32  ;;  %v1326_v30 = vsel %vm1322_vm5, %v10281_v5, %v10280_v8  ;;  %v1217_v25 = vmul.f32 %v10275_v41, %v1201_v57  ;;  %v5783_v32 = vld [vmem:[#allocation5 + $0x3] ss:$8 sm:$0xf] }
 0x2fa   :  { %2584 = vrot.lane.b32.xlu1 %v10235_v38, %s5905_s27  ;;  %v1425_v50 = vrot.slane %v5783_v32, %v7948_v31  ;;  %v1429_v4 = vrot.slane %v5783_v32, %v7951_v7  ;;  %v1297_v8 = vmul.f32 %v10285_v40, %v1281_v23  ;;  %v1357_v5 = vmul.f32 %v1349_v58, %v1323_v43  ;;  %v5784_v41 = vld [vmem:[#allocation5 + $0x4] ss:$8 sm:$0xf]  ;;  %v5785_v40 = vld [vmem:[#allocation5 + $0x5] ss:$8 sm:$0xf] }
 0x2fb   :  { %v8040_v13 = vadd.f32 %v2558_v54, %v2302_v56  ;;  %v8042_v0 = vadd.f32 %v2559_v35, %v2303_v6  ;;  %v1293_v56 = vmul.f32 %v10284_v12, %v1277_v19  ;;  %v1356_v35 = vmul.f32 %v1345_v1, %v1325_v26  ;;  %v10286_v19 = vld [vmem:[#allocation125_spill] sm:$0xff]  ;;  %v10287_v26 = vld [vmem:[#allocation63_spill] sm:$0xff] }
 0x2fc   :  { %v8020_v20 = vpop.permute.xlu1 %2938  ;;  %v1220_v54 = vadd.f32 %v1212_v15, %v1123_v44  ;;  %v1360_v51 = vmul.f32 %v1345_v1, %v1326_v30  ;;  %v1224_v57 = vadd.f32 %v1216_v49, %v1127_v11  ;;  %v1509_v32 = vrot.slane %v5784_v41, %v7951_v7  ;;  %v10288_v1 = vld [vmem:[#allocation67_spill] sm:$0xff] }
 0x2fd   :  { %10274 = vst [vmem:[#allocation12_spill] sm:$0xff] %v8020_v20  ;;  %10282 = vst [vmem:[#allocation83_spill] sm:$0xff] %v8040_v13  ;;  %v1505_v13 = vrot.slane %v5784_v41, %v7948_v31  ;;  %v1225_v17 = vadd.f32 %v1217_v25, %v1128_v47  ;;  %v1403_v44 = vsel %vm1402_vm4, %v10287_v26, %v10286_v19  ;;  %v10290_v15 = vld [vmem:[#allocation119_spill] sm:$0xff]  ;;  %v10292_v47 = vld [vmem:[#allocation74_spill] sm:$0xff] }
 0x2fe   :  { %10283 = vst [vmem:[#allocation134_spill] sm:$0xff] %v8042_v0  ;;  %2688 = vrot.lane.b32.xlu1 %v10235_v38, %s5908_s28  ;;  %v1221_v0 = vadd.f32 %v1213_v37, %v1124_v55  ;;  %v1300_v23 = vadd.f32 %v1292_v59, %v1220_v54  ;;  %v1405_v11 = vsel %vm1402_vm4, %v10288_v1, %v10287_v26  ;;  %v10289_v55 = vld [vmem:[#allocation17_spill] sm:$0xff]  ;;  %v10291_v37 = vld [vmem:[#allocation91_spill] sm:$0xff]  ;;  %v10294_v59 = vld [vmem:[#allocation20_spill] sm:$0xff] }
 0x2ff   :  { %v1372_v58 = vmul.f32 %v10289_v55, %v1356_v35  ;;  %v1404_v43 = vsel %vm1402_vm4, %v10291_v37, %v10290_v15  ;;  %v1406_v22 = vsel %vm1402_vm4, %v10292_v47, %v10291_v37  ;;  %v1373_v12 = vmul.f32 %v10289_v55, %v1357_v5 }
 0x300   :  { %v8053_v6 = vpop.permute.xlu1 %2942  ;;  %v1301_v49 = vadd.f32 %v1293_v56, %v1221_v0  ;;  %v1376_v25 = vmul.f32 %v10294_v59, %v1360_v51  ;;  %v1377_v0 = vmul.f32 %v10294_v59, %v1361_v45  ;;  %v8082_v56 = vrot.slane %v5785_v40, %v7948_v31 }
 0x301   :  { %v1304_v35 = vadd.f32 %v1296_v28, %v1224_v57  ;;  %v1436_v54 = vmul.f32 %v1425_v50, %v1405_v11  ;;  %v1437_v41 = vmul.f32 %v1429_v4, %v1403_v44  ;;  %v8085_v19 = vrot.slane %v5785_v40, %v7951_v7  ;;  %v5786_v57 = vld [vmem:[#allocation5 + $0x6] ss:$8 sm:$0xf] }
 0x302   :  { %2792 = vrot.lane.b32.xlu1 %v10235_v38, %s5911_s30  ;;  %v8091_v5 = vmul.f32 %v10205_v2, %v6334_v34  ;;  %v1305_v51 = vadd.f32 %v1297_v8, %v1225_v17  ;;  %v1440_v26 = vmul.f32 %v1425_v50, %v1406_v22  ;;  %v1441_v45 = vmul.f32 %v1429_v4, %v1404_v43  ;;  %v5787_v8 = vld [vmem:[#allocation5 + $0x7] ss:$8 sm:$0xf]  ;;  %v8108_v4 = vld [vmem:[#allocation5 + $0x60] ss:$8 sm:$0xf] }
 0x303   :  { %v8095_v1 = vmul.f32 %v10205_v2, %v10235_v38  ;;  %v1380_v28 = vadd.f32 %v1372_v58, %v1300_v23  ;;  %v8098_v44 = vrot.slane %v5786_v57, %v7948_v31  ;;  %v8101_v11 = vrot.slane %v5786_v57, %v7951_v7  ;;  %v10296_v2 = vld [vmem:[#allocation22_spill] sm:$0xff]  ;;  %v10297_v58 = vld [vmem:[#allocation89_spill] sm:$0xff] }
 0x304   :  { %v8076_v30 = vpop.permute.xlu1 %2946  ;;  %v1381_v15 = vadd.f32 %v1373_v12, %v1301_v49  ;;  %v1384_v34 = vadd.f32 %v1376_v25, %v1304_v35  ;;  %v1385_v37 = vadd.f32 %v1377_v0, %v1305_v51  ;;  %v8106_v50 = vrot.slane %v5787_v8, %v7948_v31  ;;  %v10298_v43 = vld [vmem:[#allocation105_spill] sm:$0xff]  ;;  %v10299_v22 = vld [vmem:[#allocation54_spill] sm:$0xff]  ;;  %v10300_v12 = vld [vmem:[#allocation19_spill] sm:$0xff] }
 0x305   :  { %10293 = vst [vmem:[#allocation90_spill] sm:$0xff] %v8076_v30  ;;  %v1452_v23 = vmul.f32 %v10296_v2, %v1436_v54  ;;  %v1453_v17 = vmul.f32 %v10296_v2, %v1437_v41  ;;  %v1483_v47 = vsel %vm1482_vm7, %v10298_v43, %v10297_v58  ;;  %v1485_v49 = vsel %vm1482_vm7, %v10299_v22, %v10298_v43  ;;  %v10301_v0 = vld [vmem:[#allocation143_spill] sm:$0xff]  ;;  %v10302_v40 = vld [vmem:[#allocation158_spill] sm:$0xff]  ;;  %v10318_v30 = vld [vmem:[#allocation172_spill] sm:$0xff] }
 0x306   :  { %2872 = vrot.lane.b32.xlu1 %v10235_v38, %s5914_s6  ;;  %v1456_v59 = vmul.f32 %v10300_v12, %v1440_v26  ;;  %v1457_v25 = vmul.f32 %v10300_v12, %v1441_v45  ;;  %v1484_v35 = vsel %vm1482_vm7, %v10302_v40, %v10301_v0  ;;  %v10303_v54 = vld [vmem:[#allocation98_spill] sm:$0xff]  ;;  %v8134_v51 = vmul.f32 %v7283_v9, %v6279_v53 }
 0x307   :  { %v1486_v41 = vsel %vm1482_vm7, %v10303_v54, %v10302_v40  ;;  %v8137_v57 = vrot.slane %v5787_v8, %v7951_v7  ;;  %v8141_v26 = vrot.slane %v8108_v4, %v6852_v33  ;;  %v8145_v45 = vrot.slane %v8108_v4, %v10054_v18  ;;  %v5788_v22 = vld [vmem:[#allocation5 + $0x25] ss:$8 sm:$0xf] }
 0x308   :  { %v8103_v55 = vpop.permute.xlu1 %3075  ;;  %v8151_v58 = vmul.f32 %v7283_v9, %v10249_v60  ;;  %v1516_v43 = vmul.f32 %v1505_v13, %v1485_v49  ;;  %v1517_v53 = vmul.f32 %v1509_v32, %v1483_v47  ;;  %v8154_v8 = vrot.slane %v5788_v22, %v7948_v31  ;;  %v5789_v9 = vld [vmem:[#allocation5 + $0x20] ss:$8 sm:$0xf] }
 0x309   :  { %10295 = vst [vmem:[#allocation107_spill] sm:$0xff] %v8103_v55  ;;  %v1461_v12 = vadd.f32 %v1453_v17, %v1381_v15  ;;  %v1520_v0 = vmul.f32 %v1505_v13, %v1486_v41  ;;  %v1521_v40 = vmul.f32 %v1509_v32, %v1484_v35  ;;  %v8157_v54 = vrot.slane %v5788_v22, %v7951_v7  ;;  %v10307_v47 = vld [vmem:[#allocation127_spill] sm:$0xff]  ;;  %v10308_v49 = vld [vmem:[#allocation170_spill] sm:$0xff]  ;;  %v10309_v13 = vld [vmem:[#allocation68_spill] sm:$0xff]  ;;  %v8182_v35 = vpop.permute.xlu0 %3287 }
 0x30a   :  { %2952 = vrot.lane.b32.xlu1 %v10235_v38, %s5917_s2  ;;  %10305 = vst [vmem:[#allocation115_spill] sm:$0xff] %v8154_v8  ;;  %v1460_v18 = vadd.f32 %v1452_v23, %v1380_v28  ;;  %v1464_v33 = vadd.f32 %v1456_v59, %v1384_v34  ;;  %v8162_v60 = vrot.slane %v5789_v9, %v7948_v31  ;;  %v5790_v28 = vld [vmem:[#allocation5 + $0x27] ss:$8 sm:$0xf]  ;;  %10313 = vst [vmem:[#allocation139_spill] sm:$0xff] %v8182_v35 }
 0x30b   :  { %10306 = vst [vmem:[#allocation120_spill] sm:$0xff] %v8157_v54  ;;  %v1563_v15 = vsel %vm1562_vm6, %v10308_v49, %v10307_v47  ;;  %v1565_v32 = vsel %vm1562_vm6, %v10309_v13, %v10308_v49  ;;  %v8173_v17 = vrot.slane %v5789_v9, %v7951_v7  ;;  %v8176_v34 = vrot.slane %v5790_v28, %v7948_v31  ;;  %v10312_v23 = vld [vmem:[#allocation21_spill] sm:$0xff]  ;;  %v10316_v9 = vld [vmem:[#allocation24_spill] sm:$0xff] }
 0x30c   :  { %v8147_v2 = vpop.permute.xlu1 %1946  ;;  %v1532_v59 = vmul.f32 %v10312_v23, %v1516_v43  ;;  %v8185_v41 = vrot.slane %v5790_v28, %v7951_v7  ;;  %v5791_v22 = vld [vmem:[#allocation5 + $0x40] ss:$8 sm:$0xf]  ;;  %v1536_v49 = vmul.f32 %v10316_v9, %v1520_v0  ;;  %v1537_v13 = vmul.f32 %v10316_v9, %v1521_v40 }
 0x30d   :  { %10304 = vst [vmem:[#allocation72_spill] sm:$0xff] %v8147_v2  ;;  %v1465_v2 = vadd.f32 %v1457_v25, %v1385_v37  ;;  %10310 = vst [vmem:[#allocation66_spill] sm:$0xff] %v8176_v34  ;;  %v1533_v25 = vmul.f32 %v10312_v23, %v1517_v53  ;;  %v8188_v47 = vrot.slane %v5791_v22, %v7948_v31  ;;  %v10317_v55 = vld [vmem:[#allocation121_spill] sm:$0xff]  ;;  %v10319_v53 = vld [vmem:[#allocation76_spill] sm:$0xff]  ;;  %vm10410_vm4 = vcmp.lt.s32.totalorder %v6534_v52, 112 }
 0x30e   :  { %3032 = vrot.lane.b32.xlu1 %v10235_v38, %s5920_s7  ;;  %10314 = vst [vmem:[#allocation80_spill] sm:$0xff] %v8185_v41  ;;  %v1564_v43 = vsel %vm1562_vm6, %v10318_v30, %v10317_v55  ;;  %v1566_v23 = vsel %vm1562_vm6, %v10319_v53, %v10318_v30  ;;  %v1596_v28 = vmul.f32 %v8082_v56, %v1565_v32  ;;  %v10321_v40 = vld [vmem:[#allocation161_spill] sm:$0xff]  ;;  %v10324_v30 = vld [vmem:[#allocation174_spill] sm:$0xff]  ;;  %vm10412_vm5 = vmmov %vm10410_vm4  ;;  %vm10414_vm6 = vcmp.lt.s32.totalorder %v6534_v52, 95 }
 0x30f   :  { %10315 = vst [vmem:[#allocation116_spill] sm:$0xff] %v8188_v47  ;;  %v1597_v35 = vmul.f32 %v8085_v19, %v1563_v15  ;;  %v8205_v0 = vrot.slane %v5791_v22, %v7951_v7  ;;  %v8209_v9 = vrot.slane %v10321_v40, %v7948_v31  ;;  %v8213_v55 = vrot.slane %v10321_v40, %v7951_v7  ;;  %v10327_v15 = vld [vmem:[#allocation176_spill] sm:$0xff] }
 0x310   :  { %v8178_v37 = vpop.permute.xlu1 %1948  ;;  %v8217_v53 = vrot.slane %v10324_v30, %v7948_v31  ;;  %v8221_v32 = vrot.slane %v10324_v30, %v7951_v7  ;;  %v8225_v22 = vrot.slane %v10327_v15, %v7948_v31  ;;  %v1601_v40 = vmul.f32 %v8085_v19, %v1564_v43  ;;  %v10331_v30 = vld [vmem:[#allocation178_spill] sm:$0xff] }
 0x311   :  { %10311 = vst [vmem:[#allocation123_spill] sm:$0xff] %v8178_v37  ;;  %10320 = vst [vmem:[#allocation15_spill] sm:$0xff] %v8205_v0  ;;  %v1540_v0 = vadd.f32 %v1532_v59, %v1460_v18  ;;  %v1544_v47 = vadd.f32 %v1536_v49, %v1464_v33  ;;  %v1545_v20 = vadd.f32 %v1537_v13, %v1465_v2  ;;  %v10334_v59 = vld [vmem:[#allocation93_spill] sm:$0xff]  ;;  %v8251_v2 = vpop.permute.xlu0 %2398  ;;  %vm10424_vm7 = vcmp.lt.s32.totalorder %v6534_v52, 111 }
 0x312   :  { %3112 = vrot.lane.b32.xlu1 %v10235_v38, %s5923_s4  ;;  %10322 = vst [vmem:[#allocation11_spill] sm:$0xff] %v8209_v9  ;;  %10323 = vst [vmem:[#allocation118_spill] sm:$0xff] %v8213_v55  ;;  %v1600_v9 = vmul.f32 %v8082_v56, %v1566_v23  ;;  %v8233_v55 = vrot.slane %v10327_v15, %v7951_v7  ;;  %v1643_v19 = vsel %vm1642_vm9, %v7750_v3, %v10334_v59 }
 0x313   :  { %10325 = vst [vmem:[#allocation61_spill] sm:$0xff] %v8217_v53  ;;  %10326 = vst [vmem:[#allocation13_spill] sm:$0xff] %v8221_v32  ;;  %v1541_v53 = vadd.f32 %v1533_v25, %v1461_v12  ;;  %v8237_v32 = vrot.slane %v10331_v30, %v7948_v31  ;;  %v10335_v12 = vld [vmem:[#allocation56_spill] sm:$0xff]  ;;  %v8255_v25 = vrot.slane %v10331_v30, %v7951_v7  ;;  %v10341_v30 = vld [vmem:[#allocation102_spill] sm:$0xff] }
 0x314   :  { %10328 = vst [vmem:[#allocation86_spill] sm:$0xff] %v8225_v22  ;;  %v8227_v37 = vpop.permute.xlu1 %2655  ;;  %10330 = vst [vmem:[#allocation52_spill] sm:$0xff] %v8233_v55  ;;  %v1645_v33 = vsel %vm1642_vm9, %v10335_v12, %v7750_v3  ;;  %v10339_v3 = vld [vmem:[#allocation23_spill] sm:$0xff]  ;;  %v1677_v12 = vmul.f32 %v8101_v11, %v1643_v19 }
 0x315   :  { %10329 = vst [vmem:[#allocation46_spill] sm:$0xff] %v8227_v37  ;;  %10332 = vst [vmem:[#allocation141_spill] sm:$0xff] %v8237_v32  ;;  %v10333_v37 = vld [vmem:[#allocation26_spill] sm:$0xff]  ;;  %v1616_v43 = vmul.f32 %v10339_v3, %v1600_v9  ;;  %v1617_v23 = vmul.f32 %v10339_v3, %v1601_v40  ;;  %v1676_v59 = vmul.f32 %v8098_v44, %v1645_v33  ;;  %v10370_v32 = vld [vmem:[#allocation196_spill] sm:$0xff] }
 0x316   :  { %3192 = vrot.lane.b32.xlu1 %v10235_v38, %s5925_s8  ;;  %v1612_v18 = vmul.f32 %v10333_v37, %v1596_v28  ;;  %v1613_v56 = vmul.f32 %v10333_v37, %v1597_v35  ;;  %10336 = vst [vmem:[#allocation153_spill] sm:$0xff] %v8255_v25  ;;  %v8259_v38 = vrot.slane %v7630_v24, %v7948_v31  ;;  %v5792_v35 = vld [vmem:[#allocation5 + $0x21] ss:$8 sm:$0xf] }
 0x317   :  { %v8263_v37 = vrot.slane %v7630_v24, %v7951_v7  ;;  %v8266_v49 = vrot.slane %v5792_v35, %v7948_v31  ;;  %v10340_v28 = vld [vmem:[#allocation145_spill] sm:$0xff]  ;;  %v1646_v24 = vsel %vm1642_vm9, %v10341_v30, %v7778_v29  ;;  %v8287_v9 = vrot.slane %v8108_v4, %v7948_v31 }
 0x318   :  { %10337 = vst [vmem:[#allocation94_spill] sm:$0xff] %v8259_v38  ;;  %v8268_v13 = vpop.permute.xlu1 %3018  ;;  %v1644_v15 = vsel %vm1642_vm9, %v7778_v29, %v10340_v28  ;;  %v1620_v40 = vadd.f32 %v1612_v18, %v1540_v0  ;;  %v1621_v3 = vadd.f32 %v1613_v56, %v1541_v53  ;;  %v8291_v28 = vrot.slane %v8108_v4, %v7951_v7  ;;  %v8309_v18 = vpop.permute.xlu0 %2478  ;;  %v5793_v56 = vld [vmem:[#allocation5 + $0x22] ss:$8 sm:$0xf]  ;;  %vm10428_vm9 = vmmov %vm10414_vm6 }
 0x319   :  { %10338 = vst [vmem:[#allocation18_spill] sm:$0xff] %v8263_v37  ;;  %v8283_v37 = vrot.slane %v5792_v35, %v7951_v7  ;;  %10342 = vst [vmem:[#allocation14_spill] sm:$0xff] %v8287_v9  ;;  %v8295_v29 = vrot.slane %v7704_v61, %v7951_v7  ;;  %v1680_v33 = vmul.f32 %v8098_v44, %v1646_v24 }
 0x31a   :  { %10343 = vst [vmem:[#allocation125_spill] sm:$0xff] %v8291_v28  ;;  %v1681_v19 = vmul.f32 %v8101_v11, %v1644_v15  ;;  %v2799_v35 = vsel %vm2794_vm12, %v7808_v62, %v7815_v42  ;;  %v8307_v0 = vrot.slane %v7704_v61, %v7948_v31  ;;  %v1624_v4 = vadd.f32 %v1616_v43, %v1544_v47  ;;  %v10348_v15 = vld [vmem:[#allocation25_spill] sm:$0xff]  ;;  %v10349_v47 = vld [vmem:[#allocation180_spill] sm:$0xff] }
 0x31b   :  { %10344 = vst [vmem:[#allocation63_spill] sm:$0xff] %v8295_v29  ;;  %v1625_v53 = vadd.f32 %v1617_v23, %v1545_v20  ;;  %v8312_v44 = vrot.slane %v5793_v56, %v7948_v31  ;;  %v8315_v11 = vrot.slane %v5793_v56, %v7951_v7  ;;  %v1692_v24 = vmul.f32 %v10348_v15, %v1676_v59  ;;  %v10350_v23 = vld [vmem:[#allocation128_spill] sm:$0xff] }
 0x31c   :  { %v8303_v30 = vpop.permute.xlu1 %3022  ;;  %10345 = vst [vmem:[#allocation67_spill] sm:$0xff] %v8307_v0  ;;  %v1693_v28 = vmul.f32 %v10348_v15, %v1677_v12  ;;  %v1716_v29 = vmul.f32 %v10223_v63, %v1676_v59  ;;  %v2797_v20 = vsel %vm2794_vm12, %v7815_v42, %v7825_v27  ;;  %v1717_v61 = vmul.f32 %v10223_v63, %v1677_v12  ;;  %v10351_v0 = vld [vmem:[#allocation69_spill] sm:$0xff] }
 0x31d   :  { %10346 = vst [vmem:[#allocation17_spill] sm:$0xff] %v8312_v44  ;;  %10347 = vst [vmem:[#allocation119_spill] sm:$0xff] %v8315_v11  ;;  %v2826_v43 = vmul.f32 %v10349_v47, %v2799_v35  ;;  %v1747_v56 = vsel %vm1746_vm8, %v7861_v10, %v10350_v23  ;;  %v1749_v15 = vsel %vm1746_vm8, %v10351_v0, %v7861_v10  ;;  %v10352_v59 = vld [vmem:[#allocation29_spill] sm:$0xff]  ;;  %v10354_v47 = vld [vmem:[#allocation124_spill] sm:$0xff] }
 0x31e   :  { %v1696_v11 = vmul.f32 %v10352_v59, %v1680_v33  ;;  %v1697_v9 = vmul.f32 %v10352_v59, %v1681_v19  ;;  %v1720_v42 = vmul.f32 %v7353_v14, %v1680_v33  ;;  %v8341_v63 = vrot.slane %v7811_v39, %v7951_v7  ;;  %v10355_v0 = vld [vmem:[#allocation77_spill] sm:$0xff] }
 0x31f   :  { %v1721_v12 = vmul.f32 %v7353_v14, %v1681_v19  ;;  %v2827_v35 = vmul.f32 %v7657_v21, %v2797_v20  ;;  %v1748_v10 = vsel %vm1746_vm8, %v7873_v36, %v10354_v47  ;;  %v1750_v33 = vsel %vm1746_vm8, %v10355_v0, %v7873_v36  ;;  %v8358_v20 = vpop.permute.xlu0 %2582  ;;  %v10365_v0 = vld [vmem:[#allocation181_spill] sm:$0xff]  ;;  %vm10427_vm8 = vmmov %vm10424_vm7 }
 0x320   :  { %v8337_v44 = vpop.permute.xlu1 %3026  ;;  %10353 = vst [vmem:[#allocation91_spill] sm:$0xff] %v8341_v63  ;;  %v1700_v23 = vadd.f32 %v1692_v24, %v1620_v40  ;;  %v1701_v59 = vadd.f32 %v1693_v28, %v1621_v3  ;;  %v1780_v38 = vmul.f32 %v8106_v50, %v1749_v15  ;;  %v1781_v63 = vmul.f32 %v8137_v57, %v1747_v56  ;;  %v10357_v24 = vld [vmem:[#allocation31_spill] sm:$0xff] }
 0x321   :  { %v1724_v14 = vadd.f32 %v1716_v29, %v8134_v51  ;;  %v1725_v21 = vadd.f32 %v1717_v61, %v8151_v58  ;;  %v2842_v19 = vmul.f32 %v7723_v48, %v2826_v43  ;;  %v8362_v47 = vrot.slane %v7811_v39, %v7948_v31  ;;  %v5794_v43 = vld [vmem:[#allocation5 + $0x23] ss:$8 sm:$0xf] }
 0x322   :  { %v1704_v25 = vadd.f32 %v1696_v11, %v1624_v4  ;;  %v1705_v36 = vadd.f32 %v1697_v9, %v1625_v53  ;;  %v1784_v40 = vmul.f32 %v8106_v50, %v1750_v33  ;;  %v1785_v3 = vmul.f32 %v8137_v57, %v1748_v10  ;;  %v10358_v50 = vld [vmem:[#allocation51_spill] sm:$0xff]  ;;  %v10359_v57 = vld [vmem:[#allocation184_spill] sm:$0xff]  ;;  %v10360_v11 = vld [vmem:[#allocation190_spill] sm:$0xff] }
 0x323   :  { %10356 = vst [vmem:[#allocation74_spill] sm:$0xff] %v8362_v47  ;;  %v1728_v51 = vadd.f32 %v1720_v42, %v8091_v5  ;;  %v1729_v58 = vadd.f32 %v1721_v12, %v8095_v1  ;;  %v2843_v29 = vmul.f32 %v7723_v48, %v2827_v35  ;;  %v2879_v39 = vsel %vm2874_vm10, %v7914_v16, %v7923_v46  ;;  %v10362_v42 = vld [vmem:[#allocation28_spill] sm:$0xff]  ;;  %v10364_v10 = vld [vmem:[#allocation81_spill] sm:$0xff]  ;;  %v10369_v47 = vld [vmem:[#allocation187_spill] sm:$0xff]  ;;  %v8406_v48 = vpop.permute.xlu0 %2686 }
 0x324   :  { %v8366_v28 = vpop.permute.xlu1 %3155  ;;  %v1796_v4 = vmul.f32 %v10357_v24, %v1780_v38  ;;  %v1797_v9 = vmul.f32 %v10357_v24, %v1781_v63  ;;  %v1820_v53 = vmul.f32 %v10358_v50, %v1780_v38  ;;  %v2877_v5 = vsel %vm2874_vm10, %v7923_v46, %v10359_v57  ;;  %v10363_v35 = vld [vmem:[#allocation164_spill] sm:$0xff] }
 0x325   :  { %v2850_v1 = vadd.f32 %v2842_v19, %v10360_v11  ;;  %v1821_v61 = vmul.f32 %v10358_v50, %v1781_v63  ;;  %v8385_v56 = vrot.slane %v5794_v43, %v7948_v31  ;;  %v8388_v15 = vrot.slane %v5794_v43, %v7951_v7  ;;  %v10367_v63 = vld [vmem:[#allocation111_spill] sm:$0xff] }
 0x326   :  { %v1800_v12 = vmul.f32 %v10362_v42, %v1784_v40  ;;  %v1801_v38 = vmul.f32 %v10362_v42, %v1785_v3  ;;  %v2219_v46 = vsel %vm2218_vm14, %v10364_v10, %v10363_v35  ;;  %v2906_v33 = vmul.f32 %v10365_v0, %v2879_v39  ;;  %v10368_v11 = vld [vmem:[#allocation47_spill] sm:$0xff] }
 0x327   :  { %10361 = vst [vmem:[#allocation20_spill] sm:$0xff] %v8388_v15  ;;  %v1824_v24 = vmul.f32 %v10367_v63, %v1784_v40  ;;  %v1825_v50 = vmul.f32 %v10367_v63, %v1785_v3  ;;  %v2225_v43 = vsel %vm2218_vm14, %v10363_v35, %v10368_v11  ;;  %v2907_v42 = vmul.f32 %v10369_v47, %v2877_v5  ;;  %v10371_v40 = vld [vmem:[#allocation97_spill] sm:$0xff]  ;;  %v10372_v15 = vld [vmem:[#allocation199_spill] sm:$0xff]  ;;  %v10373_v63 = vld [vmem:[#allocation58_spill] sm:$0xff] }
 0x328   :  { %v8397_v19 = vpop.permute.xlu1 %2026  ;;  %v2851_v55 = vadd.f32 %v2843_v29, %v10370_v32  ;;  %v1804_v10 = vadd.f32 %v1796_v4, %v1700_v23  ;;  %v1805_v22 = vadd.f32 %v1797_v9, %v1701_v59  ;;  %v1828_v39 = vadd.f32 %v1820_v53, %v1724_v14  ;;  %v10374_v23 = vld [vmem:[#allocation151_spill] sm:$0xff]  ;;  %v10375_v4 = vld [vmem:[#allocation62_spill] sm:$0xff] }
 0x329   :  { %10366 = vst [vmem:[#allocation22_spill] sm:$0xff] %v8397_v19  ;;  %v1829_v0 = vadd.f32 %v1821_v61, %v1725_v21  ;;  %v2252_v19 = vmul.f32 %v8154_v8, %v2219_v46  ;;  %v1851_v3 = vsel %vm1850_vm11, %v10372_v15, %v10371_v40  ;;  %v1853_v47 = vsel %vm1850_vm11, %v10373_v63, %v10372_v15  ;;  %v10376_v61 = vld [vmem:[#allocation138_spill] sm:$0xff]  ;;  %v10379_v46 = vld [vmem:[#allocation39_spill] sm:$0xff]  ;;  %v10402_v8 = vld [vmem:[#allocation116_spill] sm:$0xff] }
 0x32a   :  { %v8418_v5 = vadd.f32 %v1800_v12, %v1704_v25  ;;  %v8420_v35 = vadd.f32 %v1801_v38, %v1705_v36  ;;  %v2253_v32 = vmul.f32 %v8157_v54, %v2225_v43  ;;  %v2922_v59 = vmul.f32 %v10374_v23, %v2906_v33  ;;  %v10377_v12 = vld [vmem:[#allocation133_spill] sm:$0xff] }
 0x32b   :  { %v8426_v21 = vadd.f32 %v1824_v24, %v1728_v51  ;;  %v8428_v29 = vadd.f32 %v1825_v50, %v1729_v58  ;;  %v8432_v9 = vmul.f32 %v8141_v26, %v10375_v4  ;;  %v2923_v53 = vmul.f32 %v10374_v23, %v2907_v42  ;;  %v10378_v58 = vld [vmem:[#allocation162_spill] sm:$0xff]  ;;  %v8452_v24 = vpop.permute.xlu0 %2790 }
 0x32c   :  { %v8424_v14 = vpop.permute.xlu1 %2028  ;;  %v1884_v25 = vmul.f32 %v8162_v60, %v1853_v47  ;;  %v1885_v36 = vmul.f32 %v8173_v17, %v1851_v3  ;;  %v2403_v15 = vsel %vm2402_vm0, %v10376_v61, %v8251_v2  ;;  %v2409_v51 = vsel %vm2402_vm0, %v8251_v2, %v10377_v12  ;;  %v5795_v50 = vld [vmem:[#allocation5 + $0x26] ss:$8 sm:$0xf] }
 0x32d   :  { %v8447_v38 = vmul.f32 %v8145_v45, %v10378_v58  ;;  %v8450_v33 = vmul.f32 %v10379_v46, %v2252_v19  ;;  %v8455_v11 = vrot.slane %v5795_v50, %v7948_v31  ;;  %v8458_v43 = vrot.slane %v5795_v50, %v7951_v7  ;;  %v10384_v2 = vld [vmem:[#allocation110_spill] sm:$0xff]  ;;  %v10386_v61 = vld [vmem:[#allocation149_spill] sm:$0xff]  ;;  %v10388_v58 = vld [vmem:[#allocation108_spill] sm:$0xff] }
 0x32e   :  { %v8461_v42 = vmul.f32 %v10379_v46, %v2253_v32  ;;  %v8464_v40 = vmul.f32 %v10384_v2, %v2252_v19  ;;  %v8467_v3 = vmul.f32 %v10384_v2, %v2253_v32  ;;  %v2930_v63 = vadd.f32 %v2922_v59, %v2850_v1  ;;  %v10387_v12 = vld [vmem:[#allocation117_spill] sm:$0xff]  ;;  %v10389_v32 = vld [vmem:[#allocation30_spill] sm:$0xff]  ;;  %v10390_v59 = vld [vmem:[#allocation12_spill] sm:$0xff] }
 0x32f   :  { %10380 = vst [vmem:[#allocation89_spill] sm:$0xff] %v8450_v33  ;;  %10381 = vst [vmem:[#allocation105_spill] sm:$0xff] %v8455_v11  ;;  %v2436_v4 = vmul.f32 %v8176_v34, %v2403_v15  ;;  %v2437_v31 = vmul.f32 %v8185_v41, %v2409_v51  ;;  %v1852_v7 = vsel %vm1850_vm11, %v10387_v12, %v10386_v61  ;;  %v10391_v51 = vld [vmem:[#allocation156_spill] sm:$0xff] }
 0x330   :  { %10382 = vst [vmem:[#allocation54_spill] sm:$0xff] %v8458_v43  ;;  %10383 = vst [vmem:[#allocation19_spill] sm:$0xff] %v8461_v42  ;;  %v8469_v47 = vpop.permute.xlu1 %2759  ;;  %v1854_v19 = vsel %vm1850_vm11, %v10388_v58, %v10387_v12  ;;  %v2931_v46 = vadd.f32 %v2923_v53, %v2851_v55  ;;  %v1900_v50 = vmul.f32 %v10389_v32, %v1884_v25  ;;  %v10392_v61 = vld [vmem:[#allocation96_spill] sm:$0xff]  ;;  %v10394_v12 = vld [vmem:[#allocation90_spill] sm:$0xff]  ;;  %vm10440_vm11 = vcmp.lt.s32.totalorder %v6534_v52, 14 }
 0x331   :  { %10385 = vst [vmem:[#allocation143_spill] sm:$0xff] %v8469_v47  ;;  %v1901_v1 = vmul.f32 %v10389_v32, %v1885_v36  ;;  %v2959_v15 = vsel %vm2954_vm1, %v10390_v59, %v8053_v6  ;;  %v1924_v2 = vmul.f32 %v10391_v51, %v1884_v25  ;;  %v1925_v41 = vmul.f32 %v10391_v51, %v1885_v36  ;;  %v10395_v32 = vld [vmem:[#allocation95_spill] sm:$0xff]  ;;  %v10406_v42 = vld [vmem:[#allocation33_spill] sm:$0xff] }
 0x332   :  { %v2483_v34 = vsel %vm10393_vm2, %v10392_v61, %v8309_v18  ;;  %v2957_v55 = vsel %vm2954_vm1, %v8053_v6, %v10394_v12  ;;  %v1888_v53 = vmul.f32 %v8162_v60, %v1854_v19  ;;  %v1889_v58 = vmul.f32 %v8173_v17, %v1852_v7  ;;  %v10398_v61 = vld [vmem:[#allocation43_spill] sm:$0xff]  ;;  %v10401_v60 = vld [vmem:[#allocation185_spill] sm:$0xff]  ;;  %v8516_v7 = vpop.permute.xlu0 %2870  ;;  %vm10444_vm2 = vmmov %vm10440_vm11 }
 0x333   :  { %v2489_v25 = vsel %vm10396_vm3, %v8309_v18, %v10395_v32  ;;  %v3039_v36 = vsel %vm3034_vm13, %v8268_v13, %v8303_v30  ;;  %v8510_v54 = vmul.f32 %v10398_v61, %v2436_v4  ;;  %v8513_v6 = vmul.f32 %v10398_v61, %v2437_v31  ;;  %v10403_v4 = vld [vmem:[#allocation193_spill] sm:$0xff] }
 0x334   :  { %v8507_v51 = vpop.permute.xlu1 %3098  ;;  %v2986_v17 = vmul.f32 %v10401_v60, %v2959_v15  ;;  %v3037_v18 = vsel %vm3034_vm13, %v8303_v30, %v8337_v44  ;;  %v8522_v19 = vadd.f32 %v1900_v50, %v1804_v10  ;;  %v8524_v32 = vadd.f32 %v1901_v1, %v1805_v22  ;;  %v10404_v15 = vld [vmem:[#allocation15_spill] sm:$0xff]  ;;  %v10407_v10 = vld [vmem:[#allocation173_spill] sm:$0xff] }
 0x335   :  { %10397 = vst [vmem:[#allocation158_spill] sm:$0xff] %v8507_v51  ;;  %10399 = vst [vmem:[#allocation98_spill] sm:$0xff] %v8510_v54  ;;  %v2516_v43 = vmul.f32 %v10402_v8, %v2483_v34  ;;  %v2987_v54 = vmul.f32 %v10403_v4, %v2957_v55  ;;  %v8528_v11 = vadd.f32 %v1924_v2, %v1828_v39  ;;  %v10405_v60 = vld [vmem:[#allocation195_spill] sm:$0xff]  ;;  %v10409_v34 = vld [vmem:[#allocation165_spill] sm:$0xff]  ;;  %vm10446_vm3 = vcmp.lt.s32.totalorder %v6534_v52, 1 }
 0x336   :  { %10400 = vst [vmem:[#allocation127_spill] sm:$0xff] %v8513_v6  ;;  %v8530_v31 = vadd.f32 %v1925_v41, %v1829_v0  ;;  %v2517_v61 = vmul.f32 %v10404_v15, %v2489_v25  ;;  %v3066_v6 = vmul.f32 %v10405_v60, %v3039_v36  ;;  %v1904_v33 = vmul.f32 %v10406_v42, %v1888_v53  ;;  %v10408_v22 = vld [vmem:[#allocation147_spill] sm:$0xff]  ;;  %v10411_v41 = vld [vmem:[#allocation160_spill] sm:$0xff]  ;;  %v10413_v2 = vld [vmem:[#allocation38_spill] sm:$0xff] }
 0x337   :  { %v1905_v30 = vmul.f32 %v10406_v42, %v1889_v58  ;;  %v1928_v50 = vmul.f32 %v10407_v10, %v1888_v53  ;;  %v3067_v1 = vmul.f32 %v10408_v22, %v3037_v18  ;;  %v2587_v39 = vsel %vm10410_vm4, %v10409_v34, %v8358_v20  ;;  %v10415_v25 = vld [vmem:[#allocation140_spill] sm:$0xff]  ;;  %v10417_v4 = vld [vmem:[#allocation103_spill] sm:$0xff]  ;;  %v10419_v34 = vld [vmem:[#allocation169_spill] sm:$0xff] }
 0x338   :  { %v3103_v47 = vpop.permute.xlu1 %3102  ;;  %v2593_v0 = vsel %vm10412_vm5, %v8358_v20, %v10411_v41  ;;  %v3002_v55 = vmul.f32 %v10413_v2, %v2986_v17  ;;  %v1929_v53 = vmul.f32 %v10407_v10, %v1889_v58  ;;  %v8552_v36 = vmul.f32 %v10415_v25, %v2516_v43  ;;  %v2951_v41 = vpop.permute.xlu0 %2950  ;;  %v10420_v15 = vld [vmem:[#allocation107_spill] sm:$0xff]  ;;  %vm10448_vm4 = vmmov %vm10446_vm3 }
 0x339   :  { %v3119_v42 = vsel %vm10414_vm6, %v8507_v51, %v3103_v47  ;;  %v3003_v18 = vmul.f32 %v10413_v2, %v2987_v54  ;;  %v8557_v22 = vmul.f32 %v10415_v25, %v2517_v61  ;;  %v8560_v20 = vmul.f32 %v10419_v34, %v2516_v43  ;;  %v10421_v58 = vld [vmem:[#allocation11_spill] sm:$0xff]  ;;  %v10422_v51 = vld [vmem:[#allocation118_spill] sm:$0xff]  ;;  %v10423_v54 = vld [vmem:[#allocation188_spill] sm:$0xff] }
 0x33a   :  { %10416 = vst [vmem:[#allocation170_spill] sm:$0xff] %v8552_v36  ;;  %v3146_v60 = vmul.f32 %v10417_v4, %v3119_v42  ;;  %v8563_v17 = vmul.f32 %v10419_v34, %v2517_v61  ;;  %v3082_v8 = vmul.f32 %v10420_v15, %v3066_v6  ;;  %v2620_v10 = vmul.f32 %v10421_v58, %v2587_v39  ;;  %v10426_v43 = vld [vmem:[#allocation177_spill] sm:$0xff]  ;;  %vm10456_vm5 = vmmov %vm10444_vm2 }
 0x33b   :  { %10418 = vst [vmem:[#allocation68_spill] sm:$0xff] %v8557_v22  ;;  %v2621_v36 = vmul.f32 %v10422_v51, %v2593_v0  ;;  %v2691_v42 = vsel %vm10424_vm7, %v10423_v54, %v8406_v48  ;;  %v3083_v25 = vmul.f32 %v10420_v15, %v3067_v1  ;;  %v2697_v61 = vsel %vm10427_vm8, %v8406_v48, %v10426_v43  ;;  %v10429_v51 = vld [vmem:[#allocation45_spill] sm:$0xff]  ;;  %v10433_v43 = vld [vmem:[#allocation100_spill] sm:$0xff]  ;;  %vm10458_vm6 = vmmov %vm10444_vm2 }
 0x33c   :  { %v8573_v4 = vpop.permute.xlu1 %3106  ;;  %v3010_v34 = vadd.f32 %v3002_v55, %v2930_v63  ;;  %v3162_v6 = vmul.f32 %v8366_v28, %v3146_v60  ;;  %v8584_v0 = vadd.f32 %v1904_v33, %v8418_v5  ;;  %v8587_v54 = vadd.f32 %v1905_v30, %v8420_v35  ;;  %v10432_v63 = vld [vmem:[#allocation61_spill] sm:$0xff] }
 0x33d   :  { %10425 = vst [vmem:[#allocation21_spill] sm:$0xff] %v8573_v4  ;;  %v3117_v39 = vsel %vm10428_vm9, %v3103_v47, %v8573_v4  ;;  %v3011_v1 = vadd.f32 %v3003_v18, %v2931_v46  ;;  %v8591_v22 = vadd.f32 %v1928_v50, %v8426_v21  ;;  %v8594_v48 = vadd.f32 %v1929_v53, %v8428_v29  ;;  %v10435_v5 = vld [vmem:[#allocation13_spill] sm:$0xff]  ;;  %v8607_v21 = vpop.permute.xlu0 %3030  ;;  %v10437_v50 = vld [vmem:[#allocation186_spill] sm:$0xff] }
 0x33e   :  { %v3147_v58 = vmul.f32 %v10429_v51, %v3117_v39  ;;  %v2724_v55 = vmul.f32 %v10432_v63, %v2691_v42  ;;  %v3090_v60 = vadd.f32 %v3082_v8, %v3010_v34  ;;  %v8598_v47 = vmul.f32 %v10433_v43, %v2620_v10  ;;  %v10439_v42 = vld [vmem:[#allocation71_spill] sm:$0xff]  ;;  %v10441_v34 = vld [vmem:[#allocation168_spill] sm:$0xff] }
 0x33f   :  { %10430 = vst [vmem:[#allocation24_spill] sm:$0xff] %v8591_v22  ;;  %10431 = vst [vmem:[#allocation121_spill] sm:$0xff] %v8594_v48  ;;  %v2725_v33 = vmul.f32 %v10435_v5, %v2697_v61  ;;  %v3091_v4 = vadd.f32 %v3083_v25, %v3011_v1  ;;  %v8605_v51 = vmul.f32 %v10433_v43, %v2621_v36  ;;  %v10462_v5 = vld [vmem:[#allocation18_spill] sm:$0xff]  ;;  %vm10468_vm7 = vcmp.lt.s32.totalorder %v6534_v52, 2 }
 0x340   :  { %10434 = vst [vmem:[#allocation172_spill] sm:$0xff] %v8598_v47  ;;  %v3163_v35 = vmul.f32 %v8366_v28, %v3147_v58  ;;  %v8602_v46 = vpop.permute.xlu1 %3235  ;;  %v3170_v29 = vadd.f32 %v3162_v6, %v3090_v60  ;;  %v8614_v53 = vmul.f32 %v10437_v50, %v2620_v10  ;;  %v8617_v18 = vmul.f32 %v10437_v50, %v2621_v36  ;;  %v10438_v58 = vld [vmem:[#allocation72_spill] sm:$0xff]  ;;  %v10465_v48 = vld [vmem:[#allocation194_spill] sm:$0xff]  ;;  %vm10475_vm8 = vmmov %vm10468_vm7 }
 0x341   :  { %10436 = vst [vmem:[#allocation76_spill] sm:$0xff] %v8605_v51  ;;  %v3242_v30 = vmul.f32 %v8602_v46, %v8432_v9  ;;  %v3243_v8 = vmul.f32 %v8602_v46, %v8447_v38  ;;  %v1957_v25 = vsel %vm10440_vm11, %v10439_v42, %v10438_v58  ;;  %v8624_v6 = vmul.f32 %v10441_v34, %v2724_v55  ;;  %v10443_v38 = vld [vmem:[#allocation130_spill] sm:$0xff]  ;;  %vm10486_vm9 = vmmov %vm10468_vm7 }
 0x342   :  { %v3171_v61 = vadd.f32 %v3163_v35, %v3091_v4  ;;  %v2795_v9 = vsel %vm2794_vm12, %v7825_v27, %v8452_v24  ;;  %v1955_v36 = vsel %vm10444_vm2, %v10438_v58, %v10443_v38  ;;  %v2801_v4 = vsel %vm2794_vm12, %v8452_v24, %v7808_v62  ;;  %v10445_v62 = vld [vmem:[#allocation132_spill] sm:$0xff]  ;;  %v10451_v58 = vld [vmem:[#allocation86_spill] sm:$0xff]  ;;  %v10453_v38 = vld [vmem:[#allocation141_spill] sm:$0xff] }
 0x343   :  { %10442 = vst [vmem:[#allocation161_spill] sm:$0xff] %v8624_v6  ;;  %v8634_v10 = vadd.f32 %v3242_v30, %v3170_v29  ;;  %v2875_v39 = vsel %vm2874_vm10, %v10359_v57, %v8516_v7  ;;  %v2881_v27 = vsel %vm2874_vm10, %v8516_v7, %v7914_v16  ;;  %v2955_v43 = vsel %vm2954_vm1, %v10394_v12, %v2951_v41  ;;  %v10447_v29 = vld [vmem:[#allocation73_spill] sm:$0xff]  ;;  %v10449_v12 = vld [vmem:[#allocation20_spill] sm:$0xff]  ;;  %v10464_v6 = vld [vmem:[#allocation27_spill] sm:$0xff] }
 0x344   :  { %v2107_v1 = vpop.permute.xlu1 %2106  ;;  %v8648_v60 = vadd.f32 %v3243_v8, %v3171_v61  ;;  %v1988_v35 = vmul.f32 %v8266_v49, %v1957_v25  ;;  %v2961_v16 = vsel %vm2954_vm1, %v2951_v41, %v10390_v59  ;;  %v1989_v7 = vmul.f32 %v8283_v37, %v1955_v36  ;;  %v10452_v25 = vld [vmem:[#allocation52_spill] sm:$0xff]  ;;  %v10454_v59 = vld [vmem:[#allocation126_spill] sm:$0xff]  ;;  %v10455_v41 = vld [vmem:[#allocation123_spill] sm:$0xff] }
 0x345   :  { %v2115_v24 = vsel %vm10446_vm3, %v2107_v1, %v10445_v62  ;;  %v2117_v57 = vsel %vm10448_vm4, %v10447_v29, %v2107_v1  ;;  %v8671_v50 = vmul.f32 %v10441_v34, %v2725_v33  ;;  %v2828_v42 = vmul.f32 %v10451_v58, %v2795_v9  ;;  %v8676_v62 = vpop.permute.xlu0 %3110  ;;  %v10457_v29 = vld [vmem:[#allocation78_spill] sm:$0xff]  ;;  %v10459_v34 = vld [vmem:[#allocation75_spill] sm:$0xff]  ;;  %vm10491_vm11 = vmmov %vm10468_vm7 }
 0x346   :  { %v8665_v30 = vmul.f32 %v8385_v56, %v2117_v57  ;;  %v8668_v8 = vmul.f32 %v10449_v12, %v2115_v24  ;;  %v2829_v61 = vmul.f32 %v10452_v25, %v2801_v4  ;;  %v2908_v1 = vmul.f32 %v10453_v38, %v2875_v39  ;;  %v10460_v39 = vld [vmem:[#allocation153_spill] sm:$0xff]  ;;  %v10461_v25 = vld [vmem:[#allocation94_spill] sm:$0xff] }
 0x347   :  { %10450 = vst [vmem:[#allocation174_spill] sm:$0xff] %v8671_v50  ;;  %v1956_v36 = vsel %vm10456_vm5, %v10455_v41, %v10454_v59  ;;  %v1958_v24 = vsel %vm10458_vm6, %v10457_v29, %v10455_v41  ;;  %v2909_v38 = vmul.f32 %v10460_v39, %v2881_v27  ;;  %v2988_v58 = vmul.f32 %v10461_v25, %v2955_v43  ;;  %v10463_v59 = vld [vmem:[#allocation35_spill] sm:$0xff]  ;;  %vm10513_vm5 = vmmov %vm10446_vm3 }
 0x348   :  { %v2188_v57 = vmul.f32 %v10459_v34, %v8665_v30  ;;  %v2189_v9 = vmul.f32 %v10459_v34, %v8668_v8  ;;  %v8690_v4 = vpop.permute.xlu1 %2108  ;;  %v2989_v63 = vmul.f32 %v10462_v5, %v2961_v16  ;;  %v2004_v50 = vmul.f32 %v10463_v59, %v1988_v35 }
 0x349   :  { %v2764_v51 = vmul.f32 %v10464_v6, %v2724_v55  ;;  %v2005_v41 = vmul.f32 %v10463_v59, %v1989_v7  ;;  %v2765_v34 = vmul.f32 %v10464_v6, %v2725_v33  ;;  %v8702_v22 = vmul.f32 %v10465_v48, %v2828_v42  ;;  %v10466_v42 = vld [vmem:[#allocation22_spill] sm:$0xff]  ;;  %v10476_v59 = vld [vmem:[#allocation155_spill] sm:$0xff] }
 0x34a   :  { %v2196_v29 = vadd.f32 %v2188_v57, %v8528_v11  ;;  %v2197_v47 = vadd.f32 %v2189_v9, %v8530_v31  ;;  %v1992_v27 = vmul.f32 %v8266_v49, %v1958_v24  ;;  %v1993_v43 = vmul.f32 %v8283_v37, %v1956_v36  ;;  %v10474_v24 = vld [vmem:[#allocation101_spill] sm:$0xff] }
 0x34b   :  { %v8707_v16 = vmul.f32 %v10465_v48, %v2829_v61  ;;  %v8710_v55 = vmul.f32 %v10374_v23, %v2908_v1  ;;  %v8717_v33 = vmul.f32 %v10374_v23, %v2909_v38  ;;  %v8720_v6 = vmul.f32 %v10413_v2, %v2988_v58  ;;  %v3191_v48 = vpop.permute.xlu0 %3190  ;;  %v10469_v61 = vld [vmem:[#allocation32_spill] sm:$0xff] }
 0x34c   :  { %v2300_v35 = vadd.f32 %v8464_v40, %v2196_v29  ;;  %v2301_v11 = vadd.f32 %v8467_v3, %v2197_v47  ;;  %v8714_v31 = vpop.permute.xlu1 %3180  ;;  %v8723_v37 = vmul.f32 %v10413_v2, %v2989_v63  ;;  %v2012_v49 = vadd.f32 %v2004_v50, %v8522_v19  ;;  %v10467_v40 = vld [vmem:[#allocation60_spill] sm:$0xff]  ;;  %v10470_v2 = vld [vmem:[#allocation182_spill] sm:$0xff]  ;;  %v10472_v19 = vld [vmem:[#allocation189_spill] sm:$0xff] }
 0x34d   :  { %v2013_v7 = vadd.f32 %v2005_v41, %v8524_v32  ;;  %v2037_v3 = vsel %vm10468_vm7, %v10467_v40, %v10466_v42  ;;  %v2008_v58 = vmul.f32 %v10469_v61, %v1992_v27  ;;  %v2009_v38 = vmul.f32 %v10469_v61, %v1993_v43  ;;  %v10471_v63 = vld [vmem:[#allocation46_spill] sm:$0xff]  ;;  %v10477_v27 = vld [vmem:[#allocation17_spill] sm:$0xff]  ;;  %v10480_v61 = vld [vmem:[#allocation63_spill] sm:$0xff] }
 0x34e   :  { %v2564_v47 = vadd.f32 %v8560_v20, %v2300_v35  ;;  %v2565_v23 = vadd.f32 %v8563_v17, %v2301_v11  ;;  %v2662_v1 = vmul.f32 %v10471_v63, %v10470_v2  ;;  %v2663_v50 = vmul.f32 %v10471_v63, %v10472_v19  ;;  %v10473_v32 = vld [vmem:[#allocation50_spill] sm:$0xff]  ;;  %v10481_v19 = vld [vmem:[#allocation55_spill] sm:$0xff] }
 0x34f   :  { %v3195_v36 = vsel %vm3194_vm15, %v10473_v32, %v3191_v48  ;;  %v2035_v20 = vsel %vm10475_vm8, %v10466_v42, %v10474_v24  ;;  %v3201_v41 = vsel %vm3194_vm15, %v3191_v48, %v10476_v59  ;;  %v3041_v29 = vsel %vm3034_vm13, %v8607_v21, %v8268_v13  ;;  %v10478_v40 = vld [vmem:[#allocation14_spill] sm:$0xff] }
 0x350   :  { %v2668_v17 = vadd.f32 %v8614_v53, %v2564_v47  ;;  %v2669_v57 = vadd.f32 %v8617_v18, %v2565_v23  ;;  %v3185_v9 = vpop.permute.xlu1 %3184  ;;  %v2068_v43 = vmul.f32 %v10477_v27, %v2037_v3  ;;  %v3035_v53 = vsel %vm3034_vm13, %v8337_v44, %v8607_v21  ;;  %v10479_v47 = vld [vmem:[#allocation119_spill] sm:$0xff] }
 0x351   :  { %v3200_v35 = vsel %vm3194_vm15, %v8714_v31, %v3185_v9  ;;  %v8765_v42 = vadd.f32 %v2008_v58, %v8584_v0  ;;  %v8768_v13 = vadd.f32 %v2009_v38, %v8587_v54  ;;  %v8771_v3 = vmul.f32 %v10478_v40, %v3195_v36  ;;  %v10483_v0 = vld [vmem:[#allocation67_spill] sm:$0xff]  ;;  %v10484_v58 = vld [vmem:[#allocation34_spill] sm:$0xff]  ;;  %v10485_v38 = vld [vmem:[#allocation113_spill] sm:$0xff] }
 0x352   :  { %v3230_v18 = vmul.f32 %v8141_v26, %v3200_v35  ;;  %v2772_v11 = vadd.f32 %v2764_v51, %v2668_v17  ;;  %v2773_v48 = vadd.f32 %v2765_v34, %v2669_v57  ;;  %v2069_v23 = vmul.f32 %v10479_v47, %v2035_v20  ;;  %v10482_v26 = vld [vmem:[#allocation167_spill] sm:$0xff]  ;;  %v10487_v20 = vld [vmem:[#allocation114_spill] sm:$0xff] }
 0x353   :  { %v3069_v2 = vmul.f32 %v10480_v61, %v3041_v29  ;;  %v3068_v34 = vmul.f32 %v10483_v0, %v3035_v53  ;;  %v2084_v54 = vmul.f32 %v10484_v58, %v2068_v43  ;;  %v2038_v36 = vsel %vm10486_vm9, %v10485_v38, %v8424_v14  ;;  %v10490_v43 = vld [vmem:[#allocation150_spill] sm:$0xff] }
 0x354   :  { %v3246_v32 = vmul.f32 %v10481_v19, %v3230_v18  ;;  %v8776_v44 = vpop.permute.xlu1 %3188  ;;  %v3268_v51 = vadd.f32 %v10482_v26, %v2772_v11  ;;  %v3269_v21 = vadd.f32 %v10482_v26, %v2773_v48  ;;  %v2085_v35 = vmul.f32 %v10484_v58, %v2069_v23  ;;  %v10492_v18 = vld [vmem:[#allocation183_spill] sm:$0xff]  ;;  %v10496_v58 = vld [vmem:[#allocation125_spill] sm:$0xff] }
 0x355   :  { %v3198_v24 = vsel %vm3194_vm15, %v3185_v9, %v8776_v44  ;;  %v2036_v53 = vsel %vm10491_vm11, %v8424_v14, %v10490_v43  ;;  %v10493_v11 = vld [vmem:[#allocation143_spill] sm:$0xff]  ;;  %v8814_v14 = vmul.f32 %v10496_v58, %v3201_v41  ;;  %vm10501_vm2 = vcmp.lt.s32.totalorder %v6534_v52, 95 }
 0x356   :  { %v3254_v17 = vadd.f32 %v3246_v32, %v10487_v20  ;;  %v3231_v57 = vmul.f32 %v8145_v45, %v3198_v24  ;;  %v8791_v59 = vmax.f32 %v3268_v51, 0.0  ;;  %v8793_v29 = vmax.f32 %v3269_v21, 0.0  ;;  %v10494_v26 = vld [vmem:[#allocation191_spill] sm:$0xff]  ;;  %vm10508_vm4 = vmmov %vm10501_vm2 }
 0x357   :  { %v2766_v48 = vmul.f32 %v10493_v11, %v10492_v18  ;;  %v2767_v9 = vmul.f32 %v10493_v11, %v10494_v26  ;;  %v2072_v32 = vmul.f32 %v10477_v27, %v2038_v36  ;;  %v10495_v45 = vld [vmem:[#allocation139_spill] sm:$0xff]  ;;  %v8817_v24 = vmul.f32 %v10420_v15, %v3069_v2  ;;  %v10498_v18 = vld [vmem:[#allocation134_spill] sm:$0xff]  ;;  %v10499_v26 = vld [vmem:[#allocation144_spill] sm:$0xff] }
 0x358   :  { %10488 = vst [vmem:[#allocation176_spill] sm:$0xff] %v8791_v59  ;;  %10489 = vst [vmem:[#allocation178_spill] sm:$0xff] %v8793_v29  ;;  %v3294_v51 = vadd.f32 %v10495_v45, %v3254_v17  ;;  %v3247_v21 = vmul.f32 %v10481_v19, %v3231_v57  ;;  %v8807_v38 = vpop.permute.xlu1 %2216  ;;  %v8811_v23 = vadd.f32 %v8793_v29, %v8791_v59  ;;  %v10497_v20 = vld [vmem:[#allocation83_spill] sm:$0xff]  ;;  %v10500_v29 = vld [vmem:[#allocation158_spill] sm:$0xff]  ;;  %vm10520_vm6 = vcmp.lt.s32.totalorder %v6534_v52, 126 }
 0x359   :  { %v2670_v43 = vadd.f32 %v2662_v1, %v10497_v20  ;;  %v2671_v27 = vadd.f32 %v2663_v50, %v10498_v18  ;;  %v8822_v36 = vmul.f32 %v10420_v15, %v3068_v34  ;;  %v2073_v17 = vmul.f32 %v10479_v47, %v2036_v53  ;;  %v10502_v1 = vld [vmem:[#allocation37_spill] sm:$0xff]  ;;  %v10503_v50 = vld [vmem:[#allocation40_spill] sm:$0xff]  ;;  %vm10522_vm7 = vmmov %vm10520_vm6 }
 0x35a   :  { %v3302_v57 = vmax.f32 %v3294_v51, 0.0  ;;  %v3255_v19 = vadd.f32 %v3247_v21, %v10499_v26  ;;  %v2092_v59 = vadd.f32 %v2084_v54, %v2012_v49  ;;  %v3121_v41 = vsel %vm10501_vm2, %v8676_v62, %v10500_v29  ;;  %v10512_v18 = vld [vmem:[#allocation129_spill] sm:$0xff]  ;;  %vm10539_vm8 = vmmov %vm10520_vm6 }
 0x35b   :  { %v2774_v2 = vadd.f32 %v2766_v48, %v2670_v43  ;;  %v2775_v58 = vadd.f32 %v2767_v9, %v2671_v27  ;;  %v2093_v40 = vadd.f32 %v2085_v35, %v2013_v7  ;;  %v2088_v20 = vmul.f32 %v10502_v1, %v2072_v32  ;;  %v10505_v35 = vld [vmem:[#allocation91_spill] sm:$0xff]  ;;  %v10507_v32 = vld [vmem:[#allocation21_spill] sm:$0xff] }
 0x35c   :  { %v2164_v15 = vmul.f32 %v10503_v50, %v8665_v30  ;;  %v3295_v34 = vadd.f32 %v10495_v45, %v3255_v19  ;;  %v8834_v47 = vpop.permute.xlu1 %3263  ;;  %v2165_v49 = vmul.f32 %v10503_v50, %v8668_v8  ;;  %v8840_v29 = vand.u32 4294901760, %v3302_v57  ;;  %v10506_v9 = vld [vmem:[#allocation79_spill] sm:$0xff] }
 0x35d   :  { %v3270_v54 = vadd.f32 %v8834_v47, %v2774_v2  ;;  %v3271_v53 = vadd.f32 %v8834_v47, %v2775_v58  ;;  %v2089_v7 = vmul.f32 %v10502_v1, %v2073_v17  ;;  %v3149_v48 = vmul.f32 %v10505_v35, %v3121_v41 }
 0x35e   :  { %10504 = vst [vmem:[#allocation26_spill] sm:$0xff] %v8840_v29  ;;  %v2118_v30 = vsel %vm10446_vm3, %v10506_v9, %v8690_v4  ;;  %v3303_v19 = vmax.f32 %v3295_v34, 0.0  ;;  %v3115_v8 = vsel %vm10508_vm4, %v10507_v32, %v8676_v62  ;;  %v8857_v58 = vsub.f32 %v3302_v57, %v8840_v29  ;;  %v10515_v34 = vld [vmem:[#allocation74_spill] sm:$0xff]  ;;  %v10517_v9 = vld [vmem:[#allocation89_spill] sm:$0xff] }
 0x35f   :  { %v8852_v51 = vmax.f32 %v3270_v54, 0.0  ;;  %v8854_v21 = vmax.f32 %v3271_v53, 0.0  ;;  %v2172_v43 = vadd.f32 %v2164_v15, %v2092_v59  ;;  %v2116_v27 = vsel %vm10513_vm5, %v8690_v4, %v10512_v18  ;;  %v10516_v54 = vld [vmem:[#allocation36_spill] sm:$0xff]  ;;  %v10519_v32 = vld [vmem:[#allocation122_spill] sm:$0xff] }
 0x360   :  { %10511 = vst [vmem:[#allocation23_spill] sm:$0xff] %v8857_v58  ;;  %v8863_v17 = vand.u32 4294901760, %v3303_v19  ;;  %v3328_v26 = vadd.f32 %v3303_v19, %v3302_v57  ;;  %v2173_v41 = vadd.f32 %v2165_v49, %v2093_v40  ;;  %v2152_v2 = vmul.f32 %v8385_v56, %v2118_v30 }
 0x361   :  { %10509 = vst [vmem:[#allocation93_spill] sm:$0xff] %v8852_v51  ;;  %10510 = vst [vmem:[#allocation56_spill] sm:$0xff] %v8854_v21  ;;  %v8866_v62 = vpop.permute.xlu1 %3283  ;;  %v3322_v1 = vadd.f32 %v8854_v21, %v8852_v51  ;;  %v9864_v50 = vand.u32 4294901760, %v8857_v58  ;;  %v2096_v59 = vadd.f32 %v2088_v20, %v8765_v42  ;;  %v2097_v56 = vadd.f32 %v2089_v7, %v8768_v13 }
 0x362   :  { %v3290_v15 = vadd.f32 %v8866_v62, %v8634_v10  ;;  %v3291_v4 = vadd.f32 %v8866_v62, %v8648_v60  ;;  %3496 = vmatprep.subr.mxu0 %v8863_v17  ;;  %v8878_v40 = vsub.f32 %v3303_v19, %v8863_v17  ;;  %v8882_v57 = vmul.f32 %v8366_v28, %v3149_v48  ;;  %v10518_v19 = vld [vmem:[#allocation19_spill] sm:$0xff] }
 0x363   :  { %v3148_v49 = vmul.f32 %v10515_v34, %v3115_v8  ;;  %3323 = vadd.xlane.f32.xlu1 %v3322_v1  ;;  %3498 = vmatpush1.msra.mxu0 %v8840_v29  ;;  %v2153_v10 = vmul.f32 %v10449_v12, %v2116_v27  ;;  %v2168_v53 = vmul.f32 %v10516_v54, %v2152_v2  ;;  %v10521_v12 = vld [vmem:[#allocation65_spill] sm:$0xff]  ;;  %vm10549_vm9 = vcmp.lt.s32.totalorder %v6534_v52, 113 }
 0x364   :  { %10514 = vst [vmem:[#allocation145_spill] sm:$0xff] %v8878_v40  ;;  %v3298_v42 = vmax.f32 %v3290_v15, 0.0  ;;  %v3299_v20 = vmax.f32 %v3291_v4, 0.0  ;;  %v9865_v60 = vand.u32 4294901760, %v8878_v40  ;;  %v2276_v30 = vadd.f32 %v10517_v9, %v2172_v43  ;;  %v10524_v15 = vld [vmem:[#allocation105_spill] sm:$0xff]  ;;  %v10525_v4 = vld [vmem:[#allocation54_spill] sm:$0xff]  ;;  %vm10551_vm11 = vmmov %vm10549_vm9 }
 0x365   :  { %v2277_v13 = vadd.f32 %v10518_v19, %v2173_v41  ;;  %v2319_v7 = vpop.permute.xlu1 %2318  ;;  %v3584_v48 = vsub.f32 %v8857_v58, %v9864_v50  ;;  %v8929_v51 = vmul.f32 %v8366_v28, %v3148_v49  ;;  %vm10570_vm3 = vcmp.lt.s32.totalorder %v6534_v52, 111 }
 0x366   :  { %v2323_v8 = vsel %vm10520_vm6, %v10519_v32, %v2319_v7  ;;  %v2329_v18 = vsel %vm10522_vm7, %v2319_v7, %v10521_v12  ;;  %v3325_v27 = vadd.f32 %v3299_v20, %v3298_v42  ;;  %v8900_v1 = vand.u32 4294901760, %v3299_v20  ;;  %v10527_v32 = vld [vmem:[#allocation137_spill] sm:$0xff]  ;;  %vm10572_vm4 = vmmov %vm10570_vm3 }
 0x367   :  { %v2356_v43 = vmul.f32 %v10524_v15, %v2323_v8  ;;  %v2357_v41 = vmul.f32 %v10525_v4, %v2329_v18  ;;  %4457 = vadd.xlane.f32.xlu1 %v8811_v23  ;;  %v8905_v9 = vand.u32 4294901760, %v3298_v42  ;;  %v3578_v19 = vsub.f32 %v8878_v40, %v9865_v60  ;;  %v10528_v12 = vld [vmem:[#allocation85_spill] sm:$0xff]  ;;  %v10530_v18 = vld [vmem:[#allocation44_spill] sm:$0xff] }
 0x368   :  { %10523 = vst [vmem:[#allocation102_spill] sm:$0xff] %v8900_v1  ;;  %v2220_v7 = vsel %vm2218_vm14, %v10527_v32, %v8807_v38  ;;  %v2226_v8 = vsel %vm2218_vm14, %v8807_v38, %v10528_v12  ;;  %3326 = vadd.xlane.f32.xlu0 %v3325_v27  ;;  %3500 = vmatprep.subr.mxu0 %v8900_v1  ;;  %vm10537_vm14 = vmmov %vm10520_vm6  ;;  %vm3451_vm5 = vcmask 130048  }
 0x369   :  { %10526 = vst [vmem:[#allocation25_spill] sm:$0xff] %v8905_v9  ;;  %v8920_v23 = vsub.f32 %v3299_v20, %v8900_v1  ;;  %v2372_v50 = vmul.f32 %v10530_v18, %v2356_v43  ;;  %v2373_v60 = vmul.f32 %v10530_v18, %v2357_v41  ;;  %v2321_v58 = vpop.permute.xlu1 %2320  ;;  %3502 = vmatpush1.msra.mxu0 %v8905_v9  ;;  %v3579_v29 = vand.u32 4294901760, %v3578_v19  ;;  %v10531_v43 = vld [vmem:[#allocation142_spill] sm:$0xff]  ;;  %v10532_v19 = vld [vmem:[#allocation115_spill] sm:$0xff] }
 0x36a   :  { %v8926_v32 = vsub.f32 %v3298_v42, %v8905_v9  ;;  %v2169_v38 = vmul.f32 %v10516_v54, %v2153_v10  ;;  %3669 = vmatprep.subr.mxu0 %v8878_v40  ;;  %v3585_v20 = vand.u32 4294901760, %v3584_v48  ;;  %v2192_v12 = vmul.f32 %v10531_v43, %v2152_v2  ;;  %v10533_v9 = vld [vmem:[#allocation120_spill] sm:$0xff]  ;;  %v10538_v48 = vld [vmem:[#allocation70_spill] sm:$0xff] }
 0x36b   :  { %10529 = vst [vmem:[#allocation180_spill] sm:$0xff] %v8920_v23  ;;  %v9878_v27 = vand.u32 4294901760, %v8920_v23  ;;  %v2193_v41 = vmul.f32 %v10531_v43, %v2153_v10  ;;  %v2380_v18 = vadd.f32 %v2372_v50, %v2276_v30  ;;  %v2381_v1 = vadd.f32 %v2373_v60, %v2277_v13  ;;  %3580 = vmatprep.subr.mxu1 %v3579_v29  ;;  %v10534_v50 = vld [vmem:[#allocation98_spill] sm:$0xff]  ;;  %v10535_v29 = vld [vmem:[#allocation127_spill] sm:$0xff]  ;;  %v10536_v13 = vld [vmem:[#allocation112_spill] sm:$0xff] }
 0x36c   :  { %v2256_v42 = vmul.f32 %v10532_v19, %v2220_v7  ;;  %v2257_v21 = vmul.f32 %v10533_v9, %v2226_v8  ;;  %3586 = vmatpush1.msra.mxu1 %v3585_v20  ;;  %3329 = vadd.xlane.f32.xlu0 %v3328_v26  ;;  %v3595_v49 = vand.u32 4294901760, %v8926_v32  ;;  %v8944_v2 = vmul.f32 %v8602_v46, %v8771_v3  ;;  %v10541_v20 = vld [vmem:[#allocation170_spill] sm:$0xff]  ;;  %v10543_v19 = vld [vmem:[#allocation121_spill] sm:$0xff]  ;;  %v10546_v40 = vld [vmem:[#allocation76_spill] sm:$0xff] }
 0x36d   :  { %v3590_v28 = vsub.f32 %v8920_v23, %v9878_v27  ;;  %v2176_v10 = vadd.f32 %v2168_v53, %v2096_v59  ;;  %v2460_v60 = vadd.f32 %v10534_v50, %v2380_v18  ;;  %v2461_v54 = vadd.f32 %v10535_v29, %v2381_v1  ;;  %v2401_v30 = vpop.permute.xlu1 %2400  ;;  %v10540_v59 = vld [vmem:[#allocation24_spill] sm:$0xff]  ;;  %v10544_v29 = vld [vmem:[#allocation42_spill] sm:$0xff] }
 0x36e   :  { %v2324_v26 = vsel %vm10537_vm14, %v10536_v13, %v2321_v58  ;;  %v2330_v9 = vsel %vm10539_vm8, %v2321_v58, %v10538_v48  ;;  %v3596_v3 = vsub.f32 %v8926_v32, %v3595_v49  ;;  %v2177_v8 = vadd.f32 %v2169_v38, %v2097_v56  ;;  %v10542_v1 = vld [vmem:[#allocation68_spill] sm:$0xff] }
 0x36f   :  { %v3591_v7 = vand.u32 4294901760, %v3590_v28  ;;  %v2200_v53 = vadd.f32 %v2192_v12, %v10540_v59  ;;  %v2540_v43 = vadd.f32 %v10541_v20, %v2460_v60  ;;  %v2541_v18 = vadd.f32 %v10542_v1, %v2461_v54  ;;  %v10545_v28 = vld [vmem:[#allocation172_spill] sm:$0xff]  ;;  %v10547_v60 = vld [vmem:[#allocation87_spill] sm:$0xff] }
 0x370   :  { %v2201_v50 = vadd.f32 %v2193_v41, %v10543_v19  ;;  %v2272_v13 = vmul.f32 %v10544_v29, %v2256_v42  ;;  %v2273_v27 = vmul.f32 %v10544_v29, %v2257_v21  ;;  %v3597_v58 = vand.u32 4294901760, %v3596_v3  ;;  %v10548_v41 = vld [vmem:[#allocation152_spill] sm:$0xff]  ;;  %v10552_v3 = vld [vmem:[#allocation161_spill] sm:$0xff] }
 0x371   :  { %3592 = vmatprep.subr.mxu1 %v3591_v7  ;;  %v2644_v48 = vadd.f32 %v10545_v28, %v2540_v43  ;;  %v2645_v23 = vadd.f32 %v10546_v40, %v2541_v18  ;;  %v2360_v56 = vmul.f32 %v10524_v15, %v2324_v26  ;;  %v2361_v38 = vmul.f32 %v10525_v4, %v2330_v9  ;;  %v2481_v12 = vpop.permute.xlu1 %2480  ;;  %v10550_v1 = vld [vmem:[#allocation148_spill] sm:$0xff]  ;;  %v10553_v43 = vld [vmem:[#allocation174_spill] sm:$0xff]  ;;  %v10557_v28 = vld [vmem:[#allocation15_spill] sm:$0xff] }
 0x372   :  { %v2296_v59 = vmul.f32 %v10547_v60, %v2256_v42  ;;  %v2297_v54 = vmul.f32 %v10547_v60, %v2257_v21  ;;  %v2484_v20 = vsel %vm10549_vm9, %v10548_v41, %v2481_v12  ;;  %v2490_v7 = vsel %vm10551_vm11, %v2481_v12, %v10550_v1  ;;  %3598 = vmatpush1.msra.mxu1 %v3597_v58  ;;  %v10554_v26 = vld [vmem:[#allocation84_spill] sm:$0xff]  ;;  %v10555_v42 = vld [vmem:[#allocation154_spill] sm:$0xff]  ;;  %v10558_v12 = vld [vmem:[#allocation41_spill] sm:$0xff] }
 0x373   :  { %v2748_v40 = vadd.f32 %v10552_v3, %v2644_v48  ;;  %v2749_v15 = vadd.f32 %v10553_v43, %v2645_v23  ;;  %v2404_v4 = vsel %vm2402_vm0, %v10554_v26, %v2401_v30  ;;  %v2410_v21 = vsel %vm2402_vm0, %v2401_v30, %v10555_v42  ;;  %3749 = vmatprep.subr.mxu1 %v8863_v17  ;;  %v10556_v19 = vld [vmem:[#allocation116_spill] sm:$0xff]  ;;  %v10559_v3 = vld [vmem:[#allocation66_spill] sm:$0xff]  ;;  %v10561_v42 = vld [vmem:[#allocation57_spill] sm:$0xff] }
 0x374   :  { %v2280_v9 = vadd.f32 %v2272_v13, %v2176_v10  ;;  %v2281_v18 = vadd.f32 %v2273_v27, %v2177_v8  ;;  %v2520_v29 = vmul.f32 %v10556_v19, %v2484_v20  ;;  %v2521_v58 = vmul.f32 %v10557_v28, %v2490_v7  ;;  %v10560_v30 = vld [vmem:[#allocation80_spill] sm:$0xff]  ;;  %v10563_v10 = vld [vmem:[#allocation53_spill] sm:$0xff] }
 0x375   :  { %v2852_v48 = vadd.f32 %v8702_v22, %v2748_v40  ;;  %v2853_v23 = vadd.f32 %v8707_v16, %v2749_v15  ;;  %v2376_v60 = vmul.f32 %v10558_v12, %v2360_v56  ;;  %v2377_v41 = vmul.f32 %v10558_v12, %v2361_v38  ;;  %v2585_v1 = vpop.permute.xlu1 %2584  ;;  %v10565_v38 = vld [vmem:[#allocation49_spill] sm:$0xff]  ;;  %v10566_v40 = vld [vmem:[#allocation11_spill] sm:$0xff] }
 0x376   :  { %v2440_v43 = vmul.f32 %v10559_v3, %v2404_v4  ;;  %v2441_v26 = vmul.f32 %v10560_v30, %v2410_v21  ;;  %vm10562_vm0 = vcmp.lt.s32.totalorder %v6534_v52, 112  ;;  %v2304_v22 = vadd.f32 %v2296_v59, %v2200_v53  ;;  %v10567_v4 = vld [vmem:[#allocation118_spill] sm:$0xff] }
 0x377   :  { %v2588_v27 = vsel %vm10562_vm0, %v10561_v42, %v2585_v1  ;;  %vm10564_vm2 = vmmov %vm10562_vm0  ;;  %v2305_v13 = vadd.f32 %v2297_v54, %v2201_v50  ;;  %v2932_v16 = vadd.f32 %v8710_v55, %v2852_v48  ;;  %v2933_v56 = vadd.f32 %v8717_v33, %v2853_v23  ;;  %v10568_v50 = vld [vmem:[#allocation131_spill] sm:$0xff]  ;;  %v10569_v48 = vld [vmem:[#allocation64_spill] sm:$0xff] }
 0x378   :  { %v2594_v8 = vsel %vm10564_vm2, %v2585_v1, %v10563_v10  ;;  %v2560_v20 = vmul.f32 %v10565_v38, %v2520_v29  ;;  %v2561_v7 = vmul.f32 %v10565_v38, %v2521_v58  ;;  %v2624_v15 = vmul.f32 %v10566_v40, %v2588_v27  ;;  %v10571_v1 = vld [vmem:[#allocation88_spill] sm:$0xff]  ;;  %v10575_v42 = vld [vmem:[#allocation13_spill] sm:$0xff] }
 0x379   :  { %v2625_v21 = vmul.f32 %v10567_v4, %v2594_v8  ;;  %v2384_v19 = vadd.f32 %v2376_v60, %v2280_v9  ;;  %v2385_v28 = vadd.f32 %v2377_v41, %v2281_v18  ;;  %v2689_v12 = vpop.permute.xlu1 %2688  ;;  %v3012_v3 = vadd.f32 %v8720_v6, %v2932_v16  ;;  %v10573_v18 = vld [vmem:[#allocation157_spill] sm:$0xff]  ;;  %v10576_v38 = vld [vmem:[#allocation48_spill] sm:$0xff] }
 0x37a   :  { %v3013_v53 = vadd.f32 %v8723_v37, %v2933_v56  ;;  %v2456_v59 = vmul.f32 %v10568_v50, %v2440_v43  ;;  %v2457_v55 = vmul.f32 %v10568_v50, %v2441_v26  ;;  %v2664_v33 = vmul.f32 %v10471_v63, %v2624_v15  ;;  %v10574_v26 = vld [vmem:[#allocation61_spill] sm:$0xff] }
 0x37b   :  { %v2665_v54 = vmul.f32 %v10471_v63, %v2625_v21  ;;  %v2692_v23 = vsel %vm10570_vm3, %v10569_v48, %v2689_v12  ;;  %v2698_v9 = vsel %vm10572_vm4, %v2689_v12, %v10571_v1  ;;  %v3092_v6 = vadd.f32 %v8822_v36, %v3012_v3  ;;  %v10577_v3 = vld [vmem:[#allocation99_spill] sm:$0xff]  ;;  %v10582_v1 = vld [vmem:[#allocation86_spill] sm:$0xff] }
 0x37c   :  { %v3093_v37 = vadd.f32 %v8817_v24, %v3013_v53  ;;  %v2536_v60 = vmul.f32 %v10573_v18, %v2520_v29  ;;  %v2537_v41 = vmul.f32 %v10573_v18, %v2521_v58  ;;  %v2568_v43 = vadd.f32 %v2560_v20, %v2304_v22 }
 0x37d   :  { %v2569_v30 = vadd.f32 %v2561_v7, %v2305_v13  ;;  %v2728_v63 = vmul.f32 %v10574_v26, %v2692_v23  ;;  %v2729_v27 = vmul.f32 %v10575_v42, %v2698_v9  ;;  %v2793_v10 = vpop.permute.xlu1 %2792  ;;  %v3172_v8 = vadd.f32 %v8929_v51, %v3092_v6  ;;  %v10585_v42 = vld [vmem:[#allocation175_spill] sm:$0xff] }
 0x37e   :  { %v3173_v16 = vadd.f32 %v8882_v57, %v3093_v37  ;;  %v3245_v36 = vmul.f32 %v8602_v46, %v8814_v14  ;;  %v2464_v56 = vadd.f32 %v2456_v59, %v2384_v19  ;;  %v2465_v24 = vadd.f32 %v2457_v55, %v2385_v28  ;;  %v10578_v14 = vld [vmem:[#allocation135_spill] sm:$0xff] }
 0x37f   :  { %v2640_v29 = vmul.f32 %v10576_v38, %v2624_v15  ;;  %v2672_v40 = vadd.f32 %v2664_v33, %v2568_v43  ;;  %v2673_v58 = vadd.f32 %v2665_v54, %v2569_v30  ;;  %v2768_v22 = vmul.f32 %v10493_v11, %v2728_v63  ;;  %v10581_v55 = vld [vmem:[#allocation59_spill] sm:$0xff] }
 0x380   :  { %v2769_v13 = vmul.f32 %v10493_v11, %v2729_v27  ;;  %v2544_v20 = vadd.f32 %v2536_v60, %v2464_v56  ;;  %v2545_v7 = vadd.f32 %v2537_v41, %v2465_v24  ;;  %v3252_v4 = vadd.f32 %v8944_v2, %v3172_v8  ;;  %v10579_v11 = vld [vmem:[#allocation163_spill] sm:$0xff]  ;;  %v10584_v60 = vld [vmem:[#allocation141_spill] sm:$0xff] }
 0x381   :  { %v3253_v51 = vadd.f32 %v3245_v36, %v3173_v16  ;;  %v2776_v12 = vadd.f32 %v2768_v22, %v2672_v40  ;;  %v2796_v46 = vsel %vm2794_vm12, %v10577_v3, %v2793_v10  ;;  %v2802_v15 = vsel %vm2794_vm12, %v2793_v10, %v10578_v14  ;;  %v2873_v19 = vpop.permute.xlu1 %2872  ;;  %v10580_v2 = vld [vmem:[#allocation159_spill] sm:$0xff] }
 0x382   :  { %v2777_v57 = vadd.f32 %v2769_v13, %v2673_v58  ;;  %v2641_v28 = vmul.f32 %v10576_v38, %v2625_v21  ;;  %v2648_v53 = vadd.f32 %v2640_v29, %v2544_v20  ;;  %v2876_v50 = vsel %vm2874_vm10, %v10579_v11, %v2873_v19  ;;  %v10583_v21 = vld [vmem:[#allocation52_spill] sm:$0xff]  ;;  %v10588_v58 = vld [vmem:[#allocation106_spill] sm:$0xff] }
 0x383   :  { %v2882_v59 = vsel %vm2874_vm10, %v2873_v19, %v10580_v2  ;;  %v2744_v33 = vmul.f32 %v10581_v55, %v2728_v63  ;;  %v2745_v54 = vmul.f32 %v10581_v55, %v2729_v27  ;;  %v3272_v48 = vadd.f32 %v8834_v47, %v2776_v12  ;;  %v10586_v27 = vld [vmem:[#allocation171_spill] sm:$0xff]  ;;  %v10592_v2 = vld [vmem:[#allocation109_spill] sm:$0xff]  ;;  %v10594_v55 = vld [vmem:[#allocation146_spill] sm:$0xff] }
 0x384   :  { %v3273_v23 = vadd.f32 %v8834_v47, %v2777_v57  ;;  %v2832_v9 = vmul.f32 %v10582_v1, %v2796_v46  ;;  %v2833_v6 = vmul.f32 %v10583_v21, %v2802_v15  ;;  %v3292_v37 = vadd.f32 %v8866_v62, %v3252_v4  ;;  %v10590_v57 = vld [vmem:[#allocation192_spill] sm:$0xff] }
 0x385   :  { %v3293_v18 = vadd.f32 %v8866_v62, %v3253_v51  ;;  %v2912_v41 = vmul.f32 %v10584_v60, %v2876_v50  ;;  %v2913_v43 = vmul.f32 %v10460_v39, %v2882_v59  ;;  %v2953_v30 = vpop.permute.xlu1 %2952  ;;  %v9053_v26 = vmax.f32 %v3272_v48, 0.0  ;;  %v10587_v39 = vld [vmem:[#allocation92_spill] sm:$0xff] }
 0x386   :  { %v9055_v63 = vmax.f32 %v3273_v23, 0.0  ;;  %v2956_v47 = vsel %vm2954_vm1, %v10585_v42, %v2953_v30  ;;  %v2962_v10 = vsel %vm2954_vm1, %v2953_v30, %v10586_v27  ;;  %v9063_v8 = vmax.f32 %v3292_v37, 0.0  ;;  %v10589_v51 = vld [vmem:[#allocation104_spill] sm:$0xff] }
 0x387   :  { %v9065_v62 = vmax.f32 %v3293_v18, 0.0  ;;  %v2649_v16 = vadd.f32 %v2641_v28, %v2545_v7  ;;  %v2752_v36 = vadd.f32 %v2744_v33, %v2648_v53  ;;  %v2848_v56 = vmul.f32 %v10587_v39, %v2832_v9  ;;  %v10597_v21 = vld [vmem:[#allocation16_spill] sm:$0xff] }
 0x388   :  { %v2849_v24 = vmul.f32 %v10587_v39, %v2833_v6  ;;  %v4459_v29 = vadd.f32 %v9055_v63, %v9053_v26  ;;  %v2928_v22 = vmul.f32 %v10588_v58, %v2912_v41  ;;  %v2992_v13 = vmul.f32 %v10461_v25, %v2956_v47 }
 0x389   :  { %v4462_v38 = vadd.f32 %v9065_v62, %v9063_v8  ;;  %v2753_v40 = vadd.f32 %v2745_v54, %v2649_v16  ;;  %v2993_v20 = vmul.f32 %v10462_v5, %v2962_v10  ;;  %v3033_v4 = vpop.permute.xlu1 %3032  ;;  %v2929_v7 = vmul.f32 %v10588_v58, %v2913_v43  ;;  %v10591_v5 = vld [vmem:[#allocation166_spill] sm:$0xff]  ;;  %v10600_v16 = vld [vmem:[#allocation55_spill] sm:$0xff]  ;;  %v3321_v58 = vpop.xlane.xlu0 %3320 }
 0x38a   :  { %4460 = vadd.xlane.f32.xlu0 %v4459_v29  ;;  %v3036_v12 = vsel %vm3034_vm13, %v10589_v51, %v3033_v4  ;;  %v3042_v3 = vsel %vm3034_vm13, %v3033_v4, %v10590_v57  ;;  %v2856_v25 = vadd.f32 %v2848_v56, %v2752_v36  ;;  %v3008_v19 = vmul.f32 %v10591_v5, %v2992_v13 }
 0x38b   :  { %4463 = vadd.xlane.f32.xlu1 %v4462_v38  ;;  %v3072_v46 = vmul.f32 %v10483_v0, %v3036_v12  ;;  %v3073_v14 = vmul.f32 %v10480_v61, %v3042_v3  ;;  %v2857_v15 = vadd.f32 %v2849_v24, %v2753_v40  ;;  %v3009_v28 = vmul.f32 %v10591_v5, %v2993_v20  ;;  %v10596_v0 = vld [vmem:[#allocation179_spill] sm:$0xff]  ;;  %v9125_v12 = vld [vmem:[%s9481_s3 + $0x8] sm:$0xff] }
 0x38c   :  { %v2936_v11 = vadd.f32 %v2928_v22, %v2856_v25  ;;  %vm10593_vm10 = vcmp.lt.s32.totalorder %v6534_v52, 95  ;;  %vm3337_vm13 = vcmask 261120  }
 0x38d   :  { %v3113_v53 = vpop.permute.xlu1 %3112  ;;  %v2937_v50 = vadd.f32 %v2929_v7, %v2857_v15  ;;  %vm10595_vm12 = vmmov %vm10593_vm10  ;;  %v3088_v54 = vmul.f32 %v10596_v0, %v3072_v46  ;;  %v3089_v61 = vmul.f32 %v10596_v0, %v3073_v14  ;;  %v9120_v7 = vld [vmem:[%s9481_s3] sm:$0xff] }
 0x38e   :  { %v3116_v59 = vsel %vm10593_vm10, %v10592_v2, %v3113_v53  ;;  %v3122_v33 = vsel %vm10595_vm12, %v3113_v53, %v10594_v55  ;;  %v3016_v1 = vadd.f32 %v3008_v19, %v2936_v11  ;;  %v10601_v55 = vld [vmem:[#allocation136_spill] sm:$0xff] }
 0x38f   :  { %v3152_v48 = vmul.f32 %v10515_v34, %v3116_v59  ;;  %v3153_v23 = vmul.f32 %v10505_v35, %v3122_v33  ;;  %v3017_v9 = vadd.f32 %v3009_v28, %v2937_v50  ;;  %v10598_v34 = vld [vmem:[#allocation14_spill] sm:$0xff]  ;;  %v10599_v35 = vld [vmem:[#allocation125_spill] sm:$0xff]  ;;  %v3308_v50 = vld [vmem:[%s9481_s3 + $0x10] sm:$0x1] }
 0x390   :  { %v3096_v43 = vadd.f32 %v3088_v54, %v3016_v1 }
 0x391   :  { %v3168_v6 = vmul.f32 %v10597_v21, %v3152_v48  ;;  %v3169_v37 = vmul.f32 %v10597_v21, %v3153_v23  ;;  %v3193_v18 = vpop.permute.xlu1 %3192  ;;  %v3097_v30 = vadd.f32 %v3089_v61, %v3017_v9 }
 0x392   :  { %v3196_v60 = vsel %vm3194_vm15, %v8776_v44, %v3193_v18  ;;  %v3202_v41 = vsel %vm3194_vm15, %v3193_v18, %v8714_v31 }
 0x393   :  { %v3232_v42 = vmul.f32 %v10598_v34, %v3196_v60  ;;  %v3233_v47 = vmul.f32 %v10599_v35, %v3202_v41  ;;  %v3176_v27 = vadd.f32 %v3168_v6, %v3096_v43  ;;  %v3177_v10 = vadd.f32 %v3169_v37, %v3097_v30 }
 0x395   :  { %v3248_v36 = vmul.f32 %v10600_v16, %v3232_v42  ;;  %v3249_v39 = vmul.f32 %v10600_v16, %v3233_v47 }
 0x397   :  { %v3256_v56 = vadd.f32 %v3248_v36, %v3176_v27  ;;  %v3257_v24 = vadd.f32 %v3249_v39, %v3177_v10 }
 0x399   :  { %v3296_v44 = vadd.f32 %v10495_v45, %v3256_v56  ;;  %v3297_v38 = vadd.f32 %v10495_v45, %v3257_v24 }
 0x39b   :  { %v9111_v29 = vmax.f32 %v3296_v44, 0.0  ;;  %v9113_v31 = vmax.f32 %v3297_v38, 0.0 }
 0x39d   :  { %v4465_v40 = vadd.f32 %v9113_v31, %v9111_v29 }
 0x39f   :  { %4466 = vadd.xlane.f32.xlu0 %v4465_v40 }
 0x3ec   :  { %v3324_v4 = vpop.xlane.xlu1 %3323 }
 0x3f0   :  { %v4458_v0 = vpop.xlane.xlu1 %4457 }
 0x3f1   :  { %v3327_v22 = vpop.xlane.xlu0 %3326 }
 0x3f2   :  { %v3331_v13 = vadd.f32 %v3327_v22, %v3321_v58 }
 0x3f4   :  { %v3333_v20 = vmul.f32 0.00390625, %v3331_v13 }
 0x3f5   :  { %v3330_v51 = vpop.xlane.xlu0 %3329 }
 0x3f6   :  { %v3332_v45 = vadd.f32 %v3330_v51, %v3324_v4  ;;  %v3335_v57 = vmul.f32 %v3333_v20, %v9120_v7 }
 0x3f8   :  { %v3334_v3 = vmul.f32 0.00390625, %v3332_v45  ;;  %v3338_v14 = vsel %vm3337_vm13, %v3335_v57, 0.0 }
 0x3fa   :  { %v3336_v46 = vmul.f32 %v3334_v3, %v9125_v12 }
 0x3fc   :  { %v3339_v25 = vsel %vm3337_vm13, %v3336_v46, 0.0 }
 0x3fd   :  { %v3340_v15 = vadd.f32 %v3339_v25, %v3338_v14 }
 0x3ff   :  { %v3341_v5 = vrot.slane %v3340_v15, 4 }
 0x401   :  { %v3342_v19 = vadd.f32 %v3341_v5, %v3340_v15 }
 0x403   :  { %v3343_v28 = vrot.slane %v3342_v19, 2 }
 0x405   :  { %v3344_v53 = vadd.f32 %v3343_v28, %v3342_v19 }
 0x407   :  { %v3345_v11 = vrot.slane %v3344_v53, 1 }
 0x409   :  { %v3346_v2 = vadd.f32 %v3345_v11, %v3344_v53 }
 0x40b   :  { %v3347_v59 = vadd.f32 %v3346_v2, %v3308_v50 }
 0x40d   :  { %v3351_v33 = vrot.slane %v3347_v59, %v10601_v55 }
 0x40f   :  { %3374 = vrot.lane.b32.xlu1 %v3351_v33, %s5928_s15 }
 0x413   :  { %3353 = vrot.lane.b32.xlu1 %v3351_v33, %s5867_s29  ;;  %v4461_v48 = vpop.xlane.xlu0 %4460 }
 0x414   :  { %v4464_v54 = vpop.xlane.xlu1 %4463 }
 0x415   :  { %v4468_v61 = vadd.f32 %v4464_v54, %v4458_v0 }
 0x417   :  { %v4470_v23 = vmul.f32 0.00390625, %v4468_v61 }
 0x419   :  { %v4472_v21 = vmul.f32 %v4470_v23, %v9120_v7 }
 0x41b   :  { %v4474_v18 = vsel %vm3337_vm13, %v4472_v21, 0.0 }
 0x428   :  { %v4467_v1 = vpop.xlane.xlu0 %4466 }
 0x429   :  { %v4469_v9 = vadd.f32 %v4467_v1, %v4461_v48 }
 0x42b   :  { %v4471_v6 = vmul.f32 0.00390625, %v4469_v9 }
 0x42d   :  { %v4473_v37 = vmul.f32 %v4471_v6, %v9125_v12 }
 0x42f   :  { %v4475_v60 = vsel %vm3337_vm13, %v4473_v37, 0.0 }
 0x430   :  { %v4476_v41 = vadd.f32 %v4475_v60, %v4474_v18 }
 0x432   :  { %v4477_v43 = vrot.slane %v4476_v41, 4 }
 0x434   :  { %v4478_v30 = vadd.f32 %v4477_v43, %v4476_v41 }
 0x436   :  { %v4479_v34 = vrot.slane %v4478_v30, 2 }
 0x438   :  { %v4480_v42 = vadd.f32 %v4479_v34, %v4478_v30 }
 0x43a   :  { %v4481_v35 = vrot.slane %v4480_v42, 1 }
 0x43c   :  { %v4482_v47 = vadd.f32 %v4481_v35, %v4480_v42 }
 0x43e   :  { %v4483_v27 = vadd.f32 %v4482_v47, %v3308_v50 }
 0x440   :  { %v4487_v10 = vrot.slane %v4483_v27, %v10601_v55 }
 0x442   :  { %4510 = vrot.lane.b32.xlu0 %v4487_v10, %s5928_s15 }
 0x481   :  { %v3375_v16 = vpop.permute.xlu1 %3374 }
 0x482   :  { %v3377_v36 = vmul.f32 %v3375_v16, %v9120_v7  ;;  %v3378_v39 = vmul.f32 %v3375_v16, %v9125_v12 }
 0x484   :  { %3381 = vrot.lane.b32.xlu1 %v3377_v36, %s5928_s15  ;;  %3383 = vrot.lane.b32.xlu0 %v3378_v39, %s5928_s15 }
 0x485   :  { %v3354_v38 = vpop.permute.xlu1 %3353 }
 0x486   :  { %v3356_v40 = vmul.f32 %v3354_v38, %v9120_v7  ;;  %v3357_v58 = vmul.f32 %v3354_v38, %v9125_v12 }
 0x488   :  { %4489 = vrot.lane.b32.xlu1 %v4487_v10, %s5867_s29 }
 0x4b4   :  { %v4511_v56 = vpop.permute.xlu0 %4510 }
 0x4b5   :  { %v4513_v24 = vmul.f32 %v4511_v56, %v9120_v7  ;;  %v4514_v44 = vmul.f32 %v4511_v56, %v9125_v12 }
 0x4b7   :  { %4519 = vrot.lane.b32.xlu1 %v4514_v44, %s5928_s15  ;;  %4517 = vrot.lane.b32.xlu0 %v4513_v24, %s5928_s15 }
 0x4bb   :  { %3362 = vrot.lane.b32.xlu1 %v3357_v58, %s5920_s7  ;;  %3360 = vrot.lane.b32.xlu0 %v3356_v40, %s5920_s7 }
 0x4f6   :  { %v3382_v22 = vpop.permute.xlu1 %3381  ;;  %v3384_v13 = vpop.permute.xlu0 %3383 }
 0x4f7   :  { %v3390_v20 = vsel %vm3337_vm13, %v3384_v13, 0.0  ;;  %v3387_v57 = vsel %vm3337_vm13, %v3382_v22, 0.0  ;;  %v5929_v22 = vmov 96  }
 0x4f8   :  { %3391 = vadd.xlane.f32.xlu1 %v3390_v20  ;;  %5748 = vset.pattern.permute.xlu0 %v5929_v22 }
 0x4f9   :  { %5749 = vset.pattern.permute.xlu1 %v5929_v22  ;;  %v10605_v22 = vld [vmem:[#allocation93_spill] sm:$0xff] }
 0x4fa   :  { %v4490_v4 = vpop.permute.xlu1 %4489 }
 0x4fb   :  { %v4492_v51 = vmul.f32 %v4490_v4, %v9120_v7  ;;  %v4493_v45 = vmul.f32 %v4490_v4, %v9125_v12 }
 0x4fd   :  { %4496 = vrot.lane.b32.xlu0 %v4492_v51, %s5920_s7 }
 0x509   :  { %4498 = vrot.lane.b32.xlu1 %v4493_v45, %s5920_s7 }
 0x51c   :  { %3388 = vadd.xlane.f32.xlu0 %v3387_v57 }
 0x529   :  { %v4520_v3 = vpop.permute.xlu1 %4519  ;;  %v4518_v46 = vpop.permute.xlu0 %4517 }
 0x52a   :  { %v4523_v14 = vsel %vm3337_vm13, %v4518_v46, 0.0  ;;  %v4526_v25 = vsel %vm3337_vm13, %v4520_v3, 0.0 }
 0x52b   :  { %4524 = vadd.xlane.f32.xlu0 %v4523_v14 }
 0x52d   :  { %4527 = vadd.xlane.f32.xlu1 %v4526_v25  ;;  %v3361_v15 = vpop.permute.xlu0 %3360  ;;  %v3363_v19 = vpop.permute.xlu1 %3362 }
 0x52e   :  { %v3366_v5 = vsel %vm3337_vm13, %v3361_v15, 0.0  ;;  %v3369_v28 = vsel %vm3337_vm13, %v3363_v19, 0.0 }
 0x52f   :  { %3367 = vadd.xlane.f32.xlu0 %v3366_v5 }
 0x533   :  { %3370 = vadd.xlane.f32.xlu0 %v3369_v28 }
 0x56f   :  { %v4497_v2 = vpop.permute.xlu0 %4496 }
 0x570   :  { %v4502_v61 = vsel %vm3337_vm13, %v4497_v2, 0.0 }
 0x581   :  { %v3392_v53 = vpop.xlane.xlu1 %3391 }
 0x582   :  { %v3394_v11 = vadd.f32 %v3392_v53, %v9125_v12 }
 0x584   :  { %3399 = vrot.lane.b32.xlu0 %v3394_v11, %s5887_s14 }
 0x585   :  { %v4499_v50 = vpop.permute.xlu1 %4498 }
 0x586   :  { %v4505_v59 = vsel %vm3337_vm13, %v4499_v50, 0.0 }
 0x5a3   :  { %4506 = vadd.xlane.f32.xlu0 %v4505_v59 }
 0x5a5   :  { %v3389_v55 = vpop.xlane.xlu0 %3388 }
 0x5a6   :  { %v3393_v33 = vadd.f32 %v3389_v55, %v9120_v7 }
 0x5a8   :  { %3397 = vrot.lane.b32.xlu1 %v3393_v33, %s5887_s14 }
 0x5b4   :  { %v4525_v48 = vpop.xlane.xlu0 %4524 }
 0x5b5   :  { %v4529_v23 = vadd.f32 %v4525_v48, %v9120_v7 }
 0x5b6   :  { %v4528_v0 = vpop.xlane.xlu1 %4527 }
 0x5b7   :  { %v4530_v54 = vadd.f32 %v4528_v0, %v9125_v12 }
 0x5b8   :  { %v3368_v1 = vpop.xlane.xlu0 %3367 }
 0x5b9   :  { %4535 = vrot.lane.b32.xlu0 %v4530_v54, %s5887_s14  ;;  %v3372_v60 = vadd.f32 %v3368_v1, %v9120_v7 }
 0x5bc   :  { %v3371_v9 = vpop.xlane.xlu0 %3370 }
 0x5bd   :  { %v3373_v21 = vadd.f32 %v3371_v9, %v9125_v12 }
 0x5cc   :  { %4503 = vadd.xlane.f32.xlu1 %v4502_v61 }
 0x5dd   :  { %4533 = vrot.lane.b32.xlu1 %v4529_v23, %s5887_s14 }
 0x5f6   :  { %v3400_v6 = vpop.permute.xlu0 %3399 }
 0x5f7   :  { %v3404_v37 = vmax.f32 %v3373_v21, %v3400_v6 }
 0x5f9   :  { %v3406_v18 = vsub.f32 %v3373_v21, %v3404_v37 }
 0x5fb   :  { %v3409_v15 = vmul.f32 1.442695, %v3406_v18 }
 0x61a   :  { %v3398_v41 = vpop.permute.xlu1 %3397 }
 0x61b   :  { %v3403_v43 = vmax.f32 %v3372_v60, %v3398_v41  ;;  %v10602_v41 = vld [vmem:[#allocation82_spill] sm:$0xff] }
 0x61c   :  { %vm3313_vm15 = vcmp.eq.s32.totalorder %v10602_v41, %v6534_v52 }
 0x61d   :  { %v3405_v30 = vsub.f32 %v3372_v60, %v3403_v43  ;;  %3413 = vrot.lane.b32.xlu1 %v3403_v43, %s5897_s23  ;;  %v3312_v43 = vadd.s32 8, %v10602_v41  ;;  %v10611_v41 = vld [vmem:[#allocation23_spill] sm:$0xff] }
 0x61f   :  { %v3407_v25 = vmul.f32 1.442695, %v3405_v30  ;;  %vm3314_vm1 = vcmp.eq.s32.totalorder %v3312_v43, %v6534_v52  ;;  %v10603_v30 = vmov 0.0  }
 0x621   :  { %3415 = vrot.lane.b32.xlu1 %v3404_v37, %s5897_s23 }
 0x62c   :  { %v4507_v34 = vpop.xlane.xlu0 %4506 }
 0x62d   :  { %v4509_v42 = vadd.f32 %v4507_v34, %v9125_v12  ;;  %v9193_v34 = vsel %vm3313_vm15, 1.0, %v10603_v30 }
 0x630   :  { %v4536_v35 = vpop.permute.xlu0 %4535 }
 0x631   :  { %v4540_v47 = vmax.f32 %v4509_v42, %v4536_v35  ;;  %v9196_v35 = vsel %vm3314_vm1, 1.0, %v10603_v30 }
 0x633   :  { %v4542_v27 = vsub.f32 %v4509_v42, %v4540_v47  ;;  %4551 = vrot.lane.b32.xlu1 %v4540_v47, %s5897_s23 }
 0x635   :  { %v4545_v50 = vmul.f32 1.442695, %v4542_v27 }
 0x655   :  { %v4504_v10 = vpop.xlane.xlu1 %4503 }
 0x656   :  { %v4508_v16 = vadd.f32 %v4504_v10, %v9120_v7 }
 0x659   :  { %v4534_v36 = vpop.permute.xlu1 %4533 }
 0x65a   :  { %v4539_v39 = vmax.f32 %v4508_v16, %v4534_v36 }
 0x65c   :  { %v4541_v56 = vsub.f32 %v4508_v16, %v4539_v39  ;;  %4549 = vrot.lane.b32.xlu0 %v4539_v39, %s5897_s23 }
 0x65e   :  { %v4543_v9 = vmul.f32 1.442695, %v4541_v56 }
 0x68f   :  { %v3414_v24 = vpop.permute.xlu1 %3413 }
 0x690   :  { %v3419_v44 = vsub.f32 %v3393_v33, %v3414_v24 }
 0x692   :  { %v3421_v38 = vmul.f32 1.442695, %v3419_v44 }
 0x693   :  { %v3416_v40 = vpop.permute.xlu1 %3415 }
 0x694   :  { %5752 = vpow2.f32 %v3421_v38  ;;  %v3420_v58 = vsub.f32 %v3394_v11, %v3416_v40  ;;  %v10604_v40 = vld [vmem:[#allocation56_spill] sm:$0xff] }
 0x696   :  { %v3423_v12 = vmul.f32 1.442695, %v3420_v58  ;;  %v9203_v58 = vand.u32 4294901760, %v10604_v40 }
 0x698   :  { %5754 = vpow2.f32 %v3423_v12 }
 0x6a1   :  { %v5753_v13 = vpop.eup %5752 }
 0x6a2   :  { %3427 = vrot.lane.b32.xlu0 %v5753_v13, %s5887_s14  ;;  %v9206_v13 = vand.u32 4294901760, %v10605_v22 }
 0x6a5   :  { %v5755_v7 = vpop.eup %5754  ;;  %v4552_v20 = vpop.permute.xlu1 %4551 }
 0x6a6   :  { %v4556_v4 = vsub.f32 %v4530_v54, %v4552_v20  ;;  %3429 = vrot.lane.b32.xlu1 %v5755_v7, %s5887_s14  ;;  %v10606_v7 = vld [vmem:[#allocation198_spill] sm:$0xff] }
 0x6a7   :  { %v9209_v20 = vand.u32 4294901760, %v10606_v7 }
 0x6a8   :  { %v4559_v51 = vmul.f32 1.442695, %v4556_v4 }
 0x6aa   :  { %5756 = vpow2.f32 %v4559_v51  ;;  %v10607_v51 = vld [vmem:[#allocation197_spill] sm:$0xff] }
 0x6b7   :  { %v5757_v45 = vpop.eup %5756 }
 0x6b8   :  { %4565 = vrot.lane.b32.xlu1 %v5757_v45, %s5887_s14  ;;  %v9212_v45 = vand.u32 4294901760, %v10607_v51 }
 0x6ce   :  { %v4550_v57 = vpop.permute.xlu0 %4549 }
 0x6cf   :  { %v4555_v3 = vsub.f32 %v4529_v23, %v4550_v57  ;;  %v9217_v57 = vld [vmem:[%s9479_s1 + $0x10] sm:$0xff]  ;;  %s5930_s1 = smov [#allocation7]  }
 0x6d1   :  { %v4557_v46 = vmul.f32 1.442695, %v4555_v3  ;;  %v9221_v3 = vsub.f32 %v10604_v40, %v9203_v58 }
 0x6d3   :  { %5758 = vpow2.f32 %v4557_v46 }
 0x6d4   :  { %5760 = vpow2.f32 %v3407_v25 }
 0x6d5   :  { %5762 = vpow2.f32 %v3409_v15  ;;  %v9231_v15 = vsub.f32 %v10606_v7, %v9209_v20 }
 0x6e0   :  { %v5759_v14 = vpop.eup %5758 }
 0x6e1   :  { %4563 = vrot.lane.b32.xlu0 %v5759_v14, %s5887_s14  ;;  %v5761_v5 = vpop.eup %5760  ;;  %v9226_v14 = vsub.f32 %v10605_v22, %v9206_v13  ;;  %s5597_s14 = sshll.u32 %s5930_s1, 4  ;;  %s5598_s14 = int_to_ptr.vmem [resolvable:$true] %s5597_s14 }
 0x6e2   :  { %v5763_v53 = vpop.eup %5762  ;;  %s5836_s16 = scalar_lea.vmem %s5598_s14, 512  ;;  %p5841_p11 = scmp.lt.s32.totalorder %s5598_s14, %s5598_s14 }
 0x6e3   :  { %p5837_p10 = scmp.ne.s32.totalorder %s5598_s14, %s5836_s16  ;;  %p5842_p12 = scmp.lt.s32.totalorder %s5836_s16, %s5836_s16 }
 0x6e5   :  { %p5843_p13 = por %p5842_p12, %p5841_p11 }
 0x6e7   :  { %p5844_p0 = pnand %p5843_p13, %p5837_p10 }
 0x714   :  { %v3428_v19 = vpop.permute.xlu0 %3427 }
 0x715   :  { %v3433_v28 = vadd.f32 %v5761_v5, %v3428_v19 }
 0x717   :  { %5764 = vrcp.f32 %v3433_v28  ;;  %v4071_v28 = vand.u32 4294901760, %v9221_v3 }
 0x718   :  { %v3430_v11 = vpop.permute.xlu1 %3429 }
 0x719   :  { %v3434_v2 = vadd.f32 %v5763_v53, %v3430_v11  ;;  %v4077_v11 = vand.u32 4294901760, %v9226_v14 }
 0x71b   :  { %5766 = vrcp.f32 %v3434_v2  ;;  %v4083_v2 = vand.u32 4294901760, %v9231_v15 }
 0x71c   :  { %5768 = vpow2.f32 %v4545_v50  ;;  %v10608_v50 = vld [vmem:[#allocation26_spill] sm:$0xff] }
 0x724   :  { %v5765_v59 = vpop.eup %5764 }
 0x725   :  { %v3436_v55 = vmul.f32 %v5765_v59, %v5761_v5  ;;  %v9235_v5 = vsub.f32 %v10607_v51, %v9212_v45 }
 0x727   :  { %3441 = vperm.xlu0 %5748, %v3436_v55   ;;  %v10609_v55 = vld [vmem:[#allocation102_spill] sm:$0xff] }
 0x728   :  { %v5767_v33 = vpop.eup %5766 }
 0x729   :  { %v3438_v0 = vmul.f32 %v5767_v33, %v5763_v53  ;;  %v5769_v54 = vpop.eup %5768 }
 0x72a   :  { %v4566_v61 = vpop.permute.xlu1 %4565 }
 0x72b   :  { %v4570_v48 = vadd.f32 %v5769_v54, %v4566_v61  ;;  %3446 = vperm.xlu1 %5749, %v3438_v0   ;;  %v4072_v0 = vsub.f32 %v9221_v3, %v4071_v28  ;;  %v10610_v61 = vld [vmem:[#allocation25_spill] sm:$0xff] }
 0x72d   :  { %5770 = vrcp.f32 %v4570_v48 }
 0x72e   :  { %5772 = vpow2.f32 %v4543_v9 }
 0x73a   :  { %v5771_v23 = vpop.eup %5770 }
 0x73b   :  { %v4574_v1 = vmul.f32 %v5771_v23, %v5769_v54  ;;  %v5773_v21 = vpop.eup %5772  ;;  %v4089_v54 = vand.u32 4294901760, %v9235_v5  ;;  %v4078_v23 = vsub.f32 %v9226_v14, %v4077_v11 }
 0x73d   :  { %4582 = vperm.xlu0 %5748, %v4574_v1   ;;  %v4084_v1 = vsub.f32 %v9231_v15, %v4083_v2 }
 0x73f   :  { %v4085_v43 = vand.u32 4294901760, %v4084_v1 }
 0x753   :  { %v4564_v6 = vpop.permute.xlu0 %4563 }
 0x754   :  { %v4569_v37 = vadd.f32 %v5773_v21, %v4564_v6  ;;  %v4090_v6 = vsub.f32 %v9235_v5, %v4089_v54 }
 0x756   :  { %5774 = vrcp.f32 %v4569_v37  ;;  %v9269_v37 = vand.u32 4294901760, %v9113_v31 }
 0x763   :  { %v5775_v18 = vpop.eup %5774 }
 0x764   :  { %v4572_v60 = vmul.f32 %v5775_v18, %v5773_v21  ;;  %v4079_v18 = vand.u32 4294901760, %v4078_v23 }
 0x766   :  { %4577 = vperm.xlu1 %5749, %v4572_v60  }
 0x7a2   :  { %v3442_v42 = vpop.permute.xlu0 %3441 }
 0x7a3   :  { %v3449_v47 = vmul.f32 %v9193_v34, %v3442_v42  ;;  %v9276_v42 = vand.u32 4294901760, %v9111_v29 }
 0x7a5   :  { %v3452_v16 = vsel %vm3451_vm5, %v3449_v47, 0.0  ;;  %v10612_v47 = vld [vmem:[#allocation180_spill] sm:$0xff] }
 0x7a6   :  { %v3447_v27 = vpop.permute.xlu1 %3446 }
 0x7a7   :  { %v3450_v10 = vmul.f32 %v9196_v35, %v3447_v27  ;;  %v4091_v27 = vand.u32 4294901760, %v4090_v6 }
 0x7a9   :  { %v3453_v36 = vsel %vm3451_vm5, %v3450_v10, 0.0  ;;  %v9280_v10 = vand.u32 4294901760, %v9065_v62 }
 0x7aa   :  { %v3454_v39 = vadd.f32 %v3453_v36, %v3452_v16  ;;  %v9284_v16 = vand.u32 4294901760, %v9063_v8 }
 0x7ac   :  { %v3455_v56 = vrot.slane %v3454_v39, 4 }
 0x7ae   :  { %v3456_v52 = vadd.f32 %v3455_v56, %v3454_v39  ;;  %v9290_v39 = vsub.f32 %v9113_v31, %v9269_v37  ;;  %v10613_v56 = vld [vmem:[#allocation145_spill] sm:$0xff]  ;;  %v9305_v31 = vsub.f32 %v9065_v62, %v9280_v10 }
 0x7b0   :  { %v3457_v24 = vrot.slane %v3456_v52, 2  ;;  %v4724_v22 = vand.u32 4294901760, %v9305_v31 }
 0x7b2   :  { %v3458_v44 = vadd.f32 %v3457_v24, %v3456_v52  ;;  %v10614_v52 = vand.u32 4294901760, %v10613_v56  ;;  %v9298_v24 = vsub.f32 %v9111_v29, %v9276_v42  ;;  %v9313_v29 = vsub.f32 %v9063_v8, %v9284_v16 }
 0x7b3   :  { %v4725_v7 = vsub.f32 %v9305_v31, %v4724_v22 }
 0x7b4   :  { %v3459_v38 = vrot.slane %v3458_v44, 1  ;;  %v4718_v62 = vand.u32 4294901760, %v9298_v24  ;;  %v4730_v8 = vand.u32 4294901760, %v9313_v29 }
 0x7b6   :  { %v3460_v12 = vadd.f32 %v3459_v38, %v3458_v44  ;;  %v10615_v44 = vand.u32 4294901760, %v10611_v41  ;;  %v10616_v38 = vand.u32 4294901760, %v10612_v47  ;;  %v4731_v51 = vsub.f32 %v9313_v29, %v4730_v8 }
 0x7b8   :  { %v3461_v4 = vsub.f32 1.0, %v3460_v12  ;;  %v3462_v59 = vmul.f32 %v3460_v12, %v9217_v57  ;;  %v4712_v12 = vand.u32 4294901760, %v9290_v39 }
 0x7ba   :  { %v3463_v46 = vmul.f32 %v3461_v4, %v9217_v57  ;;  %v3959_v9 = vsel %vm3451_vm5, %v3462_v59, 0 }
 0x7bb   :  { %v9271_v60 = vand.u32 4294901760, %v3959_v9 }
 0x7bc   :  { %v3465_v25 = vsel %vm3451_vm5, %v3463_v46, 0  ;;  %v4732_v46 = vand.u32 4294901760, %v4731_v51 }
 0x7bd   :  { %v9237_v19 = vand.u32 4294901760, %v3465_v25  ;;  %v4031_v36 = vsub.f32 %v3959_v9, %v9271_v60 }
 0x7bf   :  { %3633 = vmatmul.mubr.f32.vlgmr.msra.gmra.mxu1 %v9237_v19  ;;  %v3537_v53 = vsub.f32 %v3465_v25, %v9237_v19  ;;  %v4032_v40 = vand.u32 4294901760, %v4031_v36  ;;  %v4583_v25 = vpop.permute.xlu0 %4582 }
 0x7c0   :  { %3751 = vmatpush1.msra.mxu1 %v10608_v50  ;;  %3788 = vmatprep.mubr.f32.mxu1 %v10603_v30 }
 0x7c1   :  { %3753 = vmatprep.subr.mxu1 %v10609_v55  ;;  %v3538_v33 = vand.u32 4294901760, %v3537_v53 }
 0x7c2   :  { %3755 = vmatpush1.msra.mxu1 %v10610_v61 }
 0x7c3   :  { %3911 = vmatprep.subr.mxu1 %v8863_v17  ;;  %v3539_v48 = vsub.f32 %v3537_v53, %v3538_v33  ;;  %3792 = vmatmul.mubr.f32.vlgmr.msra.gmra.mxu1 %v3538_v33  ;;  %v4073_v17 = vand.u32 4294901760, %v4072_v0  ;;  %v10617_v33 = vld [vmem:[#allocation178_spill] sm:$0xff] }
 0x7c4   :  { %3913 = vmatpush1.msra.mxu1 %v10608_v50  ;;  %3950 = vmatprep.mubr.f32.mxu1 %v10603_v30  ;;  %v9382_v0 = vand.u32 4294901760, %v10617_v33 }
 0x7c5   :  { %v3540_v21 = vand.u32 4294901760, %v3539_v48  ;;  %3915 = vmatprep.subr.mxu1 %v10609_v55  ;;  %v9379_v55 = vand.u32 4294901760, %v9053_v26 }
 0x7c6   :  { %3917 = vmatpush1.msra.mxu1 %v10610_v61  ;;  %v10618_v61 = vld [vmem:[#allocation176_spill] sm:$0xff] }
 0x7c7   :  { %4074 = vmatprep.subr.mxu1 %v4073_v17  ;;  %3541 = vmatmul.mubr.f32.vlgmr.msra.gmra.mxu0 %v3540_v21  ;;  %v9385_v48 = vand.u32 4294901760, %v10618_v61  ;;  %v9394_v9 = vsub.f32 %v9053_v26, %v9379_v55  ;;  %v9399_v17 = vsub.f32 %v10617_v33, %v9382_v0 }
 0x7c8   :  { %3672 = vmatpush1.msra.mxu0 %v10611_v41  ;;  %3952 = vmatmul.mubr.f32.vlgmr.msra.gmra.mxu1 %v9237_v19 }
 0x7c9   :  { %4080 = vmatpush1.msra.mxu1 %v4079_v18  ;;  %3675 = vmatprep.subr.mxu0 %v10612_v47  ;;  %v5212_v41 = vand.u32 4294901760, %v9394_v9  ;;  %v5218_v26 = vand.u32 4294901760, %v9399_v17 }
 0x7ca   :  { %4086 = vmatprep.subr.mxu1 %v4085_v43  ;;  %3678 = vmatpush1.msra.mxu0 %v8926_v32  ;;  %v4713_v32 = vsub.f32 %v9290_v39, %v4712_v12 }
 0x7cb   :  { %4092 = vmatpush1.msra.mxu1 %v4091_v27  ;;  %3711 = vmatprep.mubr.f32.mxu0 %v10603_v30 }
 0x7cc   :  { %3829 = vmatprep.subr.mxu0 %v10614_v52  ;;  %4125 = vmatprep.mubr.f32.mxu1 %v10603_v30  ;;  %v4714_v4 = vand.u32 4294901760, %v4713_v32  ;;  %v5213_v52 = vsub.f32 %v9394_v9, %v5212_v41 }
 0x7cd   :  { %4243 = vmatprep.subr.mxu1 %v9203_v58  ;;  %3714 = vmatmul.mubr.f32.vlgmr.msra.gmra.mxu0 %v3537_v53 }
 0x7ce   :  { %3833 = vmatpush1.msra.mxu0 %v10615_v44  ;;  %4127 = vmatmul.mubr.f32.vlgmr.msra.gmra.mxu1 %v9271_v60 }
 0x7cf   :  { %4245 = vmatpush1.msra.mxu1 %v9206_v13  ;;  %3837 = vmatprep.subr.mxu0 %v10616_v38 }
 0x7d0   :  { %4247 = vmatprep.subr.mxu1 %v9209_v20  ;;  %3841 = vmatpush1.msra.mxu0 %v3595_v49  ;;  %v4033_v49 = vsub.f32 %v4031_v36, %v4032_v40 }
 0x7d1   :  { %4249 = vmatpush1.msra.mxu1 %v9212_v45  ;;  %3874 = vmatprep.mubr.f32.mxu0 %v10603_v30 }
 0x7d2   :  { %3990 = vmatprep.subr.mxu0 %v9203_v58  ;;  %4282 = vmatprep.mubr.f32.mxu1 %v10603_v30 }
 0x7d3   :  { %4405 = vmatprep.subr.mxu1 %v9203_v58  ;;  %3876 = vmatmul.mubr.f32.vlgmr.msra.gmra.mxu0 %v9237_v19  ;;  %v4719_v58 = vsub.f32 %v9298_v24, %v4718_v62  ;;  %v4586_v19 = vmul.f32 %v9196_v35, %v4583_v25 }
 0x7d4   :  { %3992 = vmatpush1.msra.mxu0 %v9206_v13  ;;  %4286 = vmatmul.mubr.f32.vlgmr.msra.gmra.mxu1 %v4032_v40 }
 0x7d5   :  { %4407 = vmatpush1.msra.mxu1 %v9206_v13  ;;  %3994 = vmatprep.subr.mxu0 %v9209_v20  ;;  %v4034_v13 = vand.u32 4294901760, %v4033_v49  ;;  %v4588_v35 = vsel %vm3451_vm5, %v4586_v19, 0.0 }
 0x7d6   :  { %4409 = vmatprep.subr.mxu1 %v9209_v20  ;;  %3996 = vmatpush1.msra.mxu0 %v9212_v45  ;;  %v4720_v20 = vand.u32 4294901760, %v4719_v58 }
 0x7d7   :  { %4411 = vmatpush1.msra.mxu1 %v9212_v45  ;;  %4029 = vmatprep.mubr.f32.mxu0 %v10603_v30  ;;  %v4726_v45 = vand.u32 4294901760, %v4725_v7 }
 0x7d8   :  { %4163 = vmatprep.subr.mxu0 %v9221_v3  ;;  %4444 = vmatprep.mubr.f32.mxu1 %v10603_v30 }
 0x7d9   :  { %4715 = vmatprep.subr.mxu1 %v4714_v4  ;;  %4035 = vmatmul.mubr.f32.vlgmr.msra.gmra.mxu0 %v4034_v13 }
 0x7da   :  { %4166 = vmatpush1.msra.mxu0 %v9226_v14  ;;  %4446 = vmatmul.mubr.f32.vlgmr.msra.gmra.mxu1 %v9271_v60 }
 0x7db   :  { %4721 = vmatpush1.msra.mxu1 %v4720_v20  ;;  %4169 = vmatprep.subr.mxu0 %v9231_v15 }
 0x7dc   :  { %4727 = vmatprep.subr.mxu1 %v4726_v45  ;;  %4172 = vmatpush1.msra.mxu0 %v9235_v5 }
 0x7dd   :  { %4733 = vmatpush1.msra.mxu1 %v4732_v46  ;;  %4205 = vmatprep.mubr.f32.mxu0 %v10603_v30 }
 0x7de   :  { %4323 = vmatprep.subr.mxu0 %v4071_v28  ;;  %4884 = vmatprep.subr.mxu1 %v9269_v37 }
 0x7df   :  { %4208 = vmatmul.mubr.f32.vlgmr.msra.gmra.mxu0 %v4031_v36  ;;  %4766 = vmatprep.mubr.f32.mxu1 %v10603_v30 }
 0x7e0   :  { %4327 = vmatpush1.msra.mxu0 %v4077_v11  ;;  %4368 = vmatprep.mubr.f32.mxu0 %v10603_v30 }
 0x7e1   :  { %4331 = vmatprep.subr.mxu0 %v4083_v2  ;;  %v4578_v53 = vpop.permute.xlu1 %4577  ;;  %v9376_v2 = vand.u32 4294901760, %v9055_v63 }
 0x7e2   :  { %4335 = vmatpush1.msra.mxu0 %v4089_v54  ;;  %v4585_v3 = vmul.f32 %v9193_v34, %v4578_v53 }
 0x7e3   :  { %4631 = vmatprep.subr.mxu0 %v9269_v37  ;;  %4370 = vmatmul.mubr.f32.vlgmr.msra.gmra.mxu0 %v9271_v60  ;;  %v9389_v23 = vsub.f32 %v9055_v63, %v9376_v2  ;;  %v9404_v60 = vsub.f32 %v10618_v61, %v9385_v48 }
 0x7e4   :  { %4633 = vmatpush1.msra.mxu0 %v9276_v42  ;;  %v4587_v14 = vsel %vm3451_vm5, %v4585_v3, 0.0  ;;  %4670 = vmatprep.mubr.f32.mxu0 %v10603_v30 }
 0x7e5   :  { %4635 = vmatprep.subr.mxu0 %v9280_v10  ;;  %v4589_v15 = vadd.f32 %v4588_v35, %v4587_v14  ;;  %v5206_v18 = vand.u32 4294901760, %v9389_v23  ;;  %v5224_v36 = vand.u32 4294901760, %v9404_v60 }
 0x7e6   :  { %4637 = vmatpush1.msra.mxu0 %v9284_v16 }
 0x7e7   :  { %4804 = vmatprep.subr.mxu0 %v9290_v39  ;;  %v4590_v34 = vrot.slane %v4589_v15, 4  ;;  %v5207_v27 = vsub.f32 %v9389_v23, %v5206_v18  ;;  %v5225_v40 = vsub.f32 %v9404_v60, %v5224_v36 }
 0x7e9   :  { %v4591_v5 = vadd.f32 %v4590_v34, %v4589_v15  ;;  %v5208_v38 = vand.u32 4294901760, %v5207_v27 }
 0x7eb   :  { %v4592_v28 = vrot.slane %v4591_v5, 2 }
 0x7ed   :  { %v4593_v11 = vadd.f32 %v4592_v28, %v4591_v5 }
 0x7ef   :  { %v4594_v50 = vrot.slane %v4593_v11, 1 }
 0x7f1   :  { %v4595_v59 = vadd.f32 %v4594_v50, %v4593_v11 }
 0x7f3   :  { %v4596_v54 = vsub.f32 1.0, %v4595_v59  ;;  %v4597_v43 = vmul.f32 %v4595_v59, %v9217_v57 }
 0x7f5   :  { %v4598_v1 = vmul.f32 %v4596_v54, %v9217_v57  ;;  %v5219_v57 = vsub.f32 %v9399_v17, %v5218_v26  ;;  %v5094_v44 = vsel %vm3451_vm5, %v4597_v43, 0 }
 0x7f6   :  { %v5165_v32 = vand.u32 4294901760, %v5094_v44 }
 0x7f7   :  { %v4600_v21 = vsel %vm3451_vm5, %v4598_v1, 0  ;;  %v5220_v49 = vand.u32 4294901760, %v5219_v57 }
 0x7f8   :  { %v4671_v6 = vand.u32 4294901760, %v4600_v21  ;;  %v5166_v58 = vsub.f32 %v5094_v44, %v5165_v32 }
 0x7fa   :  { %v4672_v63 = vsub.f32 %v4600_v21, %v4671_v6  ;;  %4768 = vmatmul.mubr.f32.vlgmr.msra.gmra.mxu1 %v4671_v6 }
 0x7fb   :  { %4886 = vmatpush1.msra.mxu1 %v9276_v42  ;;  %4923 = vmatprep.mubr.f32.mxu1 %v10603_v30 }
 0x7fc   :  { %4888 = vmatprep.subr.mxu1 %v9280_v10  ;;  %v4673_v47 = vand.u32 4294901760, %v4672_v63 }
 0x7fd   :  { %4890 = vmatpush1.msra.mxu1 %v9284_v16 }
 0x7fe   :  { %5046 = vmatprep.subr.mxu1 %v9269_v37  ;;  %4927 = vmatmul.mubr.f32.vlgmr.msra.gmra.mxu1 %v4673_v47  ;;  %v4674_v56 = vsub.f32 %v4672_v63, %v4673_v47 }
 0x7ff   :  { %5048 = vmatpush1.msra.mxu1 %v9276_v42  ;;  %5085 = vmatprep.mubr.f32.mxu1 %v10603_v30  ;;  %v5214_v42 = vand.u32 4294901760, %v5213_v52 }
 0x800   :  { %5050 = vmatprep.subr.mxu1 %v9280_v10  ;;  %v4675_v37 = vand.u32 4294901760, %v4674_v56  ;;  %v5226_v10 = vand.u32 4294901760, %v5225_v40 }
 0x801   :  { %5052 = vmatpush1.msra.mxu1 %v9284_v16  ;;  %v5167_v16 = vand.u32 4294901760, %v5166_v58 }
 0x802   :  { %5209 = vmatprep.subr.mxu1 %v5208_v38  ;;  %4676 = vmatmul.mubr.f32.vlgmr.msra.gmra.mxu0 %v4675_v37 }
 0x803   :  { %4807 = vmatpush1.msra.mxu0 %v9298_v24  ;;  %5087 = vmatmul.mubr.f32.vlgmr.msra.gmra.mxu1 %v4671_v6  ;;  %v5168_v39 = vsub.f32 %v5166_v58, %v5167_v16 }
 0x804   :  { %5215 = vmatpush1.msra.mxu1 %v5214_v42  ;;  %4810 = vmatprep.subr.mxu0 %v9305_v31 }
 0x805   :  { %5221 = vmatprep.subr.mxu1 %v5220_v49  ;;  %4813 = vmatpush1.msra.mxu0 %v9313_v29  ;;  %v5169_v24 = vand.u32 4294901760, %v5168_v39 }
 0x806   :  { %5227 = vmatpush1.msra.mxu1 %v5226_v10  ;;  %4846 = vmatprep.mubr.f32.mxu0 %v10603_v30 }
 0x807   :  { %4964 = vmatprep.subr.mxu0 %v4712_v12  ;;  %5260 = vmatprep.mubr.f32.mxu1 %v10603_v30 }
 0x808   :  { %5378 = vmatprep.subr.mxu1 %v9376_v2  ;;  %4849 = vmatmul.mubr.f32.vlgmr.msra.gmra.mxu0 %v4672_v63 }
 0x809   :  { %4968 = vmatpush1.msra.mxu0 %v4718_v62  ;;  %5262 = vmatmul.mubr.f32.vlgmr.msra.gmra.mxu1 %v5165_v32 }
 0x80a   :  { %5380 = vmatpush1.msra.mxu1 %v9379_v55  ;;  %4972 = vmatprep.subr.mxu0 %v4724_v22 }
 0x80b   :  { %5382 = vmatprep.subr.mxu1 %v9382_v0  ;;  %4976 = vmatpush1.msra.mxu0 %v4730_v8 }
 0x80c   :  { %5384 = vmatpush1.msra.mxu1 %v9385_v48  ;;  %5009 = vmatprep.mubr.f32.mxu0 %v10603_v30 }
 0x80d   :  { %5125 = vmatprep.subr.mxu0 %v9376_v2  ;;  %5417 = vmatprep.mubr.f32.mxu1 %v10603_v30 }
 0x80e   :  { %5540 = vmatprep.subr.mxu1 %v9376_v2  ;;  %5011 = vmatmul.mubr.f32.vlgmr.msra.gmra.mxu0 %v4671_v6 }
 0x80f   :  { %5127 = vmatpush1.msra.mxu0 %v9379_v55  ;;  %5421 = vmatmul.mubr.f32.vlgmr.msra.gmra.mxu1 %v5167_v16 }
 0x810   :  { %5542 = vmatpush1.msra.mxu1 %v9379_v55  ;;  %5129 = vmatprep.subr.mxu0 %v9382_v0 }
 0x811   :  { %5544 = vmatprep.subr.mxu1 %v9382_v0  ;;  %5131 = vmatpush1.msra.mxu0 %v9385_v48 }
 0x812   :  { %5546 = vmatpush1.msra.mxu1 %v9385_v48  ;;  %5164 = vmatprep.mubr.f32.mxu0 %v10603_v30 }
 0x813   :  { %5298 = vmatprep.subr.mxu0 %v9389_v23  ;;  %5579 = vmatprep.mubr.f32.mxu1 %v10603_v30 }
 0x814   :  { %5170 = vmatmul.mubr.f32.vlgmr.msra.gmra.mxu0 %v5169_v24  ;;  %5581 = vmatmul.mubr.f32.vlgmr.msra.gmra.mxu1 %v5165_v32 }
 0x815   :  { %5301 = vmatpush1.msra.mxu0 %v9394_v9  ;;  %5340 = vmatprep.mubr.f32.mxu0 %v10603_v30 }
 0x816   :  { %5304 = vmatprep.subr.mxu0 %v9399_v17 }
 0x817   :  { %5307 = vmatpush1.msra.mxu0 %v9404_v60 }
 0x818   :  { %5458 = vmatprep.subr.mxu0 %v5206_v18  ;;  %5343 = vmatmul.mubr.f32.vlgmr.msra.gmra.mxu0 %v5166_v58 }
 0x819   :  { %5462 = vmatpush1.msra.mxu0 %v5212_v41  ;;  %5503 = vmatprep.mubr.f32.mxu0 %v10603_v30 }
 0x81a   :  { %5466 = vmatprep.subr.mxu0 %v5218_v26 }
 0x81b   :  { %5470 = vmatpush1.msra.mxu0 %v5224_v36 }
 0x81c   :  { %5505 = vmatmul.mubr.f32.vlgmr.msra.gmra.mxu0 %v5165_v32 }
 0x87f   :  { %v3634_v31 = vpop.f32.mrf.mxu1 }
 0x881   :  { %v3636_v12 = vpop.f32.mrf.mxu1 }
 0x883   :  { %v3793_v29 = vpop.f32.mrf.mxu1 }
 0x885   :  { %v3795_v62 = vpop.f32.mrf.mxu1 }
 0x887   :  { %v3542_v22 = vpop.f32.mrf.mxu0 }
 0x888   :  { %v3953_v7 = vpop.f32.mrf.mxu1  ;;  %v3635_v4 = vadd.f32 %v3634_v31, %v3542_v22 }
 0x889   :  { %v3544_v8 = vpop.f32.mrf.mxu0 }
 0x88a   :  { %v3637_v51 = vadd.f32 %v3636_v12, %v3544_v8  ;;  %v3955_v45 = vpop.f32.mrf.mxu1 }
 0x88d   :  { %v3715_v13 = vpop.f32.mrf.mxu0 }
 0x88e   :  { %v3716_v20 = vadd.f32 %v3715_v13, %v3635_v4  ;;  %v4128_v53 = vpop.f32.mrf.mxu1 }
 0x88f   :  { %v3717_v30 = vpop.f32.mrf.mxu0 }
 0x890   :  { %v3718_v46 = vadd.f32 %v3717_v30, %v3637_v51  ;;  %v3794_v25 = vadd.f32 %v3793_v29, %v3716_v20  ;;  %v4130_v5 = vpop.f32.mrf.mxu1 }
 0x892   :  { %v3796_v19 = vadd.f32 %v3795_v62, %v3718_v46 }
 0x893   :  { %v3877_v3 = vpop.f32.mrf.mxu0 }
 0x894   :  { %v3878_v35 = vadd.f32 %v3877_v3, %v3794_v25  ;;  %v4287_v2 = vpop.f32.mrf.mxu1 }
 0x895   :  { %v3879_v14 = vpop.f32.mrf.mxu0 }
 0x896   :  { %v3880_v15 = vadd.f32 %v3879_v14, %v3796_v19  ;;  %v3954_v34 = vadd.f32 %v3953_v7, %v3878_v35  ;;  %v4289_v54 = vpop.f32.mrf.mxu1 }
 0x898   :  { %v3956_v28 = vadd.f32 %v3955_v45, %v3880_v15 }
 0x899   :  { %v4036_v11 = vpop.f32.mrf.mxu0 }
 0x89a   :  { %v4037_v50 = vadd.f32 %v4036_v11, %v3954_v34  ;;  %v4447_v21 = vpop.f32.mrf.mxu1 }
 0x89b   :  { %v4038_v59 = vpop.f32.mrf.mxu0 }
 0x89c   :  { %v4039_v55 = vadd.f32 %v4038_v59, %v3956_v28  ;;  %v4129_v33 = vadd.f32 %v4128_v53, %v4037_v50  ;;  %v4449_v26 = vpop.f32.mrf.mxu1 }
 0x89e   :  { %v4131_v0 = vadd.f32 %v4130_v5, %v4039_v55 }
 0x89f   :  { %v4209_v61 = vpop.f32.mrf.mxu0 }
 0x8a0   :  { %v4210_v48 = vadd.f32 %v4209_v61, %v4129_v33 }
 0x8a1   :  { %v4211_v23 = vpop.f32.mrf.mxu0 }
 0x8a2   :  { %v4212_v1 = vadd.f32 %v4211_v23, %v4131_v0  ;;  %v4288_v9 = vadd.f32 %v4287_v2, %v4210_v48 }
 0x8a3   :  { %v4371_v17 = vpop.f32.mrf.mxu0 }
 0x8a4   :  { %v4372_v6 = vadd.f32 %v4371_v17, %v4288_v9  ;;  %v4290_v18 = vadd.f32 %v4289_v54, %v4212_v1 }
 0x8a5   :  { %v4373_v60 = vpop.f32.mrf.mxu0 }
 0x8a6   :  { %v4448_v63 = vadd.f32 %v4447_v21, %v4372_v6  ;;  %v4374_v41 = vadd.f32 %v4373_v60, %v4290_v18 }
 0x8a8   :  { %v4452_v43 = vmax.f32 %v4448_v63, 0.0  ;;  %v4450_v47 = vadd.f32 %v4449_v26, %v4374_v41 }
 0x8aa   :  { %4454 = vst [vmem:[#allocation7] sm:$0xff] %v4452_v43  ;;  %v4453_v27 = vmax.f32 %v4450_v47, 0.0 }
 0x8ac   :  { %4455 = vst [vmem:[#allocation7 + $0x8] sm:$0xff] %v4453_v27 }
 0x8ba   :  { %v4769_v36 = vpop.f32.mrf.mxu1 }
 0x8bc   :  { %v4771_v56 = vpop.f32.mrf.mxu1 }
 0x8be   :  { %v4928_v52 = vpop.f32.mrf.mxu1 }
 0x8c0   :  { %v4930_v57 = vpop.f32.mrf.mxu1 }
 0x8c2   :  { %v4677_v44 = vpop.f32.mrf.mxu0 }
 0x8c3   :  { %v5088_v38 = vpop.f32.mrf.mxu1  ;;  %v4770_v40 = vadd.f32 %v4769_v36, %v4677_v44 }
 0x8c4   :  { %v4679_v37 = vpop.f32.mrf.mxu0 }
 0x8c5   :  { %v5090_v42 = vpop.f32.mrf.mxu1  ;;  %v4772_v49 = vadd.f32 %v4771_v56, %v4679_v37 }
 0x8c8   :  { %v4850_v32 = vpop.f32.mrf.mxu0 }
 0x8c9   :  { %v4851_v10 = vadd.f32 %v4850_v32, %v4770_v40  ;;  %v5263_v24 = vpop.f32.mrf.mxu1 }
 0x8ca   :  { %v4852_v58 = vpop.f32.mrf.mxu0 }
 0x8cb   :  { %v4853_v16 = vadd.f32 %v4852_v58, %v4772_v49  ;;  %v4929_v39 = vadd.f32 %v4928_v52, %v4851_v10  ;;  %v5265_v62 = vpop.f32.mrf.mxu1 }
 0x8cd   :  { %v4931_v31 = vadd.f32 %v4930_v57, %v4853_v16 }
 0x8ce   :  { %v5012_v12 = vpop.f32.mrf.mxu0 }
 0x8cf   :  { %v5013_v29 = vadd.f32 %v5012_v12, %v4929_v39  ;;  %v5422_v13 = vpop.f32.mrf.mxu1 }
 0x8d0   :  { %v5014_v22 = vpop.f32.mrf.mxu0 }
 0x8d1   :  { %v5015_v8 = vadd.f32 %v5014_v22, %v4931_v31  ;;  %v5089_v7 = vadd.f32 %v5088_v38, %v5013_v29  ;;  %v5424_v25 = vpop.f32.mrf.mxu1 }
 0x8d3   :  { %v5091_v4 = vadd.f32 %v5090_v42, %v5015_v8 }
 0x8d4   :  { %v5171_v51 = vpop.f32.mrf.mxu0  ;;  %v5582_v34 = vpop.f32.mrf.mxu1 }
 0x8d5   :  { %v5172_v20 = vadd.f32 %v5171_v51, %v5089_v7 }
 0x8d6   :  { %v5173_v45 = vpop.f32.mrf.mxu0  ;;  %v5584_v55 = vpop.f32.mrf.mxu1 }
 0x8d7   :  { %v5174_v30 = vadd.f32 %v5173_v45, %v5091_v4  ;;  %v5264_v46 = vadd.f32 %v5263_v24, %v5172_v20 }
 0x8d8   :  { %v5344_v19 = vpop.f32.mrf.mxu0 }
 0x8d9   :  { %v5345_v53 = vadd.f32 %v5344_v19, %v5264_v46  ;;  %v5266_v3 = vadd.f32 %v5265_v62, %v5174_v30 }
 0x8da   :  { %v5346_v35 = vpop.f32.mrf.mxu0 }
 0x8db   :  { %v5347_v14 = vadd.f32 %v5346_v35, %v5266_v3  ;;  %v5423_v15 = vadd.f32 %v5422_v13, %v5345_v53 }
 0x8dc   :  { %v5506_v5 = vpop.f32.mrf.mxu0 }
 0x8dd   :  { %v5507_v28 = vadd.f32 %v5506_v5, %v5423_v15  ;;  %v5425_v11 = vadd.f32 %v5424_v25, %v5347_v14 }
 0x8de   :  { %v5508_v50 = vpop.f32.mrf.mxu0 }
 0x8df   :  { %v5583_v2 = vadd.f32 %v5582_v34, %v5507_v28  ;;  %v5509_v59 = vadd.f32 %v5508_v50, %v5425_v11 }
 0x8e1   :  { %v5587_v33 = vmax.f32 %v5583_v2, 0.0  ;;  %v5585_v0 = vadd.f32 %v5584_v55, %v5509_v59 }
 0x8e3   :  { %5589 = vst [vmem:[#allocation7 + $0x10] sm:$0xff] %v5587_v33  ;;  %v5588_v54 = vmax.f32 %v5585_v0, 0.0 }
 0x8e5   :  { %5590 = vst [vmem:[#allocation7 + $0x18] sm:$0xff] %v5588_v54 }
 0x8e6   :  { %5847 = shalt.err (!%p5844_p0)
}
 0x8e7   :  { %5600 = dma.vmem_to_hbm [thread:$0]  %s5598_s14, 512, %s9483_s5, [#allocation4]  }
 0x8e8   :  { %5860 = dma.done.wait [#allocation4], 512  }
 0x8e9   :  { %5861 = vsyncadd [#allocation4], 4294966784 }
 0x8ea   :  { %5604 = vsyncpa [#allocation3], 1 }
 0x8eb   :  { %5605 = vsyncpa [#allocation6], 1 }
 0x8ec   :  { %5606 = vsyncpa [#allocation4], 1 }

</bundles_post_ra>
